<compile_context>
chip_gen: v7x
topology: tpu7x:2x2x1
jax: 0.10.0
libtpu: 0.0.40
codegen_flags: <defaults>
</compile_context>

<pallas_src>
import functools

import jax
import jax.numpy as jnp
from jax import lax
from jax.experimental import pallas as pl
from jax.experimental.pallas import tpu as pltpu

# Explicit scoped-VMEM limit that is safe on every generation (v5e/v6e: 128 MiB
# physical, v7x: 64 MiB physical) and far above what the blocks below need.
_VMEM_LIMIT_BYTES = 32 * 1024 * 1024


def _pick_time_chunk(seq_len, batch, hidden, num_dirs, budget_bytes=4 << 20):
    """Largest divisor-of-T chunk whose double-buffered bf16 blocks fit a small
    VMEM budget (conservative enough for v7x's 64 MiB)."""
    divisors = [c for c in (64, 32, 16, 8, 4, 2, 1) if seq_len % c == 0]
    for cand in divisors:
        # gx (4H) + y (H) per direction, bf16, double-buffered by the pipeline.
        est = 2 * num_dirs * batch * cand * (5 * hidden) * 2
        if est <= budget_bytes:
            return cand
    return divisors[-1]


# ------------------------- input-projection kernel ---------------------------
def _proj_kernel(x_ref, w_ref, b_ref, *gx_refs, four_h):
    """gx = x @ W_ih^T + b for all directions in one wide MXU matmul.

    x_ref  : (TM, E_in)        bf16
    w_ref  : (E_in, nd*4H)     bf16
    b_ref  : (1, nd*4H)        f32
    gx_refs[d] : (TM, 4H)      bf16
    """
    acc = jnp.dot(x_ref[...], w_ref[...],
                  preferred_element_type=jnp.float32) + b_ref[...]
    for d, gx_ref in enumerate(gx_refs):
        gx_ref[...] = acc[:, d * four_h:(d + 1) * four_h].astype(gx_ref.dtype)


def _project_inputs(x_flat, w_cat, b_cat, *, num_dirs, four_h):
    rows, e_in = x_flat.shape
    g = num_dirs * four_h
    tm = 512
    if rows <= tm:
        tm = rows
        rows_p = rows
    else:
        rows_p = pl.cdiv(rows, tm) * tm
        if rows_p != rows:
            # Pad so every block is full: keeps the auto-pipeline on the fast
            # path instead of the old "one giant block" fallback.
            x_flat = jnp.pad(x_flat, ((0, rows_p - rows), (0, 0)))
    grid = (rows_p // tm,)
    outs = pl.pallas_call(
        functools.partial(_proj_kernel, four_h=four_h),
        out_shape=tuple(jax.ShapeDtypeStruct((rows_p, four_h), jnp.bfloat16)
                        for _ in range(num_dirs)),
        grid_spec=pltpu.PrefetchScalarGridSpec(
            num_scalar_prefetch=0,
            grid=grid,
            in_specs=[pl.BlockSpec((tm, e_in), lambda m: (m, 0)),
                      pl.BlockSpec((e_in, g), lambda m: (0, 0)),   # resident
                      pl.BlockSpec((1, g), lambda m: (0, 0))],     # resident
            out_specs=tuple(pl.BlockSpec((tm, four_h), lambda m: (m, 0))
                            for _ in range(num_dirs))),
        compiler_params=pltpu.CompilerParams(
            dimension_semantics=("parallel",),
            vmem_limit_bytes=_VMEM_LIMIT_BYTES),
    )(x_flat, w_cat, b_cat)
    if rows_p != rows:
        outs = tuple(o[:rows] for o in outs)
    return outs


# --------------------------- recurrent LSTM kernel ----------------------------
def _lstm_rec_kernel(len_ref, *refs, num_dirs, hidden_size, chunk, num_chunks):
    """Fused fwd+rev LSTM recurrence over one time chunk.

    Grid = (NC,), sequential ("arbitrary") over time chunks.
    refs = gx(nd) + whh_fused + y(nd) + h_last(nd) + c_last(nd) + h_sc + c_sc
      len_ref    : (B, 1) i32
      gx[d]      : (TC, B, 4H) bf16  precomputed x@W_ih^T + b (chunk c / NC-1-c)
      whh_fused  : (nd*H, nd*4H) bf16  block-diagonal recurrent weights
      y[d]       : (TC, B, H) bf16   per-timestep hidden output
      h_last/c_last[d] : (B, H) f32
      h_sc/c_sc  : (B, nd*H) f32     VMEM state persisting across grid steps
    """
    H = hidden_size
    TC = chunk
    NC = num_chunks
    nd = num_dirs
    G1 = 4 * H
    G = nd * G1

    gx = refs[0:nd]
    whh_ref = refs[nd]
    y = refs[nd + 1:2 * nd + 1]
    h_last = refs[2 * nd + 1:3 * nd + 1]
    c_last = refs[3 * nd + 1:4 * nd + 1]
    h_sc = refs[4 * nd + 1]
    c_sc = refs[4 * nd + 2]

    B = h_sc.shape[0]
    c_idx = pl.program_id(0)

    @pl.when(c_idx == 0)
    def _():
        h_sc[...] = jnp.zeros_like(h_sc)
        c_sc[...] = jnp.zeros_like(c_sc)

    lens = len_ref[...]                     # (B, 1) i32, hoisted
    whh = whh_ref[...]                      # (nd*H, G) bf16, resident per layer

    # g-gate band rescale so tanh(x) = 2*sigmoid(2x) - 1 rides the same single
    # EUP sigmoid pass as the i/f/o gates.  Hoisted out of the time loop and
    # pre-broadcast so no per-step broadcast_in_dim is emitted.
    col = lax.broadcasted_iota(jnp.int32, (1, G), 1) % G1
    g_scale = jnp.broadcast_to(
        jnp.where((col >= 2 * H) & (col < 3 * H), 2.0, 1.0), (B, G))
    g_shift = 1.0 - g_scale

    base = [c_idx * TC, (NC - 1 - c_idx) * TC]      # fwd / rev chunk bases

    def _step(j, jr):
        loc = [j, jr]
        h_prev = h_sc[...]                  # (B, nd*H) f32
        c_prev = c_sc[...]

        # Precomputed input projections for this step (both directions).
        if nd == 2:
            gx_t = jnp.concatenate(
                [gx[0][j].astype(jnp.float32), gx[1][jr].astype(jnp.float32)],
                axis=-1)                                    # (B, G)
        else:
            gx_t = gx[0][j].astype(jnp.float32)

        # One fused MXU matmul for both directions (block-diagonal W_hh).
        gates = gx_t + jnp.dot(h_prev.astype(whh.dtype), whh,
                               preferred_element_type=jnp.float32)   # (B, G)
        # Single sigmoid pass over every gate of every direction.
        act = jax.nn.sigmoid(gates * g_scale) * g_scale + g_shift

        for d in range(nd):                 # static, nd <= 2 (chains interleave)
            off = d * G1
            i_g = act[:, off + 0 * H:off + 1 * H]
            f_g = act[:, off + 1 * H:off + 2 * H]
            g_g = act[:, off + 2 * H:off + 3 * H]
            o_g = act[:, off + 3 * H:off + 4 * H]
            c_d = f_g * c_prev[:, d * H:(d + 1) * H] + i_g * g_g
            h_d = o_g * jnp.tanh(c_d)
            # Packed-sequence mask, materialized once and reused for h/c/y.
            t_d = base[d] + loc[d]
            mask = jnp.broadcast_to(lens > t_d, (B, H))
            h_sc[:, d * H:(d + 1) * H] = jnp.where(
                mask, h_d, h_prev[:, d * H:(d + 1) * H])
            c_sc[:, d * H:(d + 1) * H] = jnp.where(
                mask, c_d, c_prev[:, d * H:(d + 1) * H])
            y[d][loc[d]] = jnp.where(mask, h_d, 0.0).astype(y[d].dtype)

    if TC <= 8:
        # Small chunk: full static unroll (== the requested partial-unroll depth).
        for j in range(TC):
            _step(j, TC - 1 - j)
    else:
        # Larger chunks: visible loop with partial unroll keeps vreg pressure flat.
        def body(j, carry):
            _step(j, TC - 1 - j)
            return carry
        lax.fori_loop(0, TC, body, 0, unroll=4)

    @pl.when(c_idx == NC - 1)
    def _():
        for d in range(nd):
            h_last[d][...] = h_sc[:, d * H:(d + 1) * H]
            c_last[d][...] = c_sc[:, d * H:(d + 1) * H]


def _lstm_layer(gx_list, whh_fused, lengths, *, hidden_size, seq_len, batch, chunk):
    nd = len(gx_list)
    H = hidden_size
    T = seq_len
    B = batch
    TC = chunk
    NC = T // TC
    G = nd * 4 * H

    def fwd_map(c):
        return (c, 0, 0)

    def rev_map(c):
        return (NC - 1 - c, 0, 0)

    t_maps = [fwd_map, rev_map][:nd]
    inv2 = lambda c: (0, 0)

    in_specs = [pl.BlockSpec((B, 1), inv2)]                                # lengths
    in_specs += [pl.BlockSpec((TC, B, 4 * H), t_maps[d]) for d in range(nd)]  # gx
    in_specs += [pl.BlockSpec((nd * H, G), inv2)]                          # W_hh fused

    out_shape = ([jax.ShapeDtypeStruct((T, B, H), jnp.bfloat16)] * nd
                 + [jax.ShapeDtypeStruct((B, H), jnp.float32)] * (2 * nd))
    out_specs = ([pl.BlockSpec((TC, B, H), t_maps[d]) for d in range(nd)]
                 + [pl.BlockSpec((B, H), inv2)] * (2 * nd))

    scratch = [pltpu.VMEM((B, nd * H), jnp.float32) for _ in range(2)]

    kernel = functools.partial(_lstm_rec_kernel, num_dirs=nd,
                               hidden_size=H, chunk=TC, num_chunks=NC)
    # TODO(synk): add a batch-parallel leading grid axis (("parallel","arbitrary"))
    # with per-batch-tile state scratch to use v7x's second TensorCore for large B.
    outs = pl.pallas_call(
        kernel,
        out_shape=tuple(out_shape),
        grid_spec=pltpu.PrefetchScalarGridSpec(
            num_scalar_prefetch=0,
            grid=(NC,),
            in_specs=in_specs,
            out_specs=tuple(out_specs),
            scratch_shapes=scratch),
        compiler_params=pltpu.CompilerParams(
            dimension_semantics=("arbitrary",),     # time is a recurrence
            vmem_limit_bytes=_VMEM_LIMIT_BYTES),
    )(lengths, *gx_list, whh_fused)

    ys = list(outs[:nd])
    h_lasts = list(outs[nd:2 * nd])
    c_lasts = list(outs[2 * nd:])
    return ys, h_lasts, c_lasts


# ------------------------------ module wrapper --------------------------------
def init_lstm_encoder_params(key, vocab_size, embed_size, hidden_size,
                             num_layers, bidirectional=True):
    nd = 2 if bidirectional else 1
    H = hidden_size
    key, k_embed = jax.random.split(key)
    params = {"embed": jax.random.normal(k_embed, (vocab_size, embed_size),
                                         jnp.float32).astype(jnp.bfloat16),
              "lstm": []}
    bound = float(hidden_size) ** -0.5
    for l in range(num_layers):
        in_size = embed_size if l == 0 else nd * H
        wih_cols, bias_cols, whh_blocks = [], [], []
        for d in range(nd):
            key, k1, k2, k3, k4 = jax.random.split(key, 5)
            w_ih = jax.random.uniform(k1, (4 * H, in_size), jnp.float32, -bound, bound)
            w_hh = jax.random.uniform(k2, (4 * H, H), jnp.float32, -bound, bound)
            b_ih = jax.random.uniform(k3, (4 * H,), jnp.float32, -bound, bound)
            b_hh = jax.random.uniform(k4, (4 * H,), jnp.float32, -bound, bound)
            wih_cols.append(w_ih.T.astype(jnp.bfloat16))          # (in, 4H)
            whh_blocks.append(w_hh.T)                             # (H, 4H) f32
            bias_cols.append((b_ih + b_hh).astype(jnp.float32))   # (4H,)
        # Block-diagonal fused recurrent weight: h_cat=[h_fwd|h_rev] @ whh_fused
        # yields both directions' gates in one MXU contraction.
        whh_fused = jnp.zeros((nd * H, nd * 4 * H), jnp.float32)
        for d in range(nd):
            whh_fused = whh_fused.at[d * H:(d + 1) * H,
                                     d * 4 * H:(d + 1) * 4 * H].set(whh_blocks[d])
        params["lstm"].append({
            "wih_cat": jnp.concatenate(wih_cols, axis=1),           # (in, nd*4H) bf16
            "bias_cat": jnp.concatenate(bias_cols).reshape(1, -1),  # (1, nd*4H) f32
            "whh_fused": whh_fused.astype(jnp.bfloat16),            # (nd*H, nd*4H)
        })
    return params


def lstm_encoder_forward(params, src_seq, src_lengths, *, num_layers,
                         hidden_size, bidirectional=True):
    """Mirrors LSTMEncoder.forward (inference semantics)."""
    B, T = src_seq.shape
    nd = 2 if bidirectional else 1
    H = hidden_size
    TC = _pick_time_chunk(T, B, H, nd)

    # Embedding lookup (glue: gather), bf16 table, time-major (T, B, E).
    x = jnp.take(params["embed"], src_seq.T, axis=0)          # (T, B, E) bf16
    lengths = src_lengths.reshape(B, 1).astype(jnp.int32)

    h_list, c_list = [], []
    for layer in params["lstm"][:num_layers]:
        e_in = x.shape[-1]
        # Hoisted input projection: one wide matmul over the whole sequence,
        # both directions at once; bf16 outputs (read once by the recurrence).
        x_flat = x.reshape(T * B, e_in)
        gx = _project_inputs(x_flat, layer["wih_cat"], layer["bias_cat"],
                             num_dirs=nd, four_h=4 * H)
        gx_list = [g.reshape(T, B, 4 * H) for g in gx]

        ys, h_lasts, c_lasts = _lstm_layer(
            gx_list, layer["whh_fused"], lengths,
            hidden_size=H, seq_len=T, batch=B, chunk=TC)
        h_list.extend(h_lasts)
        c_list.extend(c_lasts)
        x = ys[0] if nd == 1 else jnp.concatenate(ys, axis=-1)  # (T, B, nd*H) bf16
        # TODO(synk): inter-layer dropout omitted (deterministic / eval-mode forward).

    src_hidden = jnp.transpose(x, (1, 0, 2)).astype(jnp.float32)  # (B, T, nd*H)
    # h_n layout (num_layers*num_dirs, B, H) -> transpose(0,1) -> view(B, -1)
    h_T = jnp.stack(h_list, axis=0).transpose(1, 0, 2).reshape(B, -1)
    c_T = jnp.stack(c_list, axis=0).transpose(1, 0, 2).reshape(B, -1)
    return src_hidden, (h_T, c_T)


# ----------------------------------- main --------------------------------------
if __name__ == "__main__":
    VOCAB_SIZE = 50
    EMBED_SIZE = 16
    HIDDEN_SIZE = 32
    NUM_LAYERS = 2
    BATCH = 2
    SEQ = 8

    key = jax.random.PRNGKey(0)
    params = init_lstm_encoder_params(key, VOCAB_SIZE, EMBED_SIZE,
                                      HIDDEN_SIZE, NUM_LAYERS,
                                      bidirectional=True)

    key, k_seq = jax.random.split(key)
    src_seq = jax.random.randint(k_seq, (BATCH, SEQ), 0, VOCAB_SIZE,
                                 dtype=jnp.int32)
    # pack_padded_sequence expects descending lengths; max length == SEQ.
    src_lengths = jnp.array([SEQ, 5], dtype=jnp.int32)

    fwd = jax.jit(functools.partial(lstm_encoder_forward,
                                    num_layers=NUM_LAYERS,
                                    hidden_size=HIDDEN_SIZE,
                                    bidirectional=True))
    src_hidden, (h_T, c_T) = fwd(params, src_seq, src_lengths)
    jax.block_until_ready((src_hidden, h_T, c_T))

    assert src_hidden.shape == (BATCH, SEQ, 2 * HIDDEN_SIZE)
    assert h_T.shape == (BATCH, NUM_LAYERS * 2 * HIDDEN_SIZE)
    assert c_T.shape == (BATCH, NUM_LAYERS * 2 * HIDDEN_SIZE)
    print("KERNEL_OK")
</pallas_src>

<mosaic_0001>
module attributes {stable_mosaic.version = 11 : i64} {
  func.func @_proj_kernel(%arg0: i32, %arg1: memref<16x16xbf16, #tpu.memory_space<vmem>>, %arg2: memref<16x256xbf16, #tpu.memory_space<vmem>>, %arg3: memref<1x256xf32, #tpu.memory_space<vmem>>, %arg4: memref<16x128xbf16, #tpu.memory_space<vmem>>, %arg5: memref<16x128xbf16, #tpu.memory_space<vmem>>) attributes {dimension_semantics = [#tpu.dimension_semantics<parallel>], iteration_bounds = array<i64: 1>, scalar_prefetch = 0 : i64, scratch_operands = 0 : i64, tpu.core_type = #tpu.core_type<tc>, window_params = [{transform_indices = @transform_0, window_bounds = array<i64: 16, 16>}, {pipeline_mode = #tpu.pipeline_mode<synchronous>, transform_indices = @transform_1, window_bounds = array<i64: 16, 256>}, {pipeline_mode = #tpu.pipeline_mode<synchronous>, transform_indices = @transform_2, window_bounds = array<i64: 1, 256>}, {transform_indices = @transform_3, window_bounds = array<i64: 16, 128>}, {transform_indices = @transform_4, window_bounds = array<i64: 16, 128>}]} {
    %c0 = arith.constant 0 : index
    %c0_0 = arith.constant 0 : index
    %0 = vector.load %arg1[%c0, %c0_0] : memref<16x16xbf16, #tpu.memory_space<vmem>>, vector<16x16xbf16>
    %c0_1 = arith.constant 0 : index
    %c0_2 = arith.constant 0 : index
    %1 = vector.load %arg2[%c0_1, %c0_2] : memref<16x256xbf16, #tpu.memory_space<vmem>>, vector<16x256xbf16>
    %cst = arith.constant dense<0.000000e+00> : vector<16x256xf32>
    %2 = tpu.matmul %0, %1, %cst {dimension_numbers = #tpu.dot_dimension_numbers<[1], [0], [0], [1], [0, 0, 1, 1], [], []>} : vector<16x16xbf16>, vector<16x256xbf16>, vector<16x256xf32> -> vector<16x256xf32>
    %c0_3 = arith.constant 0 : index
    %c0_4 = arith.constant 0 : index
    %3 = vector.load %arg3[%c0_3, %c0_4] : memref<1x256xf32, #tpu.memory_space<vmem>>, vector<1x256xf32>
    %4 = vector.broadcast %3 : vector<1x256xf32> to vector<16x256xf32>
    %5 = arith.addf %2, %4 : vector<16x256xf32>
    %6 = vector.extract_strided_slice %5 {offsets = [0, 0], sizes = [16, 128], strides = [1, 1]} : vector<16x256xf32> to vector<16x128xf32>
    %7 = arith.truncf %6 : vector<16x128xf32> to vector<16x128xbf16>
    %c0_5 = arith.constant 0 : index
    %c0_6 = arith.constant 0 : index
    %8 = vector.load %arg4[%c0_5, %c0_6] : memref<16x128xbf16, #tpu.memory_space<vmem>>, vector<16x128xbf16>
    tpu.vector_store %arg4[%c0_5, %c0_6], %7 {strides = array<i32>} : memref<16x128xbf16, #tpu.memory_space<vmem>>, vector<16x128xbf16>,
    %9 = vector.extract_strided_slice %5 {offsets = [0, 128], sizes = [16, 128], strides = [1, 1]} : vector<16x256xf32> to vector<16x128xf32>
    %10 = arith.truncf %9 : vector<16x128xf32> to vector<16x128xbf16>
    %c0_7 = arith.constant 0 : index
    %c0_8 = arith.constant 0 : index
    %11 = vector.load %arg5[%c0_7, %c0_8] : memref<16x128xbf16, #tpu.memory_space<vmem>>, vector<16x128xbf16>
    tpu.vector_store %arg5[%c0_7, %c0_8], %10 {strides = array<i32>} : memref<16x128xbf16, #tpu.memory_space<vmem>>, vector<16x128xbf16>,
    return
  }
  func.func @transform_0(%arg0: i32) -> (i32, i32) {
    %c0_i32 = arith.constant 0 : i32
    %c0_i32_0 = arith.constant 0 : i32
    return %arg0, %c0_i32 : i32, i32
  }
  func.func @transform_1(%arg0: i32) -> (i32, i32) {
    %c0_i32 = arith.constant 0 : i32
    %c0_i32_0 = arith.constant 0 : i32
    %c0_i32_1 = arith.constant 0 : i32
    return %c0_i32, %c0_i32_0 : i32, i32
  }
  func.func @transform_2(%arg0: i32) -> (i32, i32) {
    %c0_i32 = arith.constant 0 : i32
    %c0_i32_0 = arith.constant 0 : i32
    %c0_i32_1 = arith.constant 0 : i32
    return %c0_i32, %c0_i32_0 : i32, i32
  }
  func.func @transform_3(%arg0: i32) -> (i32, i32) {
    %c0_i32 = arith.constant 0 : i32
    %c0_i32_0 = arith.constant 0 : i32
    return %arg0, %c0_i32 : i32, i32
  }
  func.func @transform_4(%arg0: i32) -> (i32, i32) {
    %c0_i32 = arith.constant 0 : i32
    %c0_i32_0 = arith.constant 0 : i32
    return %arg0, %c0_i32 : i32, i32
  }
}

module attributes {stable_mosaic.version = 11 : i64} {
  func.func @_proj_kernel(%arg0: i32, %arg1: memref<16x64xbf16, #tpu.memory_space<vmem>>, %arg2: memref<64x256xbf16, #tpu.memory_space<vmem>>, %arg3: memref<1x256xf32, #tpu.memory_space<vmem>>, %arg4: memref<16x128xbf16, #tpu.memory_space<vmem>>, %arg5: memref<16x128xbf16, #tpu.memory_space<vmem>>) attributes {dimension_semantics = [#tpu.dimension_semantics<parallel>], iteration_bounds = array<i64: 1>, scalar_prefetch = 0 : i64, scratch_operands = 0 : i64, tpu.core_type = #tpu.core_type<tc>, window_params = [{transform_indices = @transform_0, window_bounds = array<i64: 16, 64>}, {pipeline_mode = #tpu.pipeline_mode<synchronous>, transform_indices = @transform_1, window_bounds = array<i64: 64, 256>}, {pipeline_mode = #tpu.pipeline_mode<synchronous>, transform_indices = @transform_2, window_bounds = array<i64: 1, 256>}, {transform_indices = @transform_3, window_bounds = array<i64: 16, 128>}, {transform_indices = @transform_4, window_bounds = array<i64: 16, 128>}]} {
    %c0 = arith.constant 0 : index
    %c0_0 = arith.constant 0 : index
    %0 = vector.load %arg1[%c0, %c0_0] : memref<16x64xbf16, #tpu.memory_space<vmem>>, vector<16x64xbf16>
    %c0_1 = arith.constant 0 : index
    %c0_2 = arith.constant 0 : index
    %1 = vector.load %arg2[%c0_1, %c0_2] : memref<64x256xbf16, #tpu.memory_space<vmem>>, vector<64x256xbf16>
    %cst = arith.constant dense<0.000000e+00> : vector<16x256xf32>
    %2 = tpu.matmul %0, %1, %cst {dimension_numbers = #tpu.dot_dimension_numbers<[1], [0], [0], [1], [0, 0, 1, 1], [], []>} : vector<16x64xbf16>, vector<64x256xbf16>, vector<16x256xf32> -> vector<16x256xf32>
    %c0_3 = arith.constant 0 : index
    %c0_4 = arith.constant 0 : index
    %3 = vector.load %arg3[%c0_3, %c0_4] : memref<1x256xf32, #tpu.memory_space<vmem>>, vector<1x256xf32>
    %4 = vector.broadcast %3 : vector<1x256xf32> to vector<16x256xf32>
    %5 = arith.addf %2, %4 : vector<16x256xf32>
    %6 = vector.extract_strided_slice %5 {offsets = [0, 0], sizes = [16, 128], strides = [1, 1]} : vector<16x256xf32> to vector<16x128xf32>
    %7 = arith.truncf %6 : vector<16x128xf32> to vector<16x128xbf16>
    %c0_5 = arith.constant 0 : index
    %c0_6 = arith.constant 0 : index
    %8 = vector.load %arg4[%c0_5, %c0_6] : memref<16x128xbf16, #tpu.memory_space<vmem>>, vector<16x128xbf16>
    tpu.vector_store %arg4[%c0_5, %c0_6], %7 {strides = array<i32>} : memref<16x128xbf16, #tpu.memory_space<vmem>>, vector<16x128xbf16>,
    %9 = vector.extract_strided_slice %5 {offsets = [0, 128], sizes = [16, 128], strides = [1, 1]} : vector<16x256xf32> to vector<16x128xf32>
    %10 = arith.truncf %9 : vector<16x128xf32> to vector<16x128xbf16>
    %c0_7 = arith.constant 0 : index
    %c0_8 = arith.constant 0 : index
    %11 = vector.load %arg5[%c0_7, %c0_8] : memref<16x128xbf16, #tpu.memory_space<vmem>>, vector<16x128xbf16>
    tpu.vector_store %arg5[%c0_7, %c0_8], %10 {strides = array<i32>} : memref<16x128xbf16, #tpu.memory_space<vmem>>, vector<16x128xbf16>,
    return
  }
  func.func @transform_0(%arg0: i32) -> (i32, i32) {
    %c0_i32 = arith.constant 0 : i32
    %c0_i32_0 = arith.constant 0 : i32
    return %arg0, %c0_i32 : i32, i32
  }
  func.func @transform_1(%arg0: i32) -> (i32, i32) {
    %c0_i32 = arith.constant 0 : i32
    %c0_i32_0 = arith.constant 0 : i32
    %c0_i32_1 = arith.constant 0 : i32
    return %c0_i32, %c0_i32_0 : i32, i32
  }
  func.func @transform_2(%arg0: i32) -> (i32, i32) {
    %c0_i32 = arith.constant 0 : i32
    %c0_i32_0 = arith.constant 0 : i32
    %c0_i32_1 = arith.constant 0 : i32
    return %c0_i32, %c0_i32_0 : i32, i32
  }
  func.func @transform_3(%arg0: i32) -> (i32, i32) {
    %c0_i32 = arith.constant 0 : i32
    %c0_i32_0 = arith.constant 0 : i32
    return %arg0, %c0_i32 : i32, i32
  }
  func.func @transform_4(%arg0: i32) -> (i32, i32) {
    %c0_i32 = arith.constant 0 : i32
    %c0_i32_0 = arith.constant 0 : i32
    return %arg0, %c0_i32 : i32, i32
  }
}

module attributes {stable_mosaic.version = 11 : i64} {
  func.func @_lstm_rec_kernel(%arg0: i32, %arg1: memref<2x1xi32, #tpu.memory_space<vmem>>, %arg2: memref<8x2x128xbf16, #tpu.memory_space<vmem>>, %arg3: memref<8x2x128xbf16, #tpu.memory_space<vmem>>, %arg4: memref<64x256xbf16, #tpu.memory_space<vmem>>, %arg5: memref<8x2x32xbf16, #tpu.memory_space<vmem>>, %arg6: memref<8x2x32xbf16, #tpu.memory_space<vmem>>, %arg7: memref<2x32xf32, #tpu.memory_space<vmem>>, %arg8: memref<2x32xf32, #tpu.memory_space<vmem>>, %arg9: memref<2x32xf32, #tpu.memory_space<vmem>>, %arg10: memref<2x32xf32, #tpu.memory_space<vmem>>, %arg11: memref<2x64xf32, #tpu.memory_space<vmem>>, %arg12: memref<2x64xf32, #tpu.memory_space<vmem>>) attributes {dimension_semantics = [#tpu.dimension_semantics<arbitrary>], iteration_bounds = array<i64: 1>, scalar_prefetch = 0 : i64, scratch_operands = 2 : i64, tpu.core_type = #tpu.core_type<tc>, window_params = [{pipeline_mode = #tpu.pipeline_mode<synchronous>, transform_indices = @transform_0, window_bounds = array<i64: 2, 1>}, {transform_indices = @transform_1, window_bounds = array<i64: 8, 2, 128>}, {transform_indices = @transform_2, window_bounds = array<i64: 8, 2, 128>}, {pipeline_mode = #tpu.pipeline_mode<synchronous>, transform_indices = @transform_3, window_bounds = array<i64: 64, 256>}, {transform_indices = @transform_4, window_bounds = array<i64: 8, 2, 32>}, {transform_indices = @transform_5, window_bounds = array<i64: 8, 2, 32>}, {pipeline_mode = #tpu.pipeline_mode<synchronous>, transform_indices = @transform_6, window_bounds = array<i64: 2, 32>}, {pipeline_mode = #tpu.pipeline_mode<synchronous>, transform_indices = @transform_7, window_bounds = array<i64: 2, 32>}, {pipeline_mode = #tpu.pipeline_mode<synchronous>, transform_indices = @transform_8, window_bounds = array<i64: 2, 32>}, {pipeline_mode = #tpu.pipeline_mode<synchronous>, transform_indices = @transform_9, window_bounds = array<i64: 2, 32>}]} {
    %c0_i32 = arith.constant 0 : i32
    %0 = arith.cmpi eq, %arg0, %c0_i32 : i32
    %1 = arith.extui %0 : i1 to i32
    %c0_i32_0 = arith.constant 0 : i32
    %2 = arith.cmpi ne, %1, %c0_i32_0 : i32
    scf.if %2 {
      %cst_240 = arith.constant 0.000000e+00 : f32
      %632 = vector.broadcast %cst_240 : f32 to vector<2x64xf32>
      %c0_241 = arith.constant 0 : index
      %c0_242 = arith.constant 0 : index
      %633 = vector.load %arg11[%c0_241, %c0_242] : memref<2x64xf32, #tpu.memory_space<vmem>>, vector<2x64xf32>
      tpu.vector_store %arg11[%c0_241, %c0_242], %632 {strides = array<i32>} : memref<2x64xf32, #tpu.memory_space<vmem>>, vector<2x64xf32>,
      %cst_243 = arith.constant 0.000000e+00 : f32
      %634 = vector.broadcast %cst_243 : f32 to vector<2x64xf32>
      %c0_244 = arith.constant 0 : index
      %c0_245 = arith.constant 0 : index
      %635 = vector.load %arg12[%c0_244, %c0_245] : memref<2x64xf32, #tpu.memory_space<vmem>>, vector<2x64xf32>
      tpu.vector_store %arg12[%c0_244, %c0_245], %634 {strides = array<i32>} : memref<2x64xf32, #tpu.memory_space<vmem>>, vector<2x64xf32>,
    } else {
    }
    %c0 = arith.constant 0 : index
    %c0_1 = arith.constant 0 : index
    %3 = vector.load %arg1[%c0, %c0_1] : memref<2x1xi32, #tpu.memory_space<vmem>>, vector<2x1xi32>
    %c0_2 = arith.constant 0 : index
    %c0_3 = arith.constant 0 : index
    %4 = vector.load %arg4[%c0_2, %c0_3] : memref<64x256xbf16, #tpu.memory_space<vmem>>, vector<64x256xbf16>
    %5 = tpu.iota {dimensions = array<i32: 1>} : vector<1x256xi32>
    %c128_i32 = arith.constant 128 : i32
    %c0_i32_4 = arith.constant 0 : i32
    %6 = arith.cmpi eq, %c128_i32, %c0_i32_4 : i32
    %c1_i32 = arith.constant 1 : i32
    %7 = arith.select %6, %c1_i32, %c128_i32 : i32
    %8 = vector.broadcast %7 : i32 to vector<1x256xi32>
    %9 = arith.remsi %5, %8 : vector<1x256xi32>
    %c0_i32_5 = arith.constant 0 : i32
    %10 = vector.broadcast %c0_i32_5 : i32 to vector<1x256xi32>
    %11 = arith.cmpi ne, %9, %10 : vector<1x256xi32>
    %c0_i32_6 = arith.constant 0 : i32
    %12 = vector.broadcast %c0_i32_6 : i32 to vector<1x256xi32>
    %13 = arith.cmpi slt, %9, %12 : vector<1x256xi32>
    %c0_i32_7 = arith.constant 0 : i32
    %14 = arith.cmpi slt, %7, %c0_i32_7 : i32
    %15 = vector.broadcast %14 : i1 to vector<1x256xi1>
    %16 = vector.broadcast %15 : vector<1x256xi1> to vector<1x256xi1>
    %17 = arith.xori %13, %16 : vector<1x256xi1>
    %18 = arith.andi %17, %11 : vector<1x256xi1>
    %19 = vector.broadcast %7 : i32 to vector<1x256xi32>
    %20 = arith.addi %9, %19 : vector<1x256xi32>
    %21 = arith.select %18, %20, %9 : vector<1x256xi1>, vector<1x256xi32>
    %c64_i32 = arith.constant 64 : i32
    %22 = vector.broadcast %c64_i32 : i32 to vector<1x256xi32>
    %23 = arith.cmpi sge, %21, %22 : vector<1x256xi32>
    %c96_i32 = arith.constant 96 : i32
    %24 = vector.broadcast %c96_i32 : i32 to vector<1x256xi32>
    %25 = arith.cmpi slt, %21, %24 : vector<1x256xi32>
    %26 = arith.andi %23, %25 : vector<1x256xi1>
    %cst = arith.constant 2.000000e+00 : f32
    %cst_8 = arith.constant 1.000000e+00 : f32
    %27 = vector.broadcast %cst : f32 to vector<1x256xf32>
    %28 = vector.broadcast %cst_8 : f32 to vector<1x256xf32>
    %29 = arith.select %26, %27, %28 : vector<1x256xi1>, vector<1x256xf32>
    %30 = vector.shape_cast %29 : vector<1x256xf32> to vector<1x256xf32>
    %31 = vector.broadcast %30 : vector<1x256xf32> to vector<2x256xf32>
    %cst_9 = arith.constant 1.000000e+00 : f32
    %32 = vector.broadcast %cst_9 : f32 to vector<2x256xf32>
    %33 = arith.subf %32, %31 : vector<2x256xf32>
    %c8_i32 = arith.constant 8 : i32
    %34 = arith.muli %arg0, %c8_i32 : i32
    %c0_i32_10 = arith.constant 0 : i32
    %35 = arith.subi %c0_i32_10, %arg0 : i32
    %c8_i32_11 = arith.constant 8 : i32
    %36 = arith.muli %35, %c8_i32_11 : i32
    %c0_12 = arith.constant 0 : index
    %c0_13 = arith.constant 0 : index
    %37 = vector.load %arg11[%c0_12, %c0_13] : memref<2x64xf32, #tpu.memory_space<vmem>>, vector<2x64xf32>
    %c0_14 = arith.constant 0 : index
    %c0_15 = arith.constant 0 : index
    %38 = vector.load %arg12[%c0_14, %c0_15] : memref<2x64xf32, #tpu.memory_space<vmem>>, vector<2x64xf32>
    %c0_16 = arith.constant 0 : index
    %c0_17 = arith.constant 0 : index
    %c0_18 = arith.constant 0 : index
    %39 = vector.load %arg2[%c0_16, %c0_17, %c0_18] : memref<8x2x128xbf16, #tpu.memory_space<vmem>>, vector<1x2x128xbf16>
    %40 = vector.shape_cast %39 : vector<1x2x128xbf16> to vector<2x128xbf16>
    %41 = arith.extf %40 : vector<2x128xbf16> to vector<2x128xf32>
    %c7 = arith.constant 7 : index
    %c0_19 = arith.constant 0 : index
    %c0_20 = arith.constant 0 : index
    %42 = vector.load %arg3[%c7, %c0_19, %c0_20] : memref<8x2x128xbf16, #tpu.memory_space<vmem>>, vector<1x2x128xbf16>
    %43 = vector.shape_cast %42 : vector<1x2x128xbf16> to vector<2x128xbf16>
    %44 = arith.extf %43 : vector<2x128xbf16> to vector<2x128xf32>
    %45 = tpu.concatenate %41, %44 in 1 : vector<2x128xf32>, vector<2x128xf32> -> vector<2x256xf32>
    %46 = arith.truncf %37 : vector<2x64xf32> to vector<2x64xbf16>
    %cst_21 = arith.constant dense<0.000000e+00> : vector<2x256xf32>
    %47 = tpu.matmul %46, %4, %cst_21 {dimension_numbers = #tpu.dot_dimension_numbers<[1], [0], [0], [1], [0, 0, 1, 1], [], []>} : vector<2x64xbf16>, vector<64x256xbf16>, vector<2x256xf32> -> vector<2x256xf32>
    %48 = arith.addf %45, %47 : vector<2x256xf32>
    %49 = arith.mulf %48, %31 : vector<2x256xf32>
    %50 = arith.negf %49 : vector<2x256xf32>
    %51 = math.exp %50 : vector<2x256xf32>
    %cst_22 = arith.constant 1.000000e+00 : f32
    %52 = vector.broadcast %cst_22 : f32 to vector<2x256xf32>
    %53 = arith.addf %52, %51 : vector<2x256xf32>
    %54 = arith.divf %52, %53 : vector<2x256xf32>
    %55 = arith.mulf %54, %31 : vector<2x256xf32>
    %56 = arith.addf %55, %33 : vector<2x256xf32>
    %57 = vector.extract_strided_slice %56 {offsets = [0, 0], sizes = [2, 32], strides = [1, 1]} : vector<2x256xf32> to vector<2x32xf32>
    %58 = vector.extract_strided_slice %56 {offsets = [0, 32], sizes = [2, 32], strides = [1, 1]} : vector<2x256xf32> to vector<2x32xf32>
    %59 = vector.extract_strided_slice %56 {offsets = [0, 64], sizes = [2, 32], strides = [1, 1]} : vector<2x256xf32> to vector<2x32xf32>
    %60 = vector.extract_strided_slice %56 {offsets = [0, 96], sizes = [2, 32], strides = [1, 1]} : vector<2x256xf32> to vector<2x32xf32>
    %61 = vector.extract_strided_slice %38 {offsets = [0, 0], sizes = [2, 32], strides = [1, 1]} : vector<2x64xf32> to vector<2x32xf32>
    %62 = arith.mulf %58, %61 : vector<2x32xf32>
    %63 = arith.mulf %57, %59 : vector<2x32xf32>
    %64 = arith.addf %62, %63 : vector<2x32xf32>
    %65 = math.tanh %64 : vector<2x32xf32>
    %66 = arith.mulf %60, %65 : vector<2x32xf32>
    %c0_i32_23 = arith.constant 0 : i32
    %67 = arith.addi %34, %c0_i32_23 : i32
    %68 = vector.broadcast %67 : i32 to vector<2x1xi32>
    %69 = arith.cmpi sgt, %3, %68 : vector<2x1xi32>
    %70 = vector.shape_cast %69 : vector<2x1xi1> to vector<2x1xi1>
    %71 = vector.broadcast %70 : vector<2x1xi1> to vector<2x32xi1>
    %72 = vector.extract_strided_slice %37 {offsets = [0, 0], sizes = [2, 32], strides = [1, 1]} : vector<2x64xf32> to vector<2x32xf32>
    %73 = arith.select %71, %66, %72 : vector<2x32xi1>, vector<2x32xf32>
    %c0_24 = arith.constant 0 : index
    %c0_25 = arith.constant 0 : index
    %74 = vector.load %arg11[%c0_24, %c0_25] : memref<2x64xf32, #tpu.memory_space<vmem>>, vector<2x32xf32>
    tpu.vector_store %arg11[%c0_24, %c0_25], %73 {strides = array<i32>} : memref<2x64xf32, #tpu.memory_space<vmem>>, vector<2x32xf32>,
    %75 = vector.extract_strided_slice %38 {offsets = [0, 0], sizes = [2, 32], strides = [1, 1]} : vector<2x64xf32> to vector<2x32xf32>
    %76 = arith.select %71, %64, %75 : vector<2x32xi1>, vector<2x32xf32>
    %c0_26 = arith.constant 0 : index
    %c0_27 = arith.constant 0 : index
    %77 = vector.load %arg12[%c0_26, %c0_27] : memref<2x64xf32, #tpu.memory_space<vmem>>, vector<2x32xf32>
    tpu.vector_store %arg12[%c0_26, %c0_27], %76 {strides = array<i32>} : memref<2x64xf32, #tpu.memory_space<vmem>>, vector<2x32xf32>,
    %cst_28 = arith.constant 0.000000e+00 : f32
    %78 = vector.broadcast %cst_28 : f32 to vector<2x32xf32>
    %79 = arith.select %71, %66, %78 : vector<2x32xi1>, vector<2x32xf32>
    %80 = arith.truncf %79 : vector<2x32xf32> to vector<2x32xbf16>
    %c0_29 = arith.constant 0 : index
    %c0_30 = arith.constant 0 : index
    %c0_31 = arith.constant 0 : index
    %81 = vector.load %arg5[%c0_29, %c0_30, %c0_31] : memref<8x2x32xbf16, #tpu.memory_space<vmem>>, vector<1x2x32xbf16>
    %82 = vector.shape_cast %81 : vector<1x2x32xbf16> to vector<2x32xbf16>
    %83 = vector.shape_cast %80 : vector<2x32xbf16> to vector<1x2x32xbf16>
    tpu.vector_store %arg5[%c0_29, %c0_30, %c0_31], %83 {strides = array<i32>} : memref<8x2x32xbf16, #tpu.memory_space<vmem>>, vector<1x2x32xbf16>,
    %84 = vector.extract_strided_slice %56 {offsets = [0, 128], sizes = [2, 32], strides = [1, 1]} : vector<2x256xf32> to vector<2x32xf32>
    %85 = vector.extract_strided_slice %56 {offsets = [0, 160], sizes = [2, 32], strides = [1, 1]} : vector<2x256xf32> to vector<2x32xf32>
    %86 = vector.extract_strided_slice %56 {offsets = [0, 192], sizes = [2, 32], strides = [1, 1]} : vector<2x256xf32> to vector<2x32xf32>
    %87 = vector.extract_strided_slice %56 {offsets = [0, 224], sizes = [2, 32], strides = [1, 1]} : vector<2x256xf32> to vector<2x32xf32>
    %88 = vector.extract_strided_slice %38 {offsets = [0, 32], sizes = [2, 32], strides = [1, 1]} : vector<2x64xf32> to vector<2x32xf32>
    %89 = arith.mulf %85, %88 : vector<2x32xf32>
    %90 = arith.mulf %84, %86 : vector<2x32xf32>
    %91 = arith.addf %89, %90 : vector<2x32xf32>
    %92 = math.tanh %91 : vector<2x32xf32>
    %93 = arith.mulf %87, %92 : vector<2x32xf32>
    %c7_i32 = arith.constant 7 : i32
    %94 = arith.addi %36, %c7_i32 : i32
    %95 = vector.broadcast %94 : i32 to vector<2x1xi32>
    %96 = arith.cmpi sgt, %3, %95 : vector<2x1xi32>
    %97 = vector.shape_cast %96 : vector<2x1xi1> to vector<2x1xi1>
    %98 = vector.broadcast %97 : vector<2x1xi1> to vector<2x32xi1>
    %99 = vector.extract_strided_slice %37 {offsets = [0, 32], sizes = [2, 32], strides = [1, 1]} : vector<2x64xf32> to vector<2x32xf32>
    %100 = arith.select %98, %93, %99 : vector<2x32xi1>, vector<2x32xf32>
    %c0_32 = arith.constant 0 : index
    %c32 = arith.constant 32 : index
    %101 = vector.load %arg11[%c0_32, %c32] : memref<2x64xf32, #tpu.memory_space<vmem>>, vector<2x32xf32>
    tpu.vector_store %arg11[%c0_32, %c32], %100 {strides = array<i32>} : memref<2x64xf32, #tpu.memory_space<vmem>>, vector<2x32xf32>,
    %102 = vector.extract_strided_slice %38 {offsets = [0, 32], sizes = [2, 32], strides = [1, 1]} : vector<2x64xf32> to vector<2x32xf32>
    %103 = arith.select %98, %91, %102 : vector<2x32xi1>, vector<2x32xf32>
    %c0_33 = arith.constant 0 : index
    %c32_34 = arith.constant 32 : index
    %104 = vector.load %arg12[%c0_33, %c32_34] : memref<2x64xf32, #tpu.memory_space<vmem>>, vector<2x32xf32>
    tpu.vector_store %arg12[%c0_33, %c32_34], %103 {strides = array<i32>} : memref<2x64xf32, #tpu.memory_space<vmem>>, vector<2x32xf32>,
    %cst_35 = arith.constant 0.000000e+00 : f32
    %105 = vector.broadcast %cst_35 : f32 to vector<2x32xf32>
    %106 = arith.select %98, %93, %105 : vector<2x32xi1>, vector<2x32xf32>
    %107 = arith.truncf %106 : vector<2x32xf32> to vector<2x32xbf16>
    %c7_36 = arith.constant 7 : index
    %c0_37 = arith.constant 0 : index
    %c0_38 = arith.constant 0 : index
    %108 = vector.load %arg6[%c7_36, %c0_37, %c0_38] : memref<8x2x32xbf16, #tpu.memory_space<vmem>>, vector<1x2x32xbf16>
    %109 = vector.shape_cast %108 : vector<1x2x32xbf16> to vector<2x32xbf16>
    %110 = vector.shape_cast %107 : vector<2x32xbf16> to vector<1x2x32xbf16>
    tpu.vector_store %arg6[%c7_36, %c0_37, %c0_38], %110 {strides = array<i32>} : memref<8x2x32xbf16, #tpu.memory_space<vmem>>, vector<1x2x32xbf16>,
    %c0_39 = arith.constant 0 : index
    %c0_40 = arith.constant 0 : index
    %111 = vector.load %arg11[%c0_39, %c0_40] : memref<2x64xf32, #tpu.memory_space<vmem>>, vector<2x64xf32>
    %c0_41 = arith.constant 0 : index
    %c0_42 = arith.constant 0 : index
    %112 = vector.load %arg12[%c0_41, %c0_42] : memref<2x64xf32, #tpu.memory_space<vmem>>, vector<2x64xf32>
    %c1 = arith.constant 1 : index
    %c0_43 = arith.constant 0 : index
    %c0_44 = arith.constant 0 : index
    %113 = vector.load %arg2[%c1, %c0_43, %c0_44] : memref<8x2x128xbf16, #tpu.memory_space<vmem>>, vector<1x2x128xbf16>
    %114 = vector.shape_cast %113 : vector<1x2x128xbf16> to vector<2x128xbf16>
    %115 = arith.extf %114 : vector<2x128xbf16> to vector<2x128xf32>
    %c6 = arith.constant 6 : index
    %c0_45 = arith.constant 0 : index
    %c0_46 = arith.constant 0 : index
    %116 = vector.load %arg3[%c6, %c0_45, %c0_46] : memref<8x2x128xbf16, #tpu.memory_space<vmem>>, vector<1x2x128xbf16>
    %117 = vector.shape_cast %116 : vector<1x2x128xbf16> to vector<2x128xbf16>
    %118 = arith.extf %117 : vector<2x128xbf16> to vector<2x128xf32>
    %119 = tpu.concatenate %115, %118 in 1 : vector<2x128xf32>, vector<2x128xf32> -> vector<2x256xf32>
    %120 = arith.truncf %111 : vector<2x64xf32> to vector<2x64xbf16>
    %cst_47 = arith.constant dense<0.000000e+00> : vector<2x256xf32>
    %121 = tpu.matmul %120, %4, %cst_47 {dimension_numbers = #tpu.dot_dimension_numbers<[1], [0], [0], [1], [0, 0, 1, 1], [], []>} : vector<2x64xbf16>, vector<64x256xbf16>, vector<2x256xf32> -> vector<2x256xf32>
    %122 = arith.addf %119, %121 : vector<2x256xf32>
    %123 = arith.mulf %122, %31 : vector<2x256xf32>
    %124 = arith.negf %123 : vector<2x256xf32>
    %125 = math.exp %124 : vector<2x256xf32>
    %cst_48 = arith.constant 1.000000e+00 : f32
    %126 = vector.broadcast %cst_48 : f32 to vector<2x256xf32>
    %127 = arith.addf %126, %125 : vector<2x256xf32>
    %128 = arith.divf %126, %127 : vector<2x256xf32>
    %129 = arith.mulf %128, %31 : vector<2x256xf32>
    %130 = arith.addf %129, %33 : vector<2x256xf32>
    %131 = vector.extract_strided_slice %130 {offsets = [0, 0], sizes = [2, 32], strides = [1, 1]} : vector<2x256xf32> to vector<2x32xf32>
    %132 = vector.extract_strided_slice %130 {offsets = [0, 32], sizes = [2, 32], strides = [1, 1]} : vector<2x256xf32> to vector<2x32xf32>
    %133 = vector.extract_strided_slice %130 {offsets = [0, 64], sizes = [2, 32], strides = [1, 1]} : vector<2x256xf32> to vector<2x32xf32>
    %134 = vector.extract_strided_slice %130 {offsets = [0, 96], sizes = [2, 32], strides = [1, 1]} : vector<2x256xf32> to vector<2x32xf32>
    %135 = vector.extract_strided_slice %112 {offsets = [0, 0], sizes = [2, 32], strides = [1, 1]} : vector<2x64xf32> to vector<2x32xf32>
    %136 = arith.mulf %132, %135 : vector<2x32xf32>
    %137 = arith.mulf %131, %133 : vector<2x32xf32>
    %138 = arith.addf %136, %137 : vector<2x32xf32>
    %139 = math.tanh %138 : vector<2x32xf32>
    %140 = arith.mulf %134, %139 : vector<2x32xf32>
    %c1_i32_49 = arith.constant 1 : i32
    %141 = arith.addi %34, %c1_i32_49 : i32
    %142 = vector.broadcast %141 : i32 to vector<2x1xi32>
    %143 = arith.cmpi sgt, %3, %142 : vector<2x1xi32>
    %144 = vector.shape_cast %143 : vector<2x1xi1> to vector<2x1xi1>
    %145 = vector.broadcast %144 : vector<2x1xi1> to vector<2x32xi1>
    %146 = vector.extract_strided_slice %111 {offsets = [0, 0], sizes = [2, 32], strides = [1, 1]} : vector<2x64xf32> to vector<2x32xf32>
    %147 = arith.select %145, %140, %146 : vector<2x32xi1>, vector<2x32xf32>
    %c0_50 = arith.constant 0 : index
    %c0_51 = arith.constant 0 : index
    %148 = vector.load %arg11[%c0_50, %c0_51] : memref<2x64xf32, #tpu.memory_space<vmem>>, vector<2x32xf32>
    tpu.vector_store %arg11[%c0_50, %c0_51], %147 {strides = array<i32>} : memref<2x64xf32, #tpu.memory_space<vmem>>, vector<2x32xf32>,
    %149 = vector.extract_strided_slice %112 {offsets = [0, 0], sizes = [2, 32], strides = [1, 1]} : vector<2x64xf32> to vector<2x32xf32>
    %150 = arith.select %145, %138, %149 : vector<2x32xi1>, vector<2x32xf32>
    %c0_52 = arith.constant 0 : index
    %c0_53 = arith.constant 0 : index
    %151 = vector.load %arg12[%c0_52, %c0_53] : memref<2x64xf32, #tpu.memory_space<vmem>>, vector<2x32xf32>
    tpu.vector_store %arg12[%c0_52, %c0_53], %150 {strides = array<i32>} : memref<2x64xf32, #tpu.memory_space<vmem>>, vector<2x32xf32>,
    %cst_54 = arith.constant 0.000000e+00 : f32
    %152 = vector.broadcast %cst_54 : f32 to vector<2x32xf32>
    %153 = arith.select %145, %140, %152 : vector<2x32xi1>, vector<2x32xf32>
    %154 = arith.truncf %153 : vector<2x32xf32> to vector<2x32xbf16>
    %c1_55 = arith.constant 1 : index
    %c0_56 = arith.constant 0 : index
    %c0_57 = arith.constant 0 : index
    %155 = vector.load %arg5[%c1_55, %c0_56, %c0_57] : memref<8x2x32xbf16, #tpu.memory_space<vmem>>, vector<1x2x32xbf16>
    %156 = vector.shape_cast %155 : vector<1x2x32xbf16> to vector<2x32xbf16>
    %157 = vector.shape_cast %154 : vector<2x32xbf16> to vector<1x2x32xbf16>
    tpu.vector_store %arg5[%c1_55, %c0_56, %c0_57], %157 {strides = array<i32>} : memref<8x2x32xbf16, #tpu.memory_space<vmem>>, vector<1x2x32xbf16>,
    %158 = vector.extract_strided_slice %130 {offsets = [0, 128], sizes = [2, 32], strides = [1, 1]} : vector<2x256xf32> to vector<2x32xf32>
    %159 = vector.extract_strided_slice %130 {offsets = [0, 160], sizes = [2, 32], strides = [1, 1]} : vector<2x256xf32> to vector<2x32xf32>
    %160 = vector.extract_strided_slice %130 {offsets = [0, 192], sizes = [2, 32], strides = [1, 1]} : vector<2x256xf32> to vector<2x32xf32>
    %161 = vector.extract_strided_slice %130 {offsets = [0, 224], sizes = [2, 32], strides = [1, 1]} : vector<2x256xf32> to vector<2x32xf32>
    %162 = vector.extract_strided_slice %112 {offsets = [0, 32], sizes = [2, 32], strides = [1, 1]} : vector<2x64xf32> to vector<2x32xf32>
    %163 = arith.mulf %159, %162 : vector<2x32xf32>
    %164 = arith.mulf %158, %160 : vector<2x32xf32>
    %165 = arith.addf %163, %164 : vector<2x32xf32>
    %166 = math.tanh %165 : vector<2x32xf32>
    %167 = arith.mulf %161, %166 : vector<2x32xf32>
    %c6_i32 = arith.constant 6 : i32
    %168 = arith.addi %36, %c6_i32 : i32
    %169 = vector.broadcast %168 : i32 to vector<2x1xi32>
    %170 = arith.cmpi sgt, %3, %169 : vector<2x1xi32>
    %171 = vector.shape_cast %170 : vector<2x1xi1> to vector<2x1xi1>
    %172 = vector.broadcast %171 : vector<2x1xi1> to vector<2x32xi1>
    %173 = vector.extract_strided_slice %111 {offsets = [0, 32], sizes = [2, 32], strides = [1, 1]} : vector<2x64xf32> to vector<2x32xf32>
    %174 = arith.select %172, %167, %173 : vector<2x32xi1>, vector<2x32xf32>
    %c0_58 = arith.constant 0 : index
    %c32_59 = arith.constant 32 : index
    %175 = vector.load %arg11[%c0_58, %c32_59] : memref<2x64xf32, #tpu.memory_space<vmem>>, vector<2x32xf32>
    tpu.vector_store %arg11[%c0_58, %c32_59], %174 {strides = array<i32>} : memref<2x64xf32, #tpu.memory_space<vmem>>, vector<2x32xf32>,
    %176 = vector.extract_strided_slice %112 {offsets = [0, 32], sizes = [2, 32], strides = [1, 1]} : vector<2x64xf32> to vector<2x32xf32>
    %177 = arith.select %172, %165, %176 : vector<2x32xi1>, vector<2x32xf32>
    %c0_60 = arith.constant 0 : index
    %c32_61 = arith.constant 32 : index
    %178 = vector.load %arg12[%c0_60, %c32_61] : memref<2x64xf32, #tpu.memory_space<vmem>>, vector<2x32xf32>
    tpu.vector_store %arg12[%c0_60, %c32_61], %177 {strides = array<i32>} : memref<2x64xf32, #tpu.memory_space<vmem>>, vector<2x32xf32>,
    %cst_62 = arith.constant 0.000000e+00 : f32
    %179 = vector.broadcast %cst_62 : f32 to vector<2x32xf32>
    %180 = arith.select %172, %167, %179 : vector<2x32xi1>, vector<2x32xf32>
    %181 = arith.truncf %180 : vector<2x32xf32> to vector<2x32xbf16>
    %c6_63 = arith.constant 6 : index
    %c0_64 = arith.constant 0 : index
    %c0_65 = arith.constant 0 : index
    %182 = vector.load %arg6[%c6_63, %c0_64, %c0_65] : memref<8x2x32xbf16, #tpu.memory_space<vmem>>, vector<1x2x32xbf16>
    %183 = vector.shape_cast %182 : vector<1x2x32xbf16> to vector<2x32xbf16>
    %184 = vector.shape_cast %181 : vector<2x32xbf16> to vector<1x2x32xbf16>
    tpu.vector_store %arg6[%c6_63, %c0_64, %c0_65], %184 {strides = array<i32>} : memref<8x2x32xbf16, #tpu.memory_space<vmem>>, vector<1x2x32xbf16>,
    %c0_66 = arith.constant 0 : index
    %c0_67 = arith.constant 0 : index
    %185 = vector.load %arg11[%c0_66, %c0_67] : memref<2x64xf32, #tpu.memory_space<vmem>>, vector<2x64xf32>
    %c0_68 = arith.constant 0 : index
    %c0_69 = arith.constant 0 : index
    %186 = vector.load %arg12[%c0_68, %c0_69] : memref<2x64xf32, #tpu.memory_space<vmem>>, vector<2x64xf32>
    %c2 = arith.constant 2 : index
    %c0_70 = arith.constant 0 : index
    %c0_71 = arith.constant 0 : index
    %187 = vector.load %arg2[%c2, %c0_70, %c0_71] : memref<8x2x128xbf16, #tpu.memory_space<vmem>>, vector<1x2x128xbf16>
    %188 = vector.shape_cast %187 : vector<1x2x128xbf16> to vector<2x128xbf16>
    %189 = arith.extf %188 : vector<2x128xbf16> to vector<2x128xf32>
    %c5 = arith.constant 5 : index
    %c0_72 = arith.constant 0 : index
    %c0_73 = arith.constant 0 : index
    %190 = vector.load %arg3[%c5, %c0_72, %c0_73] : memref<8x2x128xbf16, #tpu.memory_space<vmem>>, vector<1x2x128xbf16>
    %191 = vector.shape_cast %190 : vector<1x2x128xbf16> to vector<2x128xbf16>
    %192 = arith.extf %191 : vector<2x128xbf16> to vector<2x128xf32>
    %193 = tpu.concatenate %189, %192 in 1 : vector<2x128xf32>, vector<2x128xf32> -> vector<2x256xf32>
    %194 = arith.truncf %185 : vector<2x64xf32> to vector<2x64xbf16>
    %cst_74 = arith.constant dense<0.000000e+00> : vector<2x256xf32>
    %195 = tpu.matmul %194, %4, %cst_74 {dimension_numbers = #tpu.dot_dimension_numbers<[1], [0], [0], [1], [0, 0, 1, 1], [], []>} : vector<2x64xbf16>, vector<64x256xbf16>, vector<2x256xf32> -> vector<2x256xf32>
    %196 = arith.addf %193, %195 : vector<2x256xf32>
    %197 = arith.mulf %196, %31 : vector<2x256xf32>
    %198 = arith.negf %197 : vector<2x256xf32>
    %199 = math.exp %198 : vector<2x256xf32>
    %cst_75 = arith.constant 1.000000e+00 : f32
    %200 = vector.broadcast %cst_75 : f32 to vector<2x256xf32>
    %201 = arith.addf %200, %199 : vector<2x256xf32>
    %202 = arith.divf %200, %201 : vector<2x256xf32>
    %203 = arith.mulf %202, %31 : vector<2x256xf32>
    %204 = arith.addf %203, %33 : vector<2x256xf32>
    %205 = vector.extract_strided_slice %204 {offsets = [0, 0], sizes = [2, 32], strides = [1, 1]} : vector<2x256xf32> to vector<2x32xf32>
    %206 = vector.extract_strided_slice %204 {offsets = [0, 32], sizes = [2, 32], strides = [1, 1]} : vector<2x256xf32> to vector<2x32xf32>
    %207 = vector.extract_strided_slice %204 {offsets = [0, 64], sizes = [2, 32], strides = [1, 1]} : vector<2x256xf32> to vector<2x32xf32>
    %208 = vector.extract_strided_slice %204 {offsets = [0, 96], sizes = [2, 32], strides = [1, 1]} : vector<2x256xf32> to vector<2x32xf32>
    %209 = vector.extract_strided_slice %186 {offsets = [0, 0], sizes = [2, 32], strides = [1, 1]} : vector<2x64xf32> to vector<2x32xf32>
    %210 = arith.mulf %206, %209 : vector<2x32xf32>
    %211 = arith.mulf %205, %207 : vector<2x32xf32>
    %212 = arith.addf %210, %211 : vector<2x32xf32>
    %213 = math.tanh %212 : vector<2x32xf32>
    %214 = arith.mulf %208, %213 : vector<2x32xf32>
    %c2_i32 = arith.constant 2 : i32
    %215 = arith.addi %34, %c2_i32 : i32
    %216 = vector.broadcast %215 : i32 to vector<2x1xi32>
    %217 = arith.cmpi sgt, %3, %216 : vector<2x1xi32>
    %218 = vector.shape_cast %217 : vector<2x1xi1> to vector<2x1xi1>
    %219 = vector.broadcast %218 : vector<2x1xi1> to vector<2x32xi1>
    %220 = vector.extract_strided_slice %185 {offsets = [0, 0], sizes = [2, 32], strides = [1, 1]} : vector<2x64xf32> to vector<2x32xf32>
    %221 = arith.select %219, %214, %220 : vector<2x32xi1>, vector<2x32xf32>
    %c0_76 = arith.constant 0 : index
    %c0_77 = arith.constant 0 : index
    %222 = vector.load %arg11[%c0_76, %c0_77] : memref<2x64xf32, #tpu.memory_space<vmem>>, vector<2x32xf32>
    tpu.vector_store %arg11[%c0_76, %c0_77], %221 {strides = array<i32>} : memref<2x64xf32, #tpu.memory_space<vmem>>, vector<2x32xf32>,
    %223 = vector.extract_strided_slice %186 {offsets = [0, 0], sizes = [2, 32], strides = [1, 1]} : vector<2x64xf32> to vector<2x32xf32>
    %224 = arith.select %219, %212, %223 : vector<2x32xi1>, vector<2x32xf32>
    %c0_78 = arith.constant 0 : index
    %c0_79 = arith.constant 0 : index
    %225 = vector.load %arg12[%c0_78, %c0_79] : memref<2x64xf32, #tpu.memory_space<vmem>>, vector<2x32xf32>
    tpu.vector_store %arg12[%c0_78, %c0_79], %224 {strides = array<i32>} : memref<2x64xf32, #tpu.memory_space<vmem>>, vector<2x32xf32>,
    %cst_80 = arith.constant 0.000000e+00 : f32
    %226 = vector.broadcast %cst_80 : f32 to vector<2x32xf32>
    %227 = arith.select %219, %214, %226 : vector<2x32xi1>, vector<2x32xf32>
    %228 = arith.truncf %227 : vector<2x32xf32> to vector<2x32xbf16>
    %c2_81 = arith.constant 2 : index
    %c0_82 = arith.constant 0 : index
    %c0_83 = arith.constant 0 : index
    %229 = vector.load %arg5[%c2_81, %c0_82, %c0_83] : memref<8x2x32xbf16, #tpu.memory_space<vmem>>, vector<1x2x32xbf16>
    %230 = vector.shape_cast %229 : vector<1x2x32xbf16> to vector<2x32xbf16>
    %231 = vector.shape_cast %228 : vector<2x32xbf16> to vector<1x2x32xbf16>
    tpu.vector_store %arg5[%c2_81, %c0_82, %c0_83], %231 {strides = array<i32>} : memref<8x2x32xbf16, #tpu.memory_space<vmem>>, vector<1x2x32xbf16>,
    %232 = vector.extract_strided_slice %204 {offsets = [0, 128], sizes = [2, 32], strides = [1, 1]} : vector<2x256xf32> to vector<2x32xf32>
    %233 = vector.extract_strided_slice %204 {offsets = [0, 160], sizes = [2, 32], strides = [1, 1]} : vector<2x256xf32> to vector<2x32xf32>
    %234 = vector.extract_strided_slice %204 {offsets = [0, 192], sizes = [2, 32], strides = [1, 1]} : vector<2x256xf32> to vector<2x32xf32>
    %235 = vector.extract_strided_slice %204 {offsets = [0, 224], sizes = [2, 32], strides = [1, 1]} : vector<2x256xf32> to vector<2x32xf32>
    %236 = vector.extract_strided_slice %186 {offsets = [0, 32], sizes = [2, 32], strides = [1, 1]} : vector<2x64xf32> to vector<2x32xf32>
    %237 = arith.mulf %233, %236 : vector<2x32xf32>
    %238 = arith.mulf %232, %234 : vector<2x32xf32>
    %239 = arith.addf %237, %238 : vector<2x32xf32>
    %240 = math.tanh %239 : vector<2x32xf32>
    %241 = arith.mulf %235, %240 : vector<2x32xf32>
    %c5_i32 = arith.constant 5 : i32
    %242 = arith.addi %36, %c5_i32 : i32
    %243 = vector.broadcast %242 : i32 to vector<2x1xi32>
    %244 = arith.cmpi sgt, %3, %243 : vector<2x1xi32>
    %245 = vector.shape_cast %244 : vector<2x1xi1> to vector<2x1xi1>
    %246 = vector.broadcast %245 : vector<2x1xi1> to vector<2x32xi1>
    %247 = vector.extract_strided_slice %185 {offsets = [0, 32], sizes = [2, 32], strides = [1, 1]} : vector<2x64xf32> to vector<2x32xf32>
    %248 = arith.select %246, %241, %247 : vector<2x32xi1>, vector<2x32xf32>
    %c0_84 = arith.constant 0 : index
    %c32_85 = arith.constant 32 : index
    %249 = vector.load %arg11[%c0_84, %c32_85] : memref<2x64xf32, #tpu.memory_space<vmem>>, vector<2x32xf32>
    tpu.vector_store %arg11[%c0_84, %c32_85], %248 {strides = array<i32>} : memref<2x64xf32, #tpu.memory_space<vmem>>, vector<2x32xf32>,
    %250 = vector.extract_strided_slice %186 {offsets = [0, 32], sizes = [2, 32], strides = [1, 1]} : vector<2x64xf32> to vector<2x32xf32>
    %251 = arith.select %246, %239, %250 : vector<2x32xi1>, vector<2x32xf32>
    %c0_86 = arith.constant 0 : index
    %c32_87 = arith.constant 32 : index
    %252 = vector.load %arg12[%c0_86, %c32_87] : memref<2x64xf32, #tpu.memory_space<vmem>>, vector<2x32xf32>
    tpu.vector_store %arg12[%c0_86, %c32_87], %251 {strides = array<i32>} : memref<2x64xf32, #tpu.memory_space<vmem>>, vector<2x32xf32>,
    %cst_88 = arith.constant 0.000000e+00 : f32
    %253 = vector.broadcast %cst_88 : f32 to vector<2x32xf32>
    %254 = arith.select %246, %241, %253 : vector<2x32xi1>, vector<2x32xf32>
    %255 = arith.truncf %254 : vector<2x32xf32> to vector<2x32xbf16>
    %c5_89 = arith.constant 5 : index
    %c0_90 = arith.constant 0 : index
    %c0_91 = arith.constant 0 : index
    %256 = vector.load %arg6[%c5_89, %c0_90, %c0_91] : memref<8x2x32xbf16, #tpu.memory_space<vmem>>, vector<1x2x32xbf16>
    %257 = vector.shape_cast %256 : vector<1x2x32xbf16> to vector<2x32xbf16>
    %258 = vector.shape_cast %255 : vector<2x32xbf16> to vector<1x2x32xbf16>
    tpu.vector_store %arg6[%c5_89, %c0_90, %c0_91], %258 {strides = array<i32>} : memref<8x2x32xbf16, #tpu.memory_space<vmem>>, vector<1x2x32xbf16>,
    %c0_92 = arith.constant 0 : index
    %c0_93 = arith.constant 0 : index
    %259 = vector.load %arg11[%c0_92, %c0_93] : memref<2x64xf32, #tpu.memory_space<vmem>>, vector<2x64xf32>
    %c0_94 = arith.constant 0 : index
    %c0_95 = arith.constant 0 : index
    %260 = vector.load %arg12[%c0_94, %c0_95] : memref<2x64xf32, #tpu.memory_space<vmem>>, vector<2x64xf32>
    %c3 = arith.constant 3 : index
    %c0_96 = arith.constant 0 : index
    %c0_97 = arith.constant 0 : index
    %261 = vector.load %arg2[%c3, %c0_96, %c0_97] : memref<8x2x128xbf16, #tpu.memory_space<vmem>>, vector<1x2x128xbf16>
    %262 = vector.shape_cast %261 : vector<1x2x128xbf16> to vector<2x128xbf16>
    %263 = arith.extf %262 : vector<2x128xbf16> to vector<2x128xf32>
    %c4 = arith.constant 4 : index
    %c0_98 = arith.constant 0 : index
    %c0_99 = arith.constant 0 : index
    %264 = vector.load %arg3[%c4, %c0_98, %c0_99] : memref<8x2x128xbf16, #tpu.memory_space<vmem>>, vector<1x2x128xbf16>
    %265 = vector.shape_cast %264 : vector<1x2x128xbf16> to vector<2x128xbf16>
    %266 = arith.extf %265 : vector<2x128xbf16> to vector<2x128xf32>
    %267 = tpu.concatenate %263, %266 in 1 : vector<2x128xf32>, vector<2x128xf32> -> vector<2x256xf32>
    %268 = arith.truncf %259 : vector<2x64xf32> to vector<2x64xbf16>
    %cst_100 = arith.constant dense<0.000000e+00> : vector<2x256xf32>
    %269 = tpu.matmul %268, %4, %cst_100 {dimension_numbers = #tpu.dot_dimension_numbers<[1], [0], [0], [1], [0, 0, 1, 1], [], []>} : vector<2x64xbf16>, vector<64x256xbf16>, vector<2x256xf32> -> vector<2x256xf32>
    %270 = arith.addf %267, %269 : vector<2x256xf32>
    %271 = arith.mulf %270, %31 : vector<2x256xf32>
    %272 = arith.negf %271 : vector<2x256xf32>
    %273 = math.exp %272 : vector<2x256xf32>
    %cst_101 = arith.constant 1.000000e+00 : f32
    %274 = vector.broadcast %cst_101 : f32 to vector<2x256xf32>
    %275 = arith.addf %274, %273 : vector<2x256xf32>
    %276 = arith.divf %274, %275 : vector<2x256xf32>
    %277 = arith.mulf %276, %31 : vector<2x256xf32>
    %278 = arith.addf %277, %33 : vector<2x256xf32>
    %279 = vector.extract_strided_slice %278 {offsets = [0, 0], sizes = [2, 32], strides = [1, 1]} : vector<2x256xf32> to vector<2x32xf32>
    %280 = vector.extract_strided_slice %278 {offsets = [0, 32], sizes = [2, 32], strides = [1, 1]} : vector<2x256xf32> to vector<2x32xf32>
    %281 = vector.extract_strided_slice %278 {offsets = [0, 64], sizes = [2, 32], strides = [1, 1]} : vector<2x256xf32> to vector<2x32xf32>
    %282 = vector.extract_strided_slice %278 {offsets = [0, 96], sizes = [2, 32], strides = [1, 1]} : vector<2x256xf32> to vector<2x32xf32>
    %283 = vector.extract_strided_slice %260 {offsets = [0, 0], sizes = [2, 32], strides = [1, 1]} : vector<2x64xf32> to vector<2x32xf32>
    %284 = arith.mulf %280, %283 : vector<2x32xf32>
    %285 = arith.mulf %279, %281 : vector<2x32xf32>
    %286 = arith.addf %284, %285 : vector<2x32xf32>
    %287 = math.tanh %286 : vector<2x32xf32>
    %288 = arith.mulf %282, %287 : vector<2x32xf32>
    %c3_i32 = arith.constant 3 : i32
    %289 = arith.addi %34, %c3_i32 : i32
    %290 = vector.broadcast %289 : i32 to vector<2x1xi32>
    %291 = arith.cmpi sgt, %3, %290 : vector<2x1xi32>
    %292 = vector.shape_cast %291 : vector<2x1xi1> to vector<2x1xi1>
    %293 = vector.broadcast %292 : vector<2x1xi1> to vector<2x32xi1>
    %294 = vector.extract_strided_slice %259 {offsets = [0, 0], sizes = [2, 32], strides = [1, 1]} : vector<2x64xf32> to vector<2x32xf32>
    %295 = arith.select %293, %288, %294 : vector<2x32xi1>, vector<2x32xf32>
    %c0_102 = arith.constant 0 : index
    %c0_103 = arith.constant 0 : index
    %296 = vector.load %arg11[%c0_102, %c0_103] : memref<2x64xf32, #tpu.memory_space<vmem>>, vector<2x32xf32>
    tpu.vector_store %arg11[%c0_102, %c0_103], %295 {strides = array<i32>} : memref<2x64xf32, #tpu.memory_space<vmem>>, vector<2x32xf32>,
    %297 = vector.extract_strided_slice %260 {offsets = [0, 0], sizes = [2, 32], strides = [1, 1]} : vector<2x64xf32> to vector<2x32xf32>
    %298 = arith.select %293, %286, %297 : vector<2x32xi1>, vector<2x32xf32>
    %c0_104 = arith.constant 0 : index
    %c0_105 = arith.constant 0 : index
    %299 = vector.load %arg12[%c0_104, %c0_105] : memref<2x64xf32, #tpu.memory_space<vmem>>, vector<2x32xf32>
    tpu.vector_store %arg12[%c0_104, %c0_105], %298 {strides = array<i32>} : memref<2x64xf32, #tpu.memory_space<vmem>>, vector<2x32xf32>,
    %cst_106 = arith.constant 0.000000e+00 : f32
    %300 = vector.broadcast %cst_106 : f32 to vector<2x32xf32>
    %301 = arith.select %293, %288, %300 : vector<2x32xi1>, vector<2x32xf32>
    %302 = arith.truncf %301 : vector<2x32xf32> to vector<2x32xbf16>
    %c3_107 = arith.constant 3 : index
    %c0_108 = arith.constant 0 : index
    %c0_109 = arith.constant 0 : index
    %303 = vector.load %arg5[%c3_107, %c0_108, %c0_109] : memref<8x2x32xbf16, #tpu.memory_space<vmem>>, vector<1x2x32xbf16>
    %304 = vector.shape_cast %303 : vector<1x2x32xbf16> to vector<2x32xbf16>
    %305 = vector.shape_cast %302 : vector<2x32xbf16> to vector<1x2x32xbf16>
    tpu.vector_store %arg5[%c3_107, %c0_108, %c0_109], %305 {strides = array<i32>} : memref<8x2x32xbf16, #tpu.memory_space<vmem>>, vector<1x2x32xbf16>,
    %306 = vector.extract_strided_slice %278 {offsets = [0, 128], sizes = [2, 32], strides = [1, 1]} : vector<2x256xf32> to vector<2x32xf32>
    %307 = vector.extract_strided_slice %278 {offsets = [0, 160], sizes = [2, 32], strides = [1, 1]} : vector<2x256xf32> to vector<2x32xf32>
    %308 = vector.extract_strided_slice %278 {offsets = [0, 192], sizes = [2, 32], strides = [1, 1]} : vector<2x256xf32> to vector<2x32xf32>
    %309 = vector.extract_strided_slice %278 {offsets = [0, 224], sizes = [2, 32], strides = [1, 1]} : vector<2x256xf32> to vector<2x32xf32>
    %310 = vector.extract_strided_slice %260 {offsets = [0, 32], sizes = [2, 32], strides = [1, 1]} : vector<2x64xf32> to vector<2x32xf32>
    %311 = arith.mulf %307, %310 : vector<2x32xf32>
    %312 = arith.mulf %306, %308 : vector<2x32xf32>
    %313 = arith.addf %311, %312 : vector<2x32xf32>
    %314 = math.tanh %313 : vector<2x32xf32>
    %315 = arith.mulf %309, %314 : vector<2x32xf32>
    %c4_i32 = arith.constant 4 : i32
    %316 = arith.addi %36, %c4_i32 : i32
    %317 = vector.broadcast %316 : i32 to vector<2x1xi32>
    %318 = arith.cmpi sgt, %3, %317 : vector<2x1xi32>
    %319 = vector.shape_cast %318 : vector<2x1xi1> to vector<2x1xi1>
    %320 = vector.broadcast %319 : vector<2x1xi1> to vector<2x32xi1>
    %321 = vector.extract_strided_slice %259 {offsets = [0, 32], sizes = [2, 32], strides = [1, 1]} : vector<2x64xf32> to vector<2x32xf32>
    %322 = arith.select %320, %315, %321 : vector<2x32xi1>, vector<2x32xf32>
    %c0_110 = arith.constant 0 : index
    %c32_111 = arith.constant 32 : index
    %323 = vector.load %arg11[%c0_110, %c32_111] : memref<2x64xf32, #tpu.memory_space<vmem>>, vector<2x32xf32>
    tpu.vector_store %arg11[%c0_110, %c32_111], %322 {strides = array<i32>} : memref<2x64xf32, #tpu.memory_space<vmem>>, vector<2x32xf32>,
    %324 = vector.extract_strided_slice %260 {offsets = [0, 32], sizes = [2, 32], strides = [1, 1]} : vector<2x64xf32> to vector<2x32xf32>
    %325 = arith.select %320, %313, %324 : vector<2x32xi1>, vector<2x32xf32>
    %c0_112 = arith.constant 0 : index
    %c32_113 = arith.constant 32 : index
    %326 = vector.load %arg12[%c0_112, %c32_113] : memref<2x64xf32, #tpu.memory_space<vmem>>, vector<2x32xf32>
    tpu.vector_store %arg12[%c0_112, %c32_113], %325 {strides = array<i32>} : memref<2x64xf32, #tpu.memory_space<vmem>>, vector<2x32xf32>,
    %cst_114 = arith.constant 0.000000e+00 : f32
    %327 = vector.broadcast %cst_114 : f32 to vector<2x32xf32>
    %328 = arith.select %320, %315, %327 : vector<2x32xi1>, vector<2x32xf32>
    %329 = arith.truncf %328 : vector<2x32xf32> to vector<2x32xbf16>
    %c4_115 = arith.constant 4 : index
    %c0_116 = arith.constant 0 : index
    %c0_117 = arith.constant 0 : index
    %330 = vector.load %arg6[%c4_115, %c0_116, %c0_117] : memref<8x2x32xbf16, #tpu.memory_space<vmem>>, vector<1x2x32xbf16>
    %331 = vector.shape_cast %330 : vector<1x2x32xbf16> to vector<2x32xbf16>
    %332 = vector.shape_cast %329 : vector<2x32xbf16> to vector<1x2x32xbf16>
    tpu.vector_store %arg6[%c4_115, %c0_116, %c0_117], %332 {strides = array<i32>} : memref<8x2x32xbf16, #tpu.memory_space<vmem>>, vector<1x2x32xbf16>,
    %c0_118 = arith.constant 0 : index
    %c0_119 = arith.constant 0 : index
    %333 = vector.load %arg11[%c0_118, %c0_119] : memref<2x64xf32, #tpu.memory_space<vmem>>, vector<2x64xf32>
    %c0_120 = arith.constant 0 : index
    %c0_121 = arith.constant 0 : index
    %334 = vector.load %arg12[%c0_120, %c0_121] : memref<2x64xf32, #tpu.memory_space<vmem>>, vector<2x64xf32>
    %c4_122 = arith.constant 4 : index
    %c0_123 = arith.constant 0 : index
    %c0_124 = arith.constant 0 : index
    %335 = vector.load %arg2[%c4_122, %c0_123, %c0_124] : memref<8x2x128xbf16, #tpu.memory_space<vmem>>, vector<1x2x128xbf16>
    %336 = vector.shape_cast %335 : vector<1x2x128xbf16> to vector<2x128xbf16>
    %337 = arith.extf %336 : vector<2x128xbf16> to vector<2x128xf32>
    %c3_125 = arith.constant 3 : index
    %c0_126 = arith.constant 0 : index
    %c0_127 = arith.constant 0 : index
    %338 = vector.load %arg3[%c3_125, %c0_126, %c0_127] : memref<8x2x128xbf16, #tpu.memory_space<vmem>>, vector<1x2x128xbf16>
    %339 = vector.shape_cast %338 : vector<1x2x128xbf16> to vector<2x128xbf16>
    %340 = arith.extf %339 : vector<2x128xbf16> to vector<2x128xf32>
    %341 = tpu.concatenate %337, %340 in 1 : vector<2x128xf32>, vector<2x128xf32> -> vector<2x256xf32>
    %342 = arith.truncf %333 : vector<2x64xf32> to vector<2x64xbf16>
    %cst_128 = arith.constant dense<0.000000e+00> : vector<2x256xf32>
    %343 = tpu.matmul %342, %4, %cst_128 {dimension_numbers = #tpu.dot_dimension_numbers<[1], [0], [0], [1], [0, 0, 1, 1], [], []>} : vector<2x64xbf16>, vector<64x256xbf16>, vector<2x256xf32> -> vector<2x256xf32>
    %344 = arith.addf %341, %343 : vector<2x256xf32>
    %345 = arith.mulf %344, %31 : vector<2x256xf32>
    %346 = arith.negf %345 : vector<2x256xf32>
    %347 = math.exp %346 : vector<2x256xf32>
    %cst_129 = arith.constant 1.000000e+00 : f32
    %348 = vector.broadcast %cst_129 : f32 to vector<2x256xf32>
    %349 = arith.addf %348, %347 : vector<2x256xf32>
    %350 = arith.divf %348, %349 : vector<2x256xf32>
    %351 = arith.mulf %350, %31 : vector<2x256xf32>
    %352 = arith.addf %351, %33 : vector<2x256xf32>
    %353 = vector.extract_strided_slice %352 {offsets = [0, 0], sizes = [2, 32], strides = [1, 1]} : vector<2x256xf32> to vector<2x32xf32>
    %354 = vector.extract_strided_slice %352 {offsets = [0, 32], sizes = [2, 32], strides = [1, 1]} : vector<2x256xf32> to vector<2x32xf32>
    %355 = vector.extract_strided_slice %352 {offsets = [0, 64], sizes = [2, 32], strides = [1, 1]} : vector<2x256xf32> to vector<2x32xf32>
    %356 = vector.extract_strided_slice %352 {offsets = [0, 96], sizes = [2, 32], strides = [1, 1]} : vector<2x256xf32> to vector<2x32xf32>
    %357 = vector.extract_strided_slice %334 {offsets = [0, 0], sizes = [2, 32], strides = [1, 1]} : vector<2x64xf32> to vector<2x32xf32>
    %358 = arith.mulf %354, %357 : vector<2x32xf32>
    %359 = arith.mulf %353, %355 : vector<2x32xf32>
    %360 = arith.addf %358, %359 : vector<2x32xf32>
    %361 = math.tanh %360 : vector<2x32xf32>
    %362 = arith.mulf %356, %361 : vector<2x32xf32>
    %c4_i32_130 = arith.constant 4 : i32
    %363 = arith.addi %34, %c4_i32_130 : i32
    %364 = vector.broadcast %363 : i32 to vector<2x1xi32>
    %365 = arith.cmpi sgt, %3, %364 : vector<2x1xi32>
    %366 = vector.shape_cast %365 : vector<2x1xi1> to vector<2x1xi1>
    %367 = vector.broadcast %366 : vector<2x1xi1> to vector<2x32xi1>
    %368 = vector.extract_strided_slice %333 {offsets = [0, 0], sizes = [2, 32], strides = [1, 1]} : vector<2x64xf32> to vector<2x32xf32>
    %369 = arith.select %367, %362, %368 : vector<2x32xi1>, vector<2x32xf32>
    %c0_131 = arith.constant 0 : index
    %c0_132 = arith.constant 0 : index
    %370 = vector.load %arg11[%c0_131, %c0_132] : memref<2x64xf32, #tpu.memory_space<vmem>>, vector<2x32xf32>
    tpu.vector_store %arg11[%c0_131, %c0_132], %369 {strides = array<i32>} : memref<2x64xf32, #tpu.memory_space<vmem>>, vector<2x32xf32>,
    %371 = vector.extract_strided_slice %334 {offsets = [0, 0], sizes = [2, 32], strides = [1, 1]} : vector<2x64xf32> to vector<2x32xf32>
    %372 = arith.select %367, %360, %371 : vector<2x32xi1>, vector<2x32xf32>
    %c0_133 = arith.constant 0 : index
    %c0_134 = arith.constant 0 : index
    %373 = vector.load %arg12[%c0_133, %c0_134] : memref<2x64xf32, #tpu.memory_space<vmem>>, vector<2x32xf32>
    tpu.vector_store %arg12[%c0_133, %c0_134], %372 {strides = array<i32>} : memref<2x64xf32, #tpu.memory_space<vmem>>, vector<2x32xf32>,
    %cst_135 = arith.constant 0.000000e+00 : f32
    %374 = vector.broadcast %cst_135 : f32 to vector<2x32xf32>
    %375 = arith.select %367, %362, %374 : vector<2x32xi1>, vector<2x32xf32>
    %376 = arith.truncf %375 : vector<2x32xf32> to vector<2x32xbf16>
    %c4_136 = arith.constant 4 : index
    %c0_137 = arith.constant 0 : index
    %c0_138 = arith.constant 0 : index
    %377 = vector.load %arg5[%c4_136, %c0_137, %c0_138] : memref<8x2x32xbf16, #tpu.memory_space<vmem>>, vector<1x2x32xbf16>
    %378 = vector.shape_cast %377 : vector<1x2x32xbf16> to vector<2x32xbf16>
    %379 = vector.shape_cast %376 : vector<2x32xbf16> to vector<1x2x32xbf16>
    tpu.vector_store %arg5[%c4_136, %c0_137, %c0_138], %379 {strides = array<i32>} : memref<8x2x32xbf16, #tpu.memory_space<vmem>>, vector<1x2x32xbf16>,
    %380 = vector.extract_strided_slice %352 {offsets = [0, 128], sizes = [2, 32], strides = [1, 1]} : vector<2x256xf32> to vector<2x32xf32>
    %381 = vector.extract_strided_slice %352 {offsets = [0, 160], sizes = [2, 32], strides = [1, 1]} : vector<2x256xf32> to vector<2x32xf32>
    %382 = vector.extract_strided_slice %352 {offsets = [0, 192], sizes = [2, 32], strides = [1, 1]} : vector<2x256xf32> to vector<2x32xf32>
    %383 = vector.extract_strided_slice %352 {offsets = [0, 224], sizes = [2, 32], strides = [1, 1]} : vector<2x256xf32> to vector<2x32xf32>
    %384 = vector.extract_strided_slice %334 {offsets = [0, 32], sizes = [2, 32], strides = [1, 1]} : vector<2x64xf32> to vector<2x32xf32>
    %385 = arith.mulf %381, %384 : vector<2x32xf32>
    %386 = arith.mulf %380, %382 : vector<2x32xf32>
    %387 = arith.addf %385, %386 : vector<2x32xf32>
    %388 = math.tanh %387 : vector<2x32xf32>
    %389 = arith.mulf %383, %388 : vector<2x32xf32>
    %c3_i32_139 = arith.constant 3 : i32
    %390 = arith.addi %36, %c3_i32_139 : i32
    %391 = vector.broadcast %390 : i32 to vector<2x1xi32>
    %392 = arith.cmpi sgt, %3, %391 : vector<2x1xi32>
    %393 = vector.shape_cast %392 : vector<2x1xi1> to vector<2x1xi1>
    %394 = vector.broadcast %393 : vector<2x1xi1> to vector<2x32xi1>
    %395 = vector.extract_strided_slice %333 {offsets = [0, 32], sizes = [2, 32], strides = [1, 1]} : vector<2x64xf32> to vector<2x32xf32>
    %396 = arith.select %394, %389, %395 : vector<2x32xi1>, vector<2x32xf32>
    %c0_140 = arith.constant 0 : index
    %c32_141 = arith.constant 32 : index
    %397 = vector.load %arg11[%c0_140, %c32_141] : memref<2x64xf32, #tpu.memory_space<vmem>>, vector<2x32xf32>
    tpu.vector_store %arg11[%c0_140, %c32_141], %396 {strides = array<i32>} : memref<2x64xf32, #tpu.memory_space<vmem>>, vector<2x32xf32>,
    %398 = vector.extract_strided_slice %334 {offsets = [0, 32], sizes = [2, 32], strides = [1, 1]} : vector<2x64xf32> to vector<2x32xf32>
    %399 = arith.select %394, %387, %398 : vector<2x32xi1>, vector<2x32xf32>
    %c0_142 = arith.constant 0 : index
    %c32_143 = arith.constant 32 : index
    %400 = vector.load %arg12[%c0_142, %c32_143] : memref<2x64xf32, #tpu.memory_space<vmem>>, vector<2x32xf32>
    tpu.vector_store %arg12[%c0_142, %c32_143], %399 {strides = array<i32>} : memref<2x64xf32, #tpu.memory_space<vmem>>, vector<2x32xf32>,
    %cst_144 = arith.constant 0.000000e+00 : f32
    %401 = vector.broadcast %cst_144 : f32 to vector<2x32xf32>
    %402 = arith.select %394, %389, %401 : vector<2x32xi1>, vector<2x32xf32>
    %403 = arith.truncf %402 : vector<2x32xf32> to vector<2x32xbf16>
    %c3_145 = arith.constant 3 : index
    %c0_146 = arith.constant 0 : index
    %c0_147 = arith.constant 0 : index
    %404 = vector.load %arg6[%c3_145, %c0_146, %c0_147] : memref<8x2x32xbf16, #tpu.memory_space<vmem>>, vector<1x2x32xbf16>
    %405 = vector.shape_cast %404 : vector<1x2x32xbf16> to vector<2x32xbf16>
    %406 = vector.shape_cast %403 : vector<2x32xbf16> to vector<1x2x32xbf16>
    tpu.vector_store %arg6[%c3_145, %c0_146, %c0_147], %406 {strides = array<i32>} : memref<8x2x32xbf16, #tpu.memory_space<vmem>>, vector<1x2x32xbf16>,
    %c0_148 = arith.constant 0 : index
    %c0_149 = arith.constant 0 : index
    %407 = vector.load %arg11[%c0_148, %c0_149] : memref<2x64xf32, #tpu.memory_space<vmem>>, vector<2x64xf32>
    %c0_150 = arith.constant 0 : index
    %c0_151 = arith.constant 0 : index
    %408 = vector.load %arg12[%c0_150, %c0_151] : memref<2x64xf32, #tpu.memory_space<vmem>>, vector<2x64xf32>
    %c5_152 = arith.constant 5 : index
    %c0_153 = arith.constant 0 : index
    %c0_154 = arith.constant 0 : index
    %409 = vector.load %arg2[%c5_152, %c0_153, %c0_154] : memref<8x2x128xbf16, #tpu.memory_space<vmem>>, vector<1x2x128xbf16>
    %410 = vector.shape_cast %409 : vector<1x2x128xbf16> to vector<2x128xbf16>
    %411 = arith.extf %410 : vector<2x128xbf16> to vector<2x128xf32>
    %c2_155 = arith.constant 2 : index
    %c0_156 = arith.constant 0 : index
    %c0_157 = arith.constant 0 : index
    %412 = vector.load %arg3[%c2_155, %c0_156, %c0_157] : memref<8x2x128xbf16, #tpu.memory_space<vmem>>, vector<1x2x128xbf16>
    %413 = vector.shape_cast %412 : vector<1x2x128xbf16> to vector<2x128xbf16>
    %414 = arith.extf %413 : vector<2x128xbf16> to vector<2x128xf32>
    %415 = tpu.concatenate %411, %414 in 1 : vector<2x128xf32>, vector<2x128xf32> -> vector<2x256xf32>
    %416 = arith.truncf %407 : vector<2x64xf32> to vector<2x64xbf16>
    %cst_158 = arith.constant dense<0.000000e+00> : vector<2x256xf32>
    %417 = tpu.matmul %416, %4, %cst_158 {dimension_numbers = #tpu.dot_dimension_numbers<[1], [0], [0], [1], [0, 0, 1, 1], [], []>} : vector<2x64xbf16>, vector<64x256xbf16>, vector<2x256xf32> -> vector<2x256xf32>
    %418 = arith.addf %415, %417 : vector<2x256xf32>
    %419 = arith.mulf %418, %31 : vector<2x256xf32>
    %420 = arith.negf %419 : vector<2x256xf32>
    %421 = math.exp %420 : vector<2x256xf32>
    %cst_159 = arith.constant 1.000000e+00 : f32
    %422 = vector.broadcast %cst_159 : f32 to vector<2x256xf32>
    %423 = arith.addf %422, %421 : vector<2x256xf32>
    %424 = arith.divf %422, %423 : vector<2x256xf32>
    %425 = arith.mulf %424, %31 : vector<2x256xf32>
    %426 = arith.addf %425, %33 : vector<2x256xf32>
    %427 = vector.extract_strided_slice %426 {offsets = [0, 0], sizes = [2, 32], strides = [1, 1]} : vector<2x256xf32> to vector<2x32xf32>
    %428 = vector.extract_strided_slice %426 {offsets = [0, 32], sizes = [2, 32], strides = [1, 1]} : vector<2x256xf32> to vector<2x32xf32>
    %429 = vector.extract_strided_slice %426 {offsets = [0, 64], sizes = [2, 32], strides = [1, 1]} : vector<2x256xf32> to vector<2x32xf32>
    %430 = vector.extract_strided_slice %426 {offsets = [0, 96], sizes = [2, 32], strides = [1, 1]} : vector<2x256xf32> to vector<2x32xf32>
    %431 = vector.extract_strided_slice %408 {offsets = [0, 0], sizes = [2, 32], strides = [1, 1]} : vector<2x64xf32> to vector<2x32xf32>
    %432 = arith.mulf %428, %431 : vector<2x32xf32>
    %433 = arith.mulf %427, %429 : vector<2x32xf32>
    %434 = arith.addf %432, %433 : vector<2x32xf32>
    %435 = math.tanh %434 : vector<2x32xf32>
    %436 = arith.mulf %430, %435 : vector<2x32xf32>
    %c5_i32_160 = arith.constant 5 : i32
    %437 = arith.addi %34, %c5_i32_160 : i32
    %438 = vector.broadcast %437 : i32 to vector<2x1xi32>
    %439 = arith.cmpi sgt, %3, %438 : vector<2x1xi32>
    %440 = vector.shape_cast %439 : vector<2x1xi1> to vector<2x1xi1>
    %441 = vector.broadcast %440 : vector<2x1xi1> to vector<2x32xi1>
    %442 = vector.extract_strided_slice %407 {offsets = [0, 0], sizes = [2, 32], strides = [1, 1]} : vector<2x64xf32> to vector<2x32xf32>
    %443 = arith.select %441, %436, %442 : vector<2x32xi1>, vector<2x32xf32>
    %c0_161 = arith.constant 0 : index
    %c0_162 = arith.constant 0 : index
    %444 = vector.load %arg11[%c0_161, %c0_162] : memref<2x64xf32, #tpu.memory_space<vmem>>, vector<2x32xf32>
    tpu.vector_store %arg11[%c0_161, %c0_162], %443 {strides = array<i32>} : memref<2x64xf32, #tpu.memory_space<vmem>>, vector<2x32xf32>,
    %445 = vector.extract_strided_slice %408 {offsets = [0, 0], sizes = [2, 32], strides = [1, 1]} : vector<2x64xf32> to vector<2x32xf32>
    %446 = arith.select %441, %434, %445 : vector<2x32xi1>, vector<2x32xf32>
    %c0_163 = arith.constant 0 : index
    %c0_164 = arith.constant 0 : index
    %447 = vector.load %arg12[%c0_163, %c0_164] : memref<2x64xf32, #tpu.memory_space<vmem>>, vector<2x32xf32>
    tpu.vector_store %arg12[%c0_163, %c0_164], %446 {strides = array<i32>} : memref<2x64xf32, #tpu.memory_space<vmem>>, vector<2x32xf32>,
    %cst_165 = arith.constant 0.000000e+00 : f32
    %448 = vector.broadcast %cst_165 : f32 to vector<2x32xf32>
    %449 = arith.select %441, %436, %448 : vector<2x32xi1>, vector<2x32xf32>
    %450 = arith.truncf %449 : vector<2x32xf32> to vector<2x32xbf16>
    %c5_166 = arith.constant 5 : index
    %c0_167 = arith.constant 0 : index
    %c0_168 = arith.constant 0 : index
    %451 = vector.load %arg5[%c5_166, %c0_167, %c0_168] : memref<8x2x32xbf16, #tpu.memory_space<vmem>>, vector<1x2x32xbf16>
    %452 = vector.shape_cast %451 : vector<1x2x32xbf16> to vector<2x32xbf16>
    %453 = vector.shape_cast %450 : vector<2x32xbf16> to vector<1x2x32xbf16>
    tpu.vector_store %arg5[%c5_166, %c0_167, %c0_168], %453 {strides = array<i32>} : memref<8x2x32xbf16, #tpu.memory_space<vmem>>, vector<1x2x32xbf16>,
    %454 = vector.extract_strided_slice %426 {offsets = [0, 128], sizes = [2, 32], strides = [1, 1]} : vector<2x256xf32> to vector<2x32xf32>
    %455 = vector.extract_strided_slice %426 {offsets = [0, 160], sizes = [2, 32], strides = [1, 1]} : vector<2x256xf32> to vector<2x32xf32>
    %456 = vector.extract_strided_slice %426 {offsets = [0, 192], sizes = [2, 32], strides = [1, 1]} : vector<2x256xf32> to vector<2x32xf32>
    %457 = vector.extract_strided_slice %426 {offsets = [0, 224], sizes = [2, 32], strides = [1, 1]} : vector<2x256xf32> to vector<2x32xf32>
    %458 = vector.extract_strided_slice %408 {offsets = [0, 32], sizes = [2, 32], strides = [1, 1]} : vector<2x64xf32> to vector<2x32xf32>
    %459 = arith.mulf %455, %458 : vector<2x32xf32>
    %460 = arith.mulf %454, %456 : vector<2x32xf32>
    %461 = arith.addf %459, %460 : vector<2x32xf32>
    %462 = math.tanh %461 : vector<2x32xf32>
    %463 = arith.mulf %457, %462 : vector<2x32xf32>
    %c2_i32_169 = arith.constant 2 : i32
    %464 = arith.addi %36, %c2_i32_169 : i32
    %465 = vector.broadcast %464 : i32 to vector<2x1xi32>
    %466 = arith.cmpi sgt, %3, %465 : vector<2x1xi32>
    %467 = vector.shape_cast %466 : vector<2x1xi1> to vector<2x1xi1>
    %468 = vector.broadcast %467 : vector<2x1xi1> to vector<2x32xi1>
    %469 = vector.extract_strided_slice %407 {offsets = [0, 32], sizes = [2, 32], strides = [1, 1]} : vector<2x64xf32> to vector<2x32xf32>
    %470 = arith.select %468, %463, %469 : vector<2x32xi1>, vector<2x32xf32>
    %c0_170 = arith.constant 0 : index
    %c32_171 = arith.constant 32 : index
    %471 = vector.load %arg11[%c0_170, %c32_171] : memref<2x64xf32, #tpu.memory_space<vmem>>, vector<2x32xf32>
    tpu.vector_store %arg11[%c0_170, %c32_171], %470 {strides = array<i32>} : memref<2x64xf32, #tpu.memory_space<vmem>>, vector<2x32xf32>,
    %472 = vector.extract_strided_slice %408 {offsets = [0, 32], sizes = [2, 32], strides = [1, 1]} : vector<2x64xf32> to vector<2x32xf32>
    %473 = arith.select %468, %461, %472 : vector<2x32xi1>, vector<2x32xf32>
    %c0_172 = arith.constant 0 : index
    %c32_173 = arith.constant 32 : index
    %474 = vector.load %arg12[%c0_172, %c32_173] : memref<2x64xf32, #tpu.memory_space<vmem>>, vector<2x32xf32>
    tpu.vector_store %arg12[%c0_172, %c32_173], %473 {strides = array<i32>} : memref<2x64xf32, #tpu.memory_space<vmem>>, vector<2x32xf32>,
    %cst_174 = arith.constant 0.000000e+00 : f32
    %475 = vector.broadcast %cst_174 : f32 to vector<2x32xf32>
    %476 = arith.select %468, %463, %475 : vector<2x32xi1>, vector<2x32xf32>
    %477 = arith.truncf %476 : vector<2x32xf32> to vector<2x32xbf16>
    %c2_175 = arith.constant 2 : index
    %c0_176 = arith.constant 0 : index
    %c0_177 = arith.constant 0 : index
    %478 = vector.load %arg6[%c2_175, %c0_176, %c0_177] : memref<8x2x32xbf16, #tpu.memory_space<vmem>>, vector<1x2x32xbf16>
    %479 = vector.shape_cast %478 : vector<1x2x32xbf16> to vector<2x32xbf16>
    %480 = vector.shape_cast %477 : vector<2x32xbf16> to vector<1x2x32xbf16>
    tpu.vector_store %arg6[%c2_175, %c0_176, %c0_177], %480 {strides = array<i32>} : memref<8x2x32xbf16, #tpu.memory_space<vmem>>, vector<1x2x32xbf16>,
    %c0_178 = arith.constant 0 : index
    %c0_179 = arith.constant 0 : index
    %481 = vector.load %arg11[%c0_178, %c0_179] : memref<2x64xf32, #tpu.memory_space<vmem>>, vector<2x64xf32>
    %c0_180 = arith.constant 0 : index
    %c0_181 = arith.constant 0 : index
    %482 = vector.load %arg12[%c0_180, %c0_181] : memref<2x64xf32, #tpu.memory_space<vmem>>, vector<2x64xf32>
    %c6_182 = arith.constant 6 : index
    %c0_183 = arith.constant 0 : index
    %c0_184 = arith.constant 0 : index
    %483 = vector.load %arg2[%c6_182, %c0_183, %c0_184] : memref<8x2x128xbf16, #tpu.memory_space<vmem>>, vector<1x2x128xbf16>
    %484 = vector.shape_cast %483 : vector<1x2x128xbf16> to vector<2x128xbf16>
    %485 = arith.extf %484 : vector<2x128xbf16> to vector<2x128xf32>
    %c1_185 = arith.constant 1 : index
    %c0_186 = arith.constant 0 : index
    %c0_187 = arith.constant 0 : index
    %486 = vector.load %arg3[%c1_185, %c0_186, %c0_187] : memref<8x2x128xbf16, #tpu.memory_space<vmem>>, vector<1x2x128xbf16>
    %487 = vector.shape_cast %486 : vector<1x2x128xbf16> to vector<2x128xbf16>
    %488 = arith.extf %487 : vector<2x128xbf16> to vector<2x128xf32>
    %489 = tpu.concatenate %485, %488 in 1 : vector<2x128xf32>, vector<2x128xf32> -> vector<2x256xf32>
    %490 = arith.truncf %481 : vector<2x64xf32> to vector<2x64xbf16>
    %cst_188 = arith.constant dense<0.000000e+00> : vector<2x256xf32>
    %491 = tpu.matmul %490, %4, %cst_188 {dimension_numbers = #tpu.dot_dimension_numbers<[1], [0], [0], [1], [0, 0, 1, 1], [], []>} : vector<2x64xbf16>, vector<64x256xbf16>, vector<2x256xf32> -> vector<2x256xf32>
    %492 = arith.addf %489, %491 : vector<2x256xf32>
    %493 = arith.mulf %492, %31 : vector<2x256xf32>
    %494 = arith.negf %493 : vector<2x256xf32>
    %495 = math.exp %494 : vector<2x256xf32>
    %cst_189 = arith.constant 1.000000e+00 : f32
    %496 = vector.broadcast %cst_189 : f32 to vector<2x256xf32>
    %497 = arith.addf %496, %495 : vector<2x256xf32>
    %498 = arith.divf %496, %497 : vector<2x256xf32>
    %499 = arith.mulf %498, %31 : vector<2x256xf32>
    %500 = arith.addf %499, %33 : vector<2x256xf32>
    %501 = vector.extract_strided_slice %500 {offsets = [0, 0], sizes = [2, 32], strides = [1, 1]} : vector<2x256xf32> to vector<2x32xf32>
    %502 = vector.extract_strided_slice %500 {offsets = [0, 32], sizes = [2, 32], strides = [1, 1]} : vector<2x256xf32> to vector<2x32xf32>
    %503 = vector.extract_strided_slice %500 {offsets = [0, 64], sizes = [2, 32], strides = [1, 1]} : vector<2x256xf32> to vector<2x32xf32>
    %504 = vector.extract_strided_slice %500 {offsets = [0, 96], sizes = [2, 32], strides = [1, 1]} : vector<2x256xf32> to vector<2x32xf32>
    %505 = vector.extract_strided_slice %482 {offsets = [0, 0], sizes = [2, 32], strides = [1, 1]} : vector<2x64xf32> to vector<2x32xf32>
    %506 = arith.mulf %502, %505 : vector<2x32xf32>
    %507 = arith.mulf %501, %503 : vector<2x32xf32>
    %508 = arith.addf %506, %507 : vector<2x32xf32>
    %509 = math.tanh %508 : vector<2x32xf32>
    %510 = arith.mulf %504, %509 : vector<2x32xf32>
    %c6_i32_190 = arith.constant 6 : i32
    %511 = arith.addi %34, %c6_i32_190 : i32
    %512 = vector.broadcast %511 : i32 to vector<2x1xi32>
    %513 = arith.cmpi sgt, %3, %512 : vector<2x1xi32>
    %514 = vector.shape_cast %513 : vector<2x1xi1> to vector<2x1xi1>
    %515 = vector.broadcast %514 : vector<2x1xi1> to vector<2x32xi1>
    %516 = vector.extract_strided_slice %481 {offsets = [0, 0], sizes = [2, 32], strides = [1, 1]} : vector<2x64xf32> to vector<2x32xf32>
    %517 = arith.select %515, %510, %516 : vector<2x32xi1>, vector<2x32xf32>
    %c0_191 = arith.constant 0 : index
    %c0_192 = arith.constant 0 : index
    %518 = vector.load %arg11[%c0_191, %c0_192] : memref<2x64xf32, #tpu.memory_space<vmem>>, vector<2x32xf32>
    tpu.vector_store %arg11[%c0_191, %c0_192], %517 {strides = array<i32>} : memref<2x64xf32, #tpu.memory_space<vmem>>, vector<2x32xf32>,
    %519 = vector.extract_strided_slice %482 {offsets = [0, 0], sizes = [2, 32], strides = [1, 1]} : vector<2x64xf32> to vector<2x32xf32>
    %520 = arith.select %515, %508, %519 : vector<2x32xi1>, vector<2x32xf32>
    %c0_193 = arith.constant 0 : index
    %c0_194 = arith.constant 0 : index
    %521 = vector.load %arg12[%c0_193, %c0_194] : memref<2x64xf32, #tpu.memory_space<vmem>>, vector<2x32xf32>
    tpu.vector_store %arg12[%c0_193, %c0_194], %520 {strides = array<i32>} : memref<2x64xf32, #tpu.memory_space<vmem>>, vector<2x32xf32>,
    %cst_195 = arith.constant 0.000000e+00 : f32
    %522 = vector.broadcast %cst_195 : f32 to vector<2x32xf32>
    %523 = arith.select %515, %510, %522 : vector<2x32xi1>, vector<2x32xf32>
    %524 = arith.truncf %523 : vector<2x32xf32> to vector<2x32xbf16>
    %c6_196 = arith.constant 6 : index
    %c0_197 = arith.constant 0 : index
    %c0_198 = arith.constant 0 : index
    %525 = vector.load %arg5[%c6_196, %c0_197, %c0_198] : memref<8x2x32xbf16, #tpu.memory_space<vmem>>, vector<1x2x32xbf16>
    %526 = vector.shape_cast %525 : vector<1x2x32xbf16> to vector<2x32xbf16>
    %527 = vector.shape_cast %524 : vector<2x32xbf16> to vector<1x2x32xbf16>
    tpu.vector_store %arg5[%c6_196, %c0_197, %c0_198], %527 {strides = array<i32>} : memref<8x2x32xbf16, #tpu.memory_space<vmem>>, vector<1x2x32xbf16>,
    %528 = vector.extract_strided_slice %500 {offsets = [0, 128], sizes = [2, 32], strides = [1, 1]} : vector<2x256xf32> to vector<2x32xf32>
    %529 = vector.extract_strided_slice %500 {offsets = [0, 160], sizes = [2, 32], strides = [1, 1]} : vector<2x256xf32> to vector<2x32xf32>
    %530 = vector.extract_strided_slice %500 {offsets = [0, 192], sizes = [2, 32], strides = [1, 1]} : vector<2x256xf32> to vector<2x32xf32>
    %531 = vector.extract_strided_slice %500 {offsets = [0, 224], sizes = [2, 32], strides = [1, 1]} : vector<2x256xf32> to vector<2x32xf32>
    %532 = vector.extract_strided_slice %482 {offsets = [0, 32], sizes = [2, 32], strides = [1, 1]} : vector<2x64xf32> to vector<2x32xf32>
    %533 = arith.mulf %529, %532 : vector<2x32xf32>
    %534 = arith.mulf %528, %530 : vector<2x32xf32>
    %535 = arith.addf %533, %534 : vector<2x32xf32>
    %536 = math.tanh %535 : vector<2x32xf32>
    %537 = arith.mulf %531, %536 : vector<2x32xf32>
    %c1_i32_199 = arith.constant 1 : i32
    %538 = arith.addi %36, %c1_i32_199 : i32
    %539 = vector.broadcast %538 : i32 to vector<2x1xi32>
    %540 = arith.cmpi sgt, %3, %539 : vector<2x1xi32>
    %541 = vector.shape_cast %540 : vector<2x1xi1> to vector<2x1xi1>
    %542 = vector.broadcast %541 : vector<2x1xi1> to vector<2x32xi1>
    %543 = vector.extract_strided_slice %481 {offsets = [0, 32], sizes = [2, 32], strides = [1, 1]} : vector<2x64xf32> to vector<2x32xf32>
    %544 = arith.select %542, %537, %543 : vector<2x32xi1>, vector<2x32xf32>
    %c0_200 = arith.constant 0 : index
    %c32_201 = arith.constant 32 : index
    %545 = vector.load %arg11[%c0_200, %c32_201] : memref<2x64xf32, #tpu.memory_space<vmem>>, vector<2x32xf32>
    tpu.vector_store %arg11[%c0_200, %c32_201], %544 {strides = array<i32>} : memref<2x64xf32, #tpu.memory_space<vmem>>, vector<2x32xf32>,
    %546 = vector.extract_strided_slice %482 {offsets = [0, 32], sizes = [2, 32], strides = [1, 1]} : vector<2x64xf32> to vector<2x32xf32>
    %547 = arith.select %542, %535, %546 : vector<2x32xi1>, vector<2x32xf32>
    %c0_202 = arith.constant 0 : index
    %c32_203 = arith.constant 32 : index
    %548 = vector.load %arg12[%c0_202, %c32_203] : memref<2x64xf32, #tpu.memory_space<vmem>>, vector<2x32xf32>
    tpu.vector_store %arg12[%c0_202, %c32_203], %547 {strides = array<i32>} : memref<2x64xf32, #tpu.memory_space<vmem>>, vector<2x32xf32>,
    %cst_204 = arith.constant 0.000000e+00 : f32
    %549 = vector.broadcast %cst_204 : f32 to vector<2x32xf32>
    %550 = arith.select %542, %537, %549 : vector<2x32xi1>, vector<2x32xf32>
    %551 = arith.truncf %550 : vector<2x32xf32> to vector<2x32xbf16>
    %c1_205 = arith.constant 1 : index
    %c0_206 = arith.constant 0 : index
    %c0_207 = arith.constant 0 : index
    %552 = vector.load %arg6[%c1_205, %c0_206, %c0_207] : memref<8x2x32xbf16, #tpu.memory_space<vmem>>, vector<1x2x32xbf16>
    %553 = vector.shape_cast %552 : vector<1x2x32xbf16> to vector<2x32xbf16>
    %554 = vector.shape_cast %551 : vector<2x32xbf16> to vector<1x2x32xbf16>
    tpu.vector_store %arg6[%c1_205, %c0_206, %c0_207], %554 {strides = array<i32>} : memref<8x2x32xbf16, #tpu.memory_space<vmem>>, vector<1x2x32xbf16>,
    %c0_208 = arith.constant 0 : index
    %c0_209 = arith.constant 0 : index
    %555 = vector.load %arg11[%c0_208, %c0_209] : memref<2x64xf32, #tpu.memory_space<vmem>>, vector<2x64xf32>
    %c0_210 = arith.constant 0 : index
    %c0_211 = arith.constant 0 : index
    %556 = vector.load %arg12[%c0_210, %c0_211] : memref<2x64xf32, #tpu.memory_space<vmem>>, vector<2x64xf32>
    %c7_212 = arith.constant 7 : index
    %c0_213 = arith.constant 0 : index
    %c0_214 = arith.constant 0 : index
    %557 = vector.load %arg2[%c7_212, %c0_213, %c0_214] : memref<8x2x128xbf16, #tpu.memory_space<vmem>>, vector<1x2x128xbf16>
    %558 = vector.shape_cast %557 : vector<1x2x128xbf16> to vector<2x128xbf16>
    %559 = arith.extf %558 : vector<2x128xbf16> to vector<2x128xf32>
    %c0_215 = arith.constant 0 : index
    %c0_216 = arith.constant 0 : index
    %c0_217 = arith.constant 0 : index
    %560 = vector.load %arg3[%c0_215, %c0_216, %c0_217] : memref<8x2x128xbf16, #tpu.memory_space<vmem>>, vector<1x2x128xbf16>
    %561 = vector.shape_cast %560 : vector<1x2x128xbf16> to vector<2x128xbf16>
    %562 = arith.extf %561 : vector<2x128xbf16> to vector<2x128xf32>
    %563 = tpu.concatenate %559, %562 in 1 : vector<2x128xf32>, vector<2x128xf32> -> vector<2x256xf32>
    %564 = arith.truncf %555 : vector<2x64xf32> to vector<2x64xbf16>
    %cst_218 = arith.constant dense<0.000000e+00> : vector<2x256xf32>
    %565 = tpu.matmul %564, %4, %cst_218 {dimension_numbers = #tpu.dot_dimension_numbers<[1], [0], [0], [1], [0, 0, 1, 1], [], []>} : vector<2x64xbf16>, vector<64x256xbf16>, vector<2x256xf32> -> vector<2x256xf32>
    %566 = arith.addf %563, %565 : vector<2x256xf32>
    %567 = arith.mulf %566, %31 : vector<2x256xf32>
    %568 = arith.negf %567 : vector<2x256xf32>
    %569 = math.exp %568 : vector<2x256xf32>
    %cst_219 = arith.constant 1.000000e+00 : f32
    %570 = vector.broadcast %cst_219 : f32 to vector<2x256xf32>
    %571 = arith.addf %570, %569 : vector<2x256xf32>
    %572 = arith.divf %570, %571 : vector<2x256xf32>
    %573 = arith.mulf %572, %31 : vector<2x256xf32>
    %574 = arith.addf %573, %33 : vector<2x256xf32>
    %575 = vector.extract_strided_slice %574 {offsets = [0, 0], sizes = [2, 32], strides = [1, 1]} : vector<2x256xf32> to vector<2x32xf32>
    %576 = vector.extract_strided_slice %574 {offsets = [0, 32], sizes = [2, 32], strides = [1, 1]} : vector<2x256xf32> to vector<2x32xf32>
    %577 = vector.extract_strided_slice %574 {offsets = [0, 64], sizes = [2, 32], strides = [1, 1]} : vector<2x256xf32> to vector<2x32xf32>
    %578 = vector.extract_strided_slice %574 {offsets = [0, 96], sizes = [2, 32], strides = [1, 1]} : vector<2x256xf32> to vector<2x32xf32>
    %579 = vector.extract_strided_slice %556 {offsets = [0, 0], sizes = [2, 32], strides = [1, 1]} : vector<2x64xf32> to vector<2x32xf32>
    %580 = arith.mulf %576, %579 : vector<2x32xf32>
    %581 = arith.mulf %575, %577 : vector<2x32xf32>
    %582 = arith.addf %580, %581 : vector<2x32xf32>
    %583 = math.tanh %582 : vector<2x32xf32>
    %584 = arith.mulf %578, %583 : vector<2x32xf32>
    %c7_i32_220 = arith.constant 7 : i32
    %585 = arith.addi %34, %c7_i32_220 : i32
    %586 = vector.broadcast %585 : i32 to vector<2x1xi32>
    %587 = arith.cmpi sgt, %3, %586 : vector<2x1xi32>
    %588 = vector.shape_cast %587 : vector<2x1xi1> to vector<2x1xi1>
    %589 = vector.broadcast %588 : vector<2x1xi1> to vector<2x32xi1>
    %590 = vector.extract_strided_slice %555 {offsets = [0, 0], sizes = [2, 32], strides = [1, 1]} : vector<2x64xf32> to vector<2x32xf32>
    %591 = arith.select %589, %584, %590 : vector<2x32xi1>, vector<2x32xf32>
    %c0_221 = arith.constant 0 : index
    %c0_222 = arith.constant 0 : index
    %592 = vector.load %arg11[%c0_221, %c0_222] : memref<2x64xf32, #tpu.memory_space<vmem>>, vector<2x32xf32>
    tpu.vector_store %arg11[%c0_221, %c0_222], %591 {strides = array<i32>} : memref<2x64xf32, #tpu.memory_space<vmem>>, vector<2x32xf32>,
    %593 = vector.extract_strided_slice %556 {offsets = [0, 0], sizes = [2, 32], strides = [1, 1]} : vector<2x64xf32> to vector<2x32xf32>
    %594 = arith.select %589, %582, %593 : vector<2x32xi1>, vector<2x32xf32>
    %c0_223 = arith.constant 0 : index
    %c0_224 = arith.constant 0 : index
    %595 = vector.load %arg12[%c0_223, %c0_224] : memref<2x64xf32, #tpu.memory_space<vmem>>, vector<2x32xf32>
    tpu.vector_store %arg12[%c0_223, %c0_224], %594 {strides = array<i32>} : memref<2x64xf32, #tpu.memory_space<vmem>>, vector<2x32xf32>,
    %cst_225 = arith.constant 0.000000e+00 : f32
    %596 = vector.broadcast %cst_225 : f32 to vector<2x32xf32>
    %597 = arith.select %589, %584, %596 : vector<2x32xi1>, vector<2x32xf32>
    %598 = arith.truncf %597 : vector<2x32xf32> to vector<2x32xbf16>
    %c7_226 = arith.constant 7 : index
    %c0_227 = arith.constant 0 : index
    %c0_228 = arith.constant 0 : index
    %599 = vector.load %arg5[%c7_226, %c0_227, %c0_228] : memref<8x2x32xbf16, #tpu.memory_space<vmem>>, vector<1x2x32xbf16>
    %600 = vector.shape_cast %599 : vector<1x2x32xbf16> to vector<2x32xbf16>
    %601 = vector.shape_cast %598 : vector<2x32xbf16> to vector<1x2x32xbf16>
    tpu.vector_store %arg5[%c7_226, %c0_227, %c0_228], %601 {strides = array<i32>} : memref<8x2x32xbf16, #tpu.memory_space<vmem>>, vector<1x2x32xbf16>,
    %602 = vector.extract_strided_slice %574 {offsets = [0, 128], sizes = [2, 32], strides = [1, 1]} : vector<2x256xf32> to vector<2x32xf32>
    %603 = vector.extract_strided_slice %574 {offsets = [0, 160], sizes = [2, 32], strides = [1, 1]} : vector<2x256xf32> to vector<2x32xf32>
    %604 = vector.extract_strided_slice %574 {offsets = [0, 192], sizes = [2, 32], strides = [1, 1]} : vector<2x256xf32> to vector<2x32xf32>
    %605 = vector.extract_strided_slice %574 {offsets = [0, 224], sizes = [2, 32], strides = [1, 1]} : vector<2x256xf32> to vector<2x32xf32>
    %606 = vector.extract_strided_slice %556 {offsets = [0, 32], sizes = [2, 32], strides = [1, 1]} : vector<2x64xf32> to vector<2x32xf32>
    %607 = arith.mulf %603, %606 : vector<2x32xf32>
    %608 = arith.mulf %602, %604 : vector<2x32xf32>
    %609 = arith.addf %607, %608 : vector<2x32xf32>
    %610 = math.tanh %609 : vector<2x32xf32>
    %611 = arith.mulf %605, %610 : vector<2x32xf32>
    %c0_i32_229 = arith.constant 0 : i32
    %612 = arith.addi %36, %c0_i32_229 : i32
    %613 = vector.broadcast %612 : i32 to vector<2x1xi32>
    %614 = arith.cmpi sgt, %3, %613 : vector<2x1xi32>
    %615 = vector.shape_cast %614 : vector<2x1xi1> to vector<2x1xi1>
    %616 = vector.broadcast %615 : vector<2x1xi1> to vector<2x32xi1>
    %617 = vector.extract_strided_slice %555 {offsets = [0, 32], sizes = [2, 32], strides = [1, 1]} : vector<2x64xf32> to vector<2x32xf32>
    %618 = arith.select %616, %611, %617 : vector<2x32xi1>, vector<2x32xf32>
    %c0_230 = arith.constant 0 : index
    %c32_231 = arith.constant 32 : index
    %619 = vector.load %arg11[%c0_230, %c32_231] : memref<2x64xf32, #tpu.memory_space<vmem>>, vector<2x32xf32>
    tpu.vector_store %arg11[%c0_230, %c32_231], %618 {strides = array<i32>} : memref<2x64xf32, #tpu.memory_space<vmem>>, vector<2x32xf32>,
    %620 = vector.extract_strided_slice %556 {offsets = [0, 32], sizes = [2, 32], strides = [1, 1]} : vector<2x64xf32> to vector<2x32xf32>
    %621 = arith.select %616, %609, %620 : vector<2x32xi1>, vector<2x32xf32>
    %c0_232 = arith.constant 0 : index
    %c32_233 = arith.constant 32 : index
    %622 = vector.load %arg12[%c0_232, %c32_233] : memref<2x64xf32, #tpu.memory_space<vmem>>, vector<2x32xf32>
    tpu.vector_store %arg12[%c0_232, %c32_233], %621 {strides = array<i32>} : memref<2x64xf32, #tpu.memory_space<vmem>>, vector<2x32xf32>,
    %cst_234 = arith.constant 0.000000e+00 : f32
    %623 = vector.broadcast %cst_234 : f32 to vector<2x32xf32>
    %624 = arith.select %616, %611, %623 : vector<2x32xi1>, vector<2x32xf32>
    %625 = arith.truncf %624 : vector<2x32xf32> to vector<2x32xbf16>
    %c0_235 = arith.constant 0 : index
    %c0_236 = arith.constant 0 : index
    %c0_237 = arith.constant 0 : index
    %626 = vector.load %arg6[%c0_235, %c0_236, %c0_237] : memref<8x2x32xbf16, #tpu.memory_space<vmem>>, vector<1x2x32xbf16>
    %627 = vector.shape_cast %626 : vector<1x2x32xbf16> to vector<2x32xbf16>
    %628 = vector.shape_cast %625 : vector<2x32xbf16> to vector<1x2x32xbf16>
    tpu.vector_store %arg6[%c0_235, %c0_236, %c0_237], %628 {strides = array<i32>} : memref<8x2x32xbf16, #tpu.memory_space<vmem>>, vector<1x2x32xbf16>,
    %c0_i32_238 = arith.constant 0 : i32
    %629 = arith.cmpi eq, %arg0, %c0_i32_238 : i32
    %630 = arith.extui %629 : i1 to i32
    %c0_i32_239 = arith.constant 0 : i32
    %631 = arith.cmpi ne, %630, %c0_i32_239 : i32
    scf.if %631 {
      %c0_240 = arith.constant 0 : index
      %c0_241 = arith.constant 0 : index
      %632 = vector.load %arg11[%c0_240, %c0_241] : memref<2x64xf32, #tpu.memory_space<vmem>>, vector<2x32xf32>
      %c0_242 = arith.constant 0 : index
      %c0_243 = arith.constant 0 : index
      %633 = vector.load %arg7[%c0_242, %c0_243] : memref<2x32xf32, #tpu.memory_space<vmem>>, vector<2x32xf32>
      tpu.vector_store %arg7[%c0_242, %c0_243], %632 {strides = array<i32>} : memref<2x32xf32, #tpu.memory_space<vmem>>, vector<2x32xf32>,
      %c0_244 = arith.constant 0 : index
      %c0_245 = arith.constant 0 : index
      %634 = vector.load %arg12[%c0_244, %c0_245] : memref<2x64xf32, #tpu.memory_space<vmem>>, vector<2x32xf32>
      %c0_246 = arith.constant 0 : index
      %c0_247 = arith.constant 0 : index
      %635 = vector.load %arg9[%c0_246, %c0_247] : memref<2x32xf32, #tpu.memory_space<vmem>>, vector<2x32xf32>
      tpu.vector_store %arg9[%c0_246, %c0_247], %634 {strides = array<i32>} : memref<2x32xf32, #tpu.memory_space<vmem>>, vector<2x32xf32>,
      %c0_248 = arith.constant 0 : index
      %c32_249 = arith.constant 32 : index
      %636 = vector.load %arg11[%c0_248, %c32_249] : memref<2x64xf32, #tpu.memory_space<vmem>>, vector<2x32xf32>
      %c0_250 = arith.constant 0 : index
      %c0_251 = arith.constant 0 : index
      %637 = vector.load %arg8[%c0_250, %c0_251] : memref<2x32xf32, #tpu.memory_space<vmem>>, vector<2x32xf32>
      tpu.vector_store %arg8[%c0_250, %c0_251], %636 {strides = array<i32>} : memref<2x32xf32, #tpu.memory_space<vmem>>, vector<2x32xf32>,
      %c0_252 = arith.constant 0 : index
      %c32_253 = arith.constant 32 : index
      %638 = vector.load %arg12[%c0_252, %c32_253] : memref<2x64xf32, #tpu.memory_space<vmem>>, vector<2x32xf32>
      %c0_254 = arith.constant 0 : index
      %c0_255 = arith.constant 0 : index
      %639 = vector.load %arg10[%c0_254, %c0_255] : memref<2x32xf32, #tpu.memory_space<vmem>>, vector<2x32xf32>
      tpu.vector_store %arg10[%c0_254, %c0_255], %638 {strides = array<i32>} : memref<2x32xf32, #tpu.memory_space<vmem>>, vector<2x32xf32>,
    } else {
    }
    return
  }
  func.func @transform_0(%arg0: i32) -> (i32, i32) {
    %c0_i32 = arith.constant 0 : i32
    %c0_i32_0 = arith.constant 0 : i32
    %c0_i32_1 = arith.constant 0 : i32
    return %c0_i32, %c0_i32_0 : i32, i32
  }
  func.func @transform_1(%arg0: i32) -> (i32, i32, i32) {
    %c0_i32 = arith.constant 0 : i32
    %c0_i32_0 = arith.constant 0 : i32
    %c0_i32_1 = arith.constant 0 : i32
    return %arg0, %c0_i32, %c0_i32_0 : i32, i32, i32
  }
  func.func @transform_2(%arg0: i32) -> (i32, i32, i32) {
    %c0_i32 = arith.constant 0 : i32
    %0 = arith.subi %c0_i32, %arg0 : i32
    %c0_i32_0 = arith.constant 0 : i32
    %c0_i32_1 = arith.constant 0 : i32
    %c0_i32_2 = arith.constant 0 : i32
    return %0, %c0_i32_0, %c0_i32_1 : i32, i32, i32
  }
  func.func @transform_3(%arg0: i32) -> (i32, i32) {
    %c0_i32 = arith.constant 0 : i32
    %c0_i32_0 = arith.constant 0 : i32
    %c0_i32_1 = arith.constant 0 : i32
    return %c0_i32, %c0_i32_0 : i32, i32
  }
  func.func @transform_4(%arg0: i32) -> (i32, i32, i32) {
    %c0_i32 = arith.constant 0 : i32
    %c0_i32_0 = arith.constant 0 : i32
    %c0_i32_1 = arith.constant 0 : i32
    return %arg0, %c0_i32, %c0_i32_0 : i32, i32, i32
  }
  func.func @transform_5(%arg0: i32) -> (i32, i32, i32) {
    %c0_i32 = arith.constant 0 : i32
    %0 = arith.subi %c0_i32, %arg0 : i32
    %c0_i32_0 = arith.constant 0 : i32
    %c0_i32_1 = arith.constant 0 : i32
    %c0_i32_2 = arith.constant 0 : i32
    return %0, %c0_i32_0, %c0_i32_1 : i32, i32, i32
  }
  func.func @transform_6(%arg0: i32) -> (i32, i32) {
    %c0_i32 = arith.constant 0 : i32
    %c0_i32_0 = arith.constant 0 : i32
    %c0_i32_1 = arith.constant 0 : i32
    return %c0_i32, %c0_i32_0 : i32, i32
  }
  func.func @transform_7(%arg0: i32) -> (i32, i32) {
    %c0_i32 = arith.constant 0 : i32
    %c0_i32_0 = arith.constant 0 : i32
    %c0_i32_1 = arith.constant 0 : i32
    return %c0_i32, %c0_i32_0 : i32, i32
  }
  func.func @transform_8(%arg0: i32) -> (i32, i32) {
    %c0_i32 = arith.constant 0 : i32
    %c0_i32_0 = arith.constant 0 : i32
    %c0_i32_1 = arith.constant 0 : i32
    return %c0_i32, %c0_i32_0 : i32, i32
  }
  func.func @transform_9(%arg0: i32) -> (i32, i32) {
    %c0_i32 = arith.constant 0 : i32
    %c0_i32_0 = arith.constant 0 : i32
    %c0_i32_1 = arith.constant 0 : i32
    return %c0_i32, %c0_i32_0 : i32, i32
  }
}

</mosaic_0001>

<bundles_post_ra>
// kernel: lstm_encoder_forward.6
= control target key start
LH: loop header
LB: loop body
LE: loop exit
PB: predicated region body
PF: predicated region fallthrough
CT: control target
= control target key end

     0   :  { %v201_v1 = vmov 0   ;;  %vm84_vm0 = vcmask 523264   ;;  %v29_v10 = vlaneseq  ;;  %s263_s1 = inlined_call_operand.vmem [shape: bf16[64,256], index: 1, kind: input, shape index: {}]   ;;  %s264_s0 = inlined_call_operand.vmem [shape: bf16[16,64], index: 0, kind: input, shape index: {}]   ;;  %s265_s2 = inlined_call_operand.vmem [shape: f32[1,256], index: 2, kind: input, shape index: {}]   ;;  %s266_s3 = inlined_call_operand.vmem [shape: bf16[16,128], index: 3, kind: output, shape index: {0}]   ;;  %s267_s4 = inlined_call_operand.vmem [shape: bf16[16,128], index: 4, kind: output, shape index: {1}]  }
   0x1   :  { %v188_v0 = vld [vmem:[%s263_s1 + $0x4] ss:$8 sps:$4 sm:$0xff]   ;;  %120 = vmatprep.mubr.bf16.mxu0 %v201_v1  ;;  %v190_v2 = vld [vmem:[%s263_s1] ss:$8 sps:$4 sm:$0xff]   ;;  %v191_v3 = vld [vmem:[%s263_s1 + $0x14] ss:$8 sps:$4 sm:$0xff]  }
   0x2   :  { %88 = vmatprep.subr.bf16.mxu0 %v188_v0  ;;  %v193_v4 = vld [vmem:[%s263_s1 + $0x10] ss:$8 sps:$4 sm:$0xff]   ;;  %v194_v5 = vld [vmem:[%s263_s1 + $0x24] ss:$8 sps:$4 sm:$0xff]   ;;  %v196_v6 = vld [vmem:[%s263_s1 + $0x20] ss:$8 sps:$4 sm:$0xff]  }
   0x3   :  { %89 = vmatpush1.bf16.msra.mxu0 %v190_v2  ;;  %v197_v7 = vld [vmem:[%s263_s1 + $0x34] ss:$8 sps:$4 sm:$0xff]   ;;  %v199_v8 = vld [vmem:[%s263_s1 + $0x30] ss:$8 sps:$4 sm:$0xff]   ;;  %v200_v9 = vld [vmem:[%s264_s0] sm:$0xff]   ;;  %v30_v11 = vshrl.u32 %v29_v10, 7 }
   0x4   :  { %90 = vmatprep.subr.bf16.mxu0 %v191_v3  ;;  %v27_v13 = vld [vmem:[%s265_s2] sm:$0x3] }
   0x5   :  { %v31_v12 = vsub.s32 0, %v30_v11  ;;  %v35_v14 = vsub.s32 1, %v30_v11 }
   0x7   :  { %91 = vmatpush1.bf16.msra.mxu0 %v193_v4  ;;  %v32_v15 = vrot.slane %v27_v13, %v31_v12  ;;  %v36_v17 = vrot.slane %v27_v13, %v35_v14 }
   0x8   :  { %92 = vmatprep.subr.bf16.mxu0 %v194_v5 }
   0xb   :  { %93 = vmatpush1.bf16.msra.mxu0 %v196_v6 }
   0xc   :  { %94 = vmatprep.subr.bf16.mxu0 %v197_v7 }
   0xf   :  { %95 = vmatpush1.bf16.msra.mxu0 %v199_v8 }
  0x12   :  { %168 = vmatmul.mubr.msk.bf16.vlgmr.msra.gmra.mrb[0].mxu0 %vm84_vm0, %v200_v9 }
  0xe5   :  { %v122_v16 = vpop.f32.mrb[0].mxu0 }
  0xe6   :  { %v124_v18 = vpop.f32.mrb[1].mxu0  ;;  %v123_v20 = vadd.f32 %v122_v16, %v32_v15 }
  0xe7   :  { %v126_v19 = vpop.f32.mrb[2].mxu0  ;;  %v125_v23 = vadd.f32 %v124_v18, %v36_v17 }
  0xe8   :  { %v127_v21 = vadd.f32 %v126_v19, %v32_v15  ;;  %v128_v22 = vpop.f32.mrb[3].mxu0 }
  0xe9   :  { %v129_v24 = vadd.f32 %v128_v22, %v36_v17 }
  0xea   :  { %v180_v25 = vpack.c.bf16 %v127_v21, %v123_v20 }
  0xeb   :  { %v185_v26 = vpack.c.bf16 %v129_v24, %v125_v23 }
  0xec   :  { %181 = vst [vmem:[%s266_s3] sm:$0xff] %v180_v25  }
  0xed   :  { %186 = vst [vmem:[%s267_s4] sm:$0xff] %v185_v26  }

// kernel: lstm_encoder_forward.4
= control target key start
LH: loop header
LB: loop body
LE: loop exit
PB: predicated region body
PF: predicated region fallthrough
CT: control target
= control target key end

     0   :  { %v150_v1 = vmov 0   ;;  %vm48_vm0 = vcmask 130048   ;;  %v23_v4 = vlaneseq  ;;  %s194_s1 = inlined_call_operand.vmem [shape: bf16[16,256], index: 1, kind: input, shape index: {}]   ;;  %s195_s0 = inlined_call_operand.vmem [shape: bf16[16,16], index: 0, kind: input, shape index: {}]   ;;  %s196_s2 = inlined_call_operand.vmem [shape: f32[1,256], index: 2, kind: input, shape index: {}]   ;;  %s197_s3 = inlined_call_operand.vmem [shape: bf16[16,128], index: 3, kind: output, shape index: {0}]   ;;  %s198_s4 = inlined_call_operand.vmem [shape: bf16[16,128], index: 4, kind: output, shape index: {1}]  }
   0x1   :  { %v146_v0 = vld [vmem:[%s194_s1 + $0x4] ss:$8 sps:$4 sm:$0xff]   ;;  %84 = vmatprep.mubr.bf16.mxu0 %v150_v1  ;;  %v148_v2 = vld [vmem:[%s194_s1] ss:$8 sps:$4 sm:$0xff]  }
   0x2   :  { %52 = vmatprep.subr.bf16.mxu0 %v146_v0  ;;  %v149_v3 = vld [vmem:[%s195_s0] sm:$0xff]   ;;  %v24_v5 = vshrl.u32 %v23_v4, 7 }
   0x3   :  { %53 = vmatpush1.bf16.msra.mxu0 %v148_v2  ;;  %v21_v7 = vld [vmem:[%s196_s2] sm:$0x3] }
   0x4   :  { %v25_v6 = vsub.s32 0, %v24_v5  ;;  %v29_v8 = vsub.s32 1, %v24_v5 }
   0x6   :  { %126 = vmatmul.mubr.msk.bf16.vlgmr.msra.gmra.mrb[0].mxu0 %vm48_vm0, %v149_v3  ;;  %v26_v9 = vrot.slane %v21_v7, %v25_v6  ;;  %v30_v11 = vrot.slane %v21_v7, %v29_v8 }
  0xd9   :  { %v86_v10 = vpop.f32.mrb[0].mxu0 }
  0xda   :  { %v88_v12 = vpop.f32.mrb[1].mxu0  ;;  %v87_v14 = vadd.f32 %v86_v10, %v26_v9 }
  0xdb   :  { %v90_v13 = vpop.f32.mrb[2].mxu0  ;;  %v89_v17 = vadd.f32 %v88_v12, %v30_v11 }
  0xdc   :  { %v91_v15 = vadd.f32 %v90_v13, %v26_v9  ;;  %v92_v16 = vpop.f32.mrb[3].mxu0 }
  0xdd   :  { %v93_v18 = vadd.f32 %v92_v16, %v30_v11 }
  0xde   :  { %v138_v19 = vpack.c.bf16 %v91_v15, %v87_v14 }
  0xdf   :  { %v143_v20 = vpack.c.bf16 %v93_v18, %v89_v17 }
  0xe0   :  { %139 = vst [vmem:[%s197_s3] sm:$0xff] %v138_v19  }
  0xe1   :  { %144 = vst [vmem:[%s198_s4] sm:$0xff] %v143_v20  }

// kernel: lstm_encoder_forward.5
= control target key start
LH: loop header
LB: loop body
LE: loop exit
PB: predicated region body
PF: predicated region fallthrough
CT: control target
= control target key end

     0   :  { %vm59_vm0 = vcmask 517120   ;;  %v1978_v1 = vmov 0   ;;  %v1979_v2 = vmov 0.0   ;;  %s1980_s23 = smov 32   ;;  %vm159_vm1 = vcmask 523264   ;;  %s1982_s30 = smov 64   ;;  %s2852_s3 = inlined_call_operand.vmem [shape: bf16[64,256], index: 3, kind: input, shape index: {}]   ;;  %s2853_s1 = inlined_call_operand.vmem [shape: bf16[8,2,128], index: 1, kind: input, shape index: {}]   ;;  %s2854_s2 = inlined_call_operand.vmem [shape: bf16[8,2,128], index: 2, kind: input, shape index: {}]   ;;  %s2855_s0 = inlined_call_operand.vmem [shape: s32[2,1], index: 0, kind: input, shape index: {}]   ;;  %s2856_s4 = inlined_call_operand.vmem [shape: bf16[8,2,32], index: 4, kind: output, shape index: {0}]   ;;  %s2857_s8 = inlined_call_operand.vmem [shape: f32[2,32], index: 8, kind: output, shape index: {4}]   ;;  %s2858_s5 = inlined_call_operand.vmem [shape: bf16[8,2,32], index: 5, kind: output, shape index: {1}]   ;;  %s2859_s6 = inlined_call_operand.vmem [shape: f32[2,32], index: 6, kind: output, shape index: {2}]   ;;  %s2860_s9 = inlined_call_operand.vmem [shape: f32[2,32], index: 9, kind: output, shape index: {5}]   ;;  %s2861_s7 = inlined_call_operand.vmem [shape: f32[2,32], index: 7, kind: output, shape index: {3}]  }
   0x1   :  { %v2038_v0 = vld [vmem:[%s2852_s3 + $0x4] ss:$8 sps:$4 sm:$0xff]   ;;  %195 = vmatprep.mubr.bf16.mxu0 %v1978_v1  ;;  %60 = vst.msk [vmem:[#allocation2] sm:$0x3] %vm59_vm0, %v1979_v2  ;;  %61 = vst.msk [vmem:[#allocation3] sm:$0x3] %vm59_vm0, %v1979_v2  ;;  %1862 = vset.pattern.permute.xlu1 %v1978_v1  ;;  %v71_v13 = vlaneseq }
   0x2   :  { %v2045_v3 = vld [vmem:[%s2852_s3] ss:$8 sps:$4 sm:$0xff]   ;;  %1863 = vset.pattern.permute.xlu0 %v1978_v1  ;;  %394 = vmatprep.mubr.bf16.mxu1 %v1978_v1  ;;  %v2053_v4 = vld [vmem:[%s2852_s3 + $0x14] ss:$8 sps:$4 sm:$0xff]   ;;  %v2060_v5 = vld [vmem:[%s2852_s3 + $0x10] ss:$8 sps:$4 sm:$0xff]  }
   0x3   :  { %163 = vmatprep.subr.bf16.mxu0 %v2038_v0  ;;  %362 = vmatprep.subr.bf16.mxu1 %v2038_v0  ;;  %v2067_v6 = vld [vmem:[%s2852_s3 + $0x24] ss:$8 sps:$4 sm:$0xff]   ;;  %v2074_v7 = vld [vmem:[%s2852_s3 + $0x20] ss:$8 sps:$4 sm:$0xff]   ;;  %v2083_v9 = vld [vmem:[%s2852_s3 + $0x34] ss:$8 sps:$4 sm:$0xff]  }
   0x4   :  { %164 = vmatpush1.bf16.msra.mxu0 %v2045_v3  ;;  %363 = vmatpush1.bf16.msra.mxu1 %v2045_v3  ;;  %v2092_v10 = vld [vmem:[%s2852_s3 + $0x30] ss:$8 sps:$4 sm:$0xff]   ;;  %v72_v14 = vand.u32 127, %v71_v13  ;;  %v113_v17 = vld [vmem:[%s2853_s1] sm:$0x1]  ;;  %v1981_v21 = vmov 1.0  }
   0x5   :  { %165 = vmatprep.subr.bf16.mxu0 %v2053_v4  ;;  %364 = vmatprep.subr.bf16.mxu1 %v2053_v4  ;;  %v1795_v18 = vld [vmem:[%s2854_s2 + $0x7] sm:$0x1]  ;;  %v114_v19 = vunpack.c.l.bf16 %v113_v17  ;;  %v2143_v46 = vld [vmem:[%s2855_s0] sm:$0x3]  ;;  %s1983_s0 = smov 96   ;;  %vm261_vm12 = vcmask 254976  }
   0x6   :  { %v73_v15 = vadd.s32 128, %v72_v14  ;;  %vm98_vm2 = vcmp.ge.s32.totalorder %v72_v14, 64  ;;  %vm100_vm3 = vcmp.lt.s32.totalorder %v72_v14, 96  ;;  %v117_v20 = vunpack.c.l.bf16 %v1795_v18 }
   0x7   :  { %vm102_vm6 = vmand %vm98_vm2, %vm100_vm3  ;;  %vm246_vm8 = vcmp.gt.s32.totalorder %v2143_v46, 0  ;;  %vm310_vm9 = vcmp.gt.s32.totalorder %v2143_v46, 7  ;;  %vm324_vm13 = vcmask 517376   ;;  %vm446_vm14 = vcmp.gt.s32.totalorder %v2143_v46, 1 }
   0x8   :  { %166 = vmatpush1.bf16.msra.mxu0 %v2060_v5  ;;  %v2076_v8 = vld [vmem:[#allocation3] sm:$0x3]  ;;  %365 = vmatpush1.bf16.msra.mxu1 %v2060_v5  ;;  %v2094_v11 = vld [vmem:[#allocation2] sm:$0x3]  ;;  %v85_v16 = vand.u32 127, %v73_v15  ;;  %v2122_v22 = vsel %vm102_vm6, 2.0, %v1981_v21 }
   0x9   :  { %167 = vmatprep.subr.bf16.mxu0 %v2067_v6  ;;  %225 = vrot.lane.b32.xlu1 %v2076_v8, %s1980_s23  ;;  %v118_v12 = vpack.c.bf16 %v2094_v11, %v2094_v11  ;;  %v2129_v38 = vsub.f32 1.0, %v2122_v22  ;;  %v2148_v50 = vsel %vm246_vm8, 1, %v1978_v1  ;;  %v2154_v52 = vsel %vm310_vm9, 1, %v1978_v1 }
   0xa   :  { %366 = vmatprep.subr.bf16.mxu1 %v2067_v6  ;;  %vm99_vm4 = vcmp.ge.s32.totalorder %v85_v16, 64  ;;  %vm101_vm5 = vcmp.lt.s32.totalorder %v85_v16, 96  ;;  %vm509_vm15 = vcmp.gt.s32.totalorder %v2143_v46, 6  ;;  %vm644_vm3 = vcmp.gt.s32.totalorder %v2143_v46, 2 }
   0xb   :  { %vm103_vm7 = vmand %vm99_vm4, %vm101_vm5  ;;  %vm707_vm4 = vcmp.gt.s32.totalorder %v2143_v46, 5  ;;  %vm905_vm8 = vcmp.gt.s32.totalorder %v2143_v46, 4 }
   0xc   :  { %168 = vmatpush1.bf16.msra.mxu0 %v2074_v7  ;;  %367 = vmatpush1.bf16.msra.mxu1 %v2074_v7  ;;  %v2124_v25 = vsel %vm103_vm7, 2.0, %v1981_v21  ;;  %vm842_vm7 = vcmp.gt.s32.totalorder %v2143_v46, 3 }
   0xd   :  { %169 = vmatprep.subr.bf16.mxu0 %v2083_v9  ;;  %368 = vmatprep.subr.bf16.mxu1 %v2083_v9  ;;  %v2134_v43 = vsub.f32 1.0, %v2124_v25 }
  0x10   :  { %170 = vmatpush1.bf16.msra.mxu0 %v2092_v10  ;;  %369 = vmatpush1.bf16.msra.mxu1 %v2092_v10 }
  0x11   :  { %560 = vmatprep.subr.bf16.mxu0 %v2038_v0  ;;  %758 = vmatprep.subr.bf16.mxu1 %v2038_v0 }
  0x13   :  { %1804 = vmatmul.mubr.msk.bf16.vlgmr.msra.gmra.mrb[0].mxu0 %vm159_vm1, %v118_v12 }
  0x14   :  { %561 = vmatpush1.bf16.msra.mxu0 %v2045_v3  ;;  %592 = vmatprep.mubr.bf16.mxu0 %v1978_v1 }
  0x15   :  { %562 = vmatprep.subr.bf16.mxu0 %v2053_v4 }
  0x18   :  { %563 = vmatpush1.bf16.msra.mxu0 %v2060_v5 }
  0x19   :  { %564 = vmatprep.subr.bf16.mxu0 %v2067_v6 }
  0x1c   :  { %565 = vmatpush1.bf16.msra.mxu0 %v2074_v7 }
  0x1d   :  { %566 = vmatprep.subr.bf16.mxu0 %v2083_v9 }
  0x20   :  { %567 = vmatpush1.bf16.msra.mxu0 %v2092_v10 }
  0x21   :  { %956 = vmatprep.subr.bf16.mxu0 %v2038_v0 }
  0x7b   :  { %v226_v53 = vpop.permute.xlu1 %225 }
  0xe6   :  { %v197_v23 = vpop.f32.mrb[0].mxu0 }
  0xe7   :  { %v204_v24 = vadd.f32 %v197_v23, %v114_v19  ;;  %v199_v26 = vpop.f32.mrb[1].mxu0 }
  0xe8   :  { %v205_v27 = vadd.f32 %v199_v26, %v117_v20  ;;  %v201_v28 = vpop.f32.mrb[2].mxu0 }
  0xe9   :  { %v206_v29 = vmul.f32 %v204_v24, %v2122_v22  ;;  %v202_v30 = vpop.f32.mrb[3].mxu0  ;;  %v1809_v28 = vld [vmem:[%s2854_s2 + $0x6] sm:$0x1] }
  0xea   :  { %v207_v31 = vmul.f32 %v205_v27, %v2124_v25  ;;  %v357_v30 = vunpack.c.l.bf16 %v1809_v28 }
  0xeb   :  { %v1805_v32 = vmul.f32 -1.442695, %v206_v29 }
  0xec   :  { %v1806_v33 = vmul.f32 -1.442695, %v207_v31 }
  0xed   :  { %1876 = vpow2.f32 %v1805_v32 }
  0xee   :  { %1878 = vpow2.f32 %v1806_v33 }
  0xf7   :  { %v1877_v34 = vpop.eup %1876 }
  0xf8   :  { %v1879_v35 = vpop.eup %1878  ;;  %v214_v36 = vadd.f32 1.0, %v1877_v34 }
  0xf9   :  { %v215_v37 = vadd.f32 1.0, %v1879_v35 }
  0xfa   :  { %1880 = vrcp.f32 %v214_v36 }
  0xfb   :  { %1882 = vrcp.f32 %v215_v37 }
 0x104   :  { %v1881_v39 = vpop.eup %1880 }
 0x105   :  { %v1883_v40 = vpop.eup %1882  ;;  %v220_v41 = vmul.f32 %v1881_v39, %v2122_v22 }
 0x106   :  { %v221_v44 = vmul.f32 %v1883_v40, %v2124_v25 }
 0x107   :  { %v222_v42 = vadd.f32 %v220_v41, %v2129_v38 }
 0x108   :  { %v223_v45 = vadd.f32 %v221_v44, %v2134_v43 }
 0x109   :  { %230 = vrot.lane.b32.xlu0 %v222_v42, %s1982_s30  ;;  %v228_v54 = vmul.f32 %v226_v53, %v222_v42 }
 0x10a   :  { %v291_v57 = vmul.f32 %v223_v45, %v2076_v8 }
 0x10d   :  { %293 = vrot.lane.b32.xlu0 %v223_v45, %s1982_s30 }
 0x17b   :  { %v231_v47 = vpop.permute.xlu0 %230 }
 0x17c   :  { %v233_v48 = vmul.f32 %v231_v47, %v222_v42 }
 0x17e   :  { %235 = vrot.lane.b32.xlu1 %v233_v48, %s1980_s23 }
 0x17f   :  { %v294_v49 = vpop.permute.xlu0 %293 }
 0x180   :  { %v296_v51 = vmul.f32 %v294_v49, %v223_v45 }
 0x182   :  { %298 = vrot.lane.b32.xlu0 %v296_v51, %s1980_s23  ;;  %249 = vperm.xlu1 %1862, %v2148_v50  }
 0x186   :  { %313 = vperm.xlu0 %1863, %v2154_v52  }
 0x18a   :  { %253 = vrot.lane.b32.xlu0 %v2094_v11, %s1983_s0 }
 0x1f0   :  { %v236_v55 = vpop.permute.xlu1 %235 }
 0x1f1   :  { %v238_v56 = vadd.f32 %v236_v55, %v228_v54 }
 0x1f3   :  { %1884 = vtanh.f32 %v238_v56 }
 0x1f4   :  { %v299_v58 = vpop.permute.xlu0 %298 }
 0x1f5   :  { %v301_v59 = vadd.f32 %v299_v58, %v291_v57 }
 0x1f7   :  { %1886 = vtanh.f32 %v301_v59 }
 0x1fd   :  { %v1885_v60 = vpop.eup %1884 }
 0x1fe   :  { %241 = vrot.lane.b32.xlu1 %v1885_v60, %s1982_s30 }
 0x201   :  { %v1887_v61 = vpop.eup %1886  ;;  %v2164_v62 = vpop.permute.xlu1 %249 }
 0x202   :  { %304 = vrot.lane.b32.xlu1 %v1887_v61, %s1982_s30  ;;  %vm251_vm10 = vcmp.eq.s32.totalorder %v2164_v62, 1  ;;  %v2226_v61 = vsel %vm446_vm14, 1, %v1978_v1 }
 0x205   :  { %v2166_v63 = vpop.permute.xlu0 %313 }
 0x206   :  { %316 = vrot.lane.b32.xlu1 %v2094_v11, %s1982_s30  ;;  %v263_v11 = vsel %vm251_vm10, %v238_v56, %v226_v53  ;;  %vm315_vm11 = vcmp.eq.s32.totalorder %v2166_v63, 1 }
 0x207   :  { %v326_v23 = vsel %vm315_vm11, %v301_v59, %v2076_v8  ;;  %v1808_v8 = vld [vmem:[%s2853_s1 + $0x1] sm:$0x1] }
 0x208   :  { %v354_v29 = vunpack.c.l.bf16 %v1808_v8 }
 0x209   :  { %v254_v12 = vpop.permute.xlu0 %253 }
 0x270   :  { %v242_v2 = vpop.permute.xlu1 %241 }
 0x271   :  { %v2168_v14 = vmul.f32 %v242_v2, %v222_v42  ;;  %v2229_v2 = vsel %vm509_vm15, 1, %v1978_v1 }
 0x273   :  { %v256_v15 = vsel %vm251_vm10, %v2168_v14, %v254_v12 }
 0x274   :  { %258 = vrot.lane.b32.xlu0 %v256_v15, %s1980_s23  ;;  %v305_v16 = vpop.permute.xlu1 %304 }
 0x275   :  { %v2175_v17 = vmul.f32 %v305_v16, %v223_v45 }
 0x278   :  { %265 = vrot.lane.b32.xlu0 %v263_v11, %s1983_s0  ;;  %v317_v18 = vpop.permute.xlu1 %316 }
 0x279   :  { %v319_v19 = vsel %vm315_vm11, %v2175_v17, %v317_v18 }
 0x27a   :  { %321 = vrot.lane.b32.xlu1 %v319_v19, %s1982_s30 }
 0x2e6   :  { %v259_v20 = vpop.permute.xlu0 %258 }
 0x2e7   :  { %262 = vst.msk [vmem:[#allocation2] sm:$0x3] %vm261_vm12, %v259_v20 }
 0x2ea   :  { %v266_v21 = vpop.permute.xlu0 %265 }
 0x2eb   :  { %268 = vst.msk [vmem:[#allocation3] sm:$0x3] %vm261_vm12, %v266_v21 }
 0x2ec   :  { %327 = vst.msk [vmem:[#allocation3] sm:$0x3] %vm324_vm13, %v326_v23  ;;  %v322_v24 = vpop.permute.xlu1 %321 }
 0x2ed   :  { %325 = vst.msk [vmem:[#allocation2] sm:$0x3] %vm324_vm13, %v322_v24 }
 0x2f3   :  { %v351_v56 = vld [vmem:[#allocation3] sm:$0x3] }
 0x2f4   :  { %v2192_v26 = vld [vmem:[#allocation2] sm:$0x3] }
 0x2f5   :  { %v358_v27 = vpack.c.bf16 %v2192_v26, %v2192_v26 }
 0x2f7   :  { %1810 = vmatmul.mubr.msk.bf16.vlgmr.msra.gmra.mrb[0].mxu1 %vm159_vm1, %v358_v27 }
 0x2f8   :  { %759 = vmatpush1.bf16.msra.mxu1 %v2045_v3  ;;  %790 = vmatprep.mubr.bf16.mxu1 %v1978_v1 }
 0x2f9   :  { %760 = vmatprep.subr.bf16.mxu1 %v2053_v4 }
 0x2fc   :  { %761 = vmatpush1.bf16.msra.mxu1 %v2060_v5 }
 0x2fd   :  { %762 = vmatprep.subr.bf16.mxu1 %v2067_v6 }
 0x300   :  { %763 = vmatpush1.bf16.msra.mxu1 %v2074_v7 }
 0x301   :  { %764 = vmatprep.subr.bf16.mxu1 %v2083_v9 }
 0x304   :  { %765 = vmatpush1.bf16.msra.mxu1 %v2092_v10 }
 0x305   :  { %1154 = vmatprep.subr.bf16.mxu1 %v2038_v0 }
 0x3ca   :  { %v396_v31 = vpop.f32.mrb[0].mxu1 }
 0x3cb   :  { %v403_v32 = vadd.f32 %v396_v31, %v354_v29  ;;  %v398_v33 = vpop.f32.mrb[1].mxu1 }
 0x3cc   :  { %v404_v34 = vadd.f32 %v398_v33, %v357_v30  ;;  %v400_v35 = vpop.f32.mrb[2].mxu1 }
 0x3cd   :  { %v405_v36 = vmul.f32 %v403_v32, %v2122_v22  ;;  %v401_v37 = vpop.f32.mrb[3].mxu1 }
 0x3ce   :  { %v406_v39 = vmul.f32 %v404_v34, %v2124_v25 }
 0x3cf   :  { %v1811_v40 = vmul.f32 -1.442695, %v405_v36 }
 0x3d0   :  { %v1812_v41 = vmul.f32 -1.442695, %v406_v39 }
 0x3d1   :  { %1888 = vpow2.f32 %v1811_v40 }
 0x3d2   :  { %1890 = vpow2.f32 %v1812_v41 }
 0x3db   :  { %v1889_v42 = vpop.eup %1888 }
 0x3dc   :  { %v1891_v44 = vpop.eup %1890  ;;  %v413_v45 = vadd.f32 1.0, %v1889_v42  ;;  %v1815_v42 = vld [vmem:[%s2853_s1 + $0x2] sm:$0x1] }
 0x3dd   :  { %v414_v47 = vadd.f32 1.0, %v1891_v44  ;;  %v1816_v44 = vld [vmem:[%s2854_s2 + $0x5] sm:$0x1] }
 0x3de   :  { %1892 = vrcp.f32 %v413_v45  ;;  %v552_v45 = vunpack.c.l.bf16 %v1815_v42 }
 0x3df   :  { %1894 = vrcp.f32 %v414_v47  ;;  %v555_v47 = vunpack.c.l.bf16 %v1816_v44 }
 0x3e8   :  { %v1893_v48 = vpop.eup %1892 }
 0x3e9   :  { %v1895_v49 = vpop.eup %1894  ;;  %v419_v51 = vmul.f32 %v1893_v48, %v2122_v22 }
 0x3ea   :  { %v420_v53 = vmul.f32 %v1895_v49, %v2124_v25 }
 0x3eb   :  { %v421_v54 = vadd.f32 %v419_v51, %v2129_v38 }
 0x3ec   :  { %v422_v55 = vadd.f32 %v420_v53, %v2134_v43 }
 0x3ed   :  { %429 = vrot.lane.b32.xlu1 %v421_v54, %s1982_s30 }
 0x3ee   :  { %492 = vrot.lane.b32.xlu0 %v422_v55, %s1982_s30  ;;  %v490_v11 = vmul.f32 %v422_v55, %v351_v56 }
 0x3f1   :  { %424 = vrot.lane.b32.xlu1 %v351_v56, %s1980_s23 }
 0x45f   :  { %v430_v57 = vpop.permute.xlu1 %429 }
 0x460   :  { %v432_v58 = vmul.f32 %v430_v57, %v421_v54  ;;  %v493_v59 = vpop.permute.xlu0 %492 }
 0x461   :  { %v495_v60 = vmul.f32 %v493_v59, %v422_v55 }
 0x462   :  { %434 = vrot.lane.b32.xlu0 %v432_v58, %s1980_s23 }
 0x463   :  { %497 = vrot.lane.b32.xlu1 %v495_v60, %s1980_s23  ;;  %v425_v12 = vpop.permute.xlu1 %424 }
 0x464   :  { %v427_v15 = vmul.f32 %v425_v12, %v421_v54 }
 0x466   :  { %449 = vperm.xlu0 %1863, %v2226_v61  }
 0x467   :  { %512 = vperm.xlu1 %1862, %v2229_v2  }
 0x4d4   :  { %v435_v16 = vpop.permute.xlu0 %434 }
 0x4d5   :  { %v437_v18 = vadd.f32 %v435_v16, %v427_v15  ;;  %v498_v19 = vpop.permute.xlu1 %497 }
 0x4d6   :  { %v500_v20 = vadd.f32 %v498_v19, %v490_v11 }
 0x4d7   :  { %1896 = vtanh.f32 %v437_v18 }
 0x4d8   :  { %1898 = vtanh.f32 %v500_v20 }
 0x4e1   :  { %v1897_v21 = vpop.eup %1896 }
 0x4e2   :  { %v1899_v23 = vpop.eup %1898  ;;  %440 = vrot.lane.b32.xlu0 %v1897_v21, %s1982_s30 }
 0x4e3   :  { %503 = vrot.lane.b32.xlu1 %v1899_v23, %s1982_s30 }
 0x4e5   :  { %v2239_v24 = vpop.permute.xlu0 %449 }
 0x4e6   :  { %453 = vrot.lane.b32.xlu0 %v2192_v26, %s1983_s0  ;;  %v2241_v27 = vpop.permute.xlu1 %512  ;;  %vm451_vm0 = vcmp.eq.s32.totalorder %v2239_v24, 1 }
 0x4e7   :  { %515 = vrot.lane.b32.xlu1 %v2192_v26, %s1982_s30  ;;  %vm514_vm2 = vcmp.eq.s32.totalorder %v2241_v27, 1  ;;  %v462_v34 = vsel %vm451_vm0, %v437_v18, %v425_v12 }
 0x4e8   :  { %v524_v39 = vsel %vm514_vm2, %v500_v20, %v351_v56 }
 0x554   :  { %v441_v8 = vpop.permute.xlu0 %440 }
 0x555   :  { %v504_v28 = vpop.permute.xlu1 %503  ;;  %v2243_v29 = vmul.f32 %v441_v8, %v421_v54 }
 0x556   :  { %v2246_v30 = vmul.f32 %v504_v28, %v422_v55 }
 0x558   :  { %v454_v31 = vpop.permute.xlu0 %453 }
 0x559   :  { %v516_v32 = vpop.permute.xlu1 %515  ;;  %v456_v26 = vsel %vm451_vm0, %v2243_v29, %v454_v31 }
 0x55a   :  { %458 = vrot.lane.b32.xlu0 %v456_v26, %s1980_s23  ;;  %v518_v33 = vsel %vm514_vm2, %v2246_v30, %v516_v32 }
 0x55b   :  { %520 = vrot.lane.b32.xlu1 %v518_v33, %s1982_s30  ;;  %v2300_v33 = vsel %vm644_vm3, 1, %v1978_v1 }
 0x55e   :  { %464 = vrot.lane.b32.xlu0 %v462_v34, %s1983_s0  ;;  %v2303_v34 = vsel %vm707_vm4, 1, %v1978_v1 }
 0x5cc   :  { %v459_v35 = vpop.permute.xlu0 %458 }
 0x5cd   :  { %461 = vst.msk [vmem:[#allocation2] sm:$0x3] %vm261_vm12, %v459_v35  ;;  %v521_v36 = vpop.permute.xlu1 %520 }
 0x5ce   :  { %523 = vst.msk [vmem:[#allocation2] sm:$0x3] %vm324_vm13, %v521_v36 }
 0x5d0   :  { %v465_v37 = vpop.permute.xlu0 %464 }
 0x5d1   :  { %467 = vst.msk [vmem:[#allocation3] sm:$0x3] %vm261_vm12, %v465_v37 }
 0x5d2   :  { %525 = vst.msk [vmem:[#allocation3] sm:$0x3] %vm324_vm13, %v524_v39 }
 0x5d5   :  { %v2266_v40 = vld [vmem:[#allocation2] sm:$0x3] }
 0x5d6   :  { %v556_v41 = vpack.c.bf16 %v2266_v40, %v2266_v40 }
 0x5d8   :  { %1817 = vmatmul.mubr.msk.bf16.vlgmr.msra.gmra.mrb[4].mxu0 %vm159_vm1, %v556_v41 }
 0x5d9   :  { %957 = vmatpush1.bf16.msra.mxu0 %v2045_v3  ;;  %988 = vmatprep.mubr.bf16.mxu0 %v1978_v1  ;;  %v549_v8 = vld [vmem:[#allocation3] sm:$0x3] }
 0x5da   :  { %958 = vmatprep.subr.bf16.mxu0 %v2053_v4 }
 0x5dd   :  { %959 = vmatpush1.bf16.msra.mxu0 %v2060_v5 }
 0x5de   :  { %960 = vmatprep.subr.bf16.mxu0 %v2067_v6 }
 0x5e1   :  { %961 = vmatpush1.bf16.msra.mxu0 %v2074_v7 }
 0x5e2   :  { %962 = vmatprep.subr.bf16.mxu0 %v2083_v9 }
 0x5e5   :  { %963 = vmatpush1.bf16.msra.mxu0 %v2092_v10 }
 0x5e6   :  { %1352 = vmatprep.subr.bf16.mxu0 %v2038_v0 }
 0x6ab   :  { %v594_v48 = vpop.f32.mrb[4].mxu0 }
 0x6ac   :  { %v601_v49 = vadd.f32 %v594_v48, %v552_v45  ;;  %v596_v51 = vpop.f32.mrb[5].mxu0 }
 0x6ad   :  { %v602_v53 = vadd.f32 %v596_v51, %v555_v47  ;;  %v598_v54 = vpop.f32.mrb[6].mxu0 }
 0x6ae   :  { %v603_v55 = vmul.f32 %v601_v49, %v2122_v22  ;;  %v599_v56 = vpop.f32.mrb[7].mxu0 }
 0x6af   :  { %v604_v57 = vmul.f32 %v602_v53, %v2124_v25 }
 0x6b0   :  { %v1818_v58 = vmul.f32 -1.442695, %v603_v55 }
 0x6b1   :  { %v1819_v59 = vmul.f32 -1.442695, %v604_v57 }
 0x6b2   :  { %1900 = vpow2.f32 %v1818_v58 }
 0x6b3   :  { %1902 = vpow2.f32 %v1819_v59 }
 0x6bc   :  { %v1901_v60 = vpop.eup %1900 }
 0x6bd   :  { %v1903_v12 = vpop.eup %1902  ;;  %v611_v15 = vadd.f32 1.0, %v1901_v60 }
 0x6be   :  { %v612_v16 = vadd.f32 1.0, %v1903_v12 }
 0x6bf   :  { %1904 = vrcp.f32 %v611_v15 }
 0x6c0   :  { %1906 = vrcp.f32 %v612_v16 }
 0x6c9   :  { %v1905_v11 = vpop.eup %1904 }
 0x6ca   :  { %v1907_v18 = vpop.eup %1906  ;;  %v617_v19 = vmul.f32 %v1905_v11, %v2122_v22 }
 0x6cb   :  { %v618_v20 = vmul.f32 %v1907_v18, %v2124_v25 }
 0x6cc   :  { %v619_v21 = vadd.f32 %v617_v19, %v2129_v38  ;;  %v1822_v19 = vld [vmem:[%s2853_s1 + $0x3] sm:$0x1] }
 0x6cd   :  { %v620_v23 = vadd.f32 %v618_v20, %v2134_v43  ;;  %v1823_v20 = vld [vmem:[%s2854_s2 + $0x4] sm:$0x1] }
 0x6ce   :  { %627 = vrot.lane.b32.xlu1 %v619_v21, %s1982_s30 }
 0x6cf   :  { %690 = vrot.lane.b32.xlu0 %v620_v23, %s1982_s30  ;;  %v688_v39 = vmul.f32 %v620_v23, %v549_v8 }
 0x6d2   :  { %622 = vrot.lane.b32.xlu1 %v549_v8, %s1980_s23 }
 0x740   :  { %v628_v28 = vpop.permute.xlu1 %627 }
 0x741   :  { %v630_v31 = vmul.f32 %v628_v28, %v619_v21  ;;  %v691_v32 = vpop.permute.xlu0 %690 }
 0x742   :  { %v693_v26 = vmul.f32 %v691_v32, %v620_v23 }
 0x743   :  { %632 = vrot.lane.b32.xlu0 %v630_v31, %s1980_s23 }
 0x744   :  { %695 = vrot.lane.b32.xlu1 %v693_v26, %s1980_s23  ;;  %v623_v35 = vpop.permute.xlu1 %622 }
 0x745   :  { %v625_v36 = vmul.f32 %v623_v35, %v619_v21 }
 0x747   :  { %647 = vperm.xlu0 %1863, %v2300_v33  }
 0x748   :  { %710 = vperm.xlu1 %1862, %v2303_v34  }
 0x7b5   :  { %v633_v37 = vpop.permute.xlu0 %632 }
 0x7b6   :  { %v635_v41 = vadd.f32 %v633_v37, %v625_v36  ;;  %v696_v42 = vpop.permute.xlu1 %695 }
 0x7b7   :  { %v698_v44 = vadd.f32 %v696_v42, %v688_v39 }
 0x7b8   :  { %1908 = vtanh.f32 %v635_v41 }
 0x7b9   :  { %1910 = vtanh.f32 %v698_v44 }
 0x7c2   :  { %v1909_v45 = vpop.eup %1908 }
 0x7c3   :  { %v1911_v47 = vpop.eup %1910  ;;  %638 = vrot.lane.b32.xlu0 %v1909_v45, %s1982_s30 }
 0x7c4   :  { %701 = vrot.lane.b32.xlu1 %v1911_v47, %s1982_s30 }
 0x7c6   :  { %v2313_v48 = vpop.permute.xlu0 %647 }
 0x7c7   :  { %651 = vrot.lane.b32.xlu0 %v2266_v40, %s1983_s0  ;;  %v2315_v49 = vpop.permute.xlu1 %710  ;;  %vm649_vm5 = vcmp.eq.s32.totalorder %v2313_v48, 1 }
 0x7c8   :  { %713 = vrot.lane.b32.xlu1 %v2266_v40, %s1982_s30  ;;  %vm712_vm6 = vcmp.eq.s32.totalorder %v2315_v49, 1  ;;  %v660_v59 = vsel %vm649_vm5, %v635_v41, %v623_v35 }
 0x7c9   :  { %v722_v16 = vsel %vm712_vm6, %v698_v44, %v549_v8 }
 0x835   :  { %v639_v51 = vpop.permute.xlu0 %638 }
 0x836   :  { %v702_v53 = vpop.permute.xlu1 %701  ;;  %v2317_v54 = vmul.f32 %v639_v51, %v619_v21  ;;  %v750_v21 = vunpack.c.l.bf16 %v1822_v19 }
 0x837   :  { %v2320_v55 = vmul.f32 %v702_v53, %v620_v23  ;;  %v753_v23 = vunpack.c.l.bf16 %v1823_v20 }
 0x839   :  { %v652_v56 = vpop.permute.xlu0 %651  ;;  %v724_v27 = vsel %vm712_vm6, %v2320_v55, 0.0 }
 0x83a   :  { %v714_v57 = vpop.permute.xlu1 %713  ;;  %v654_v40 = vsel %vm649_vm5, %v2317_v54, %v652_v56 }
 0x83b   :  { %656 = vrot.lane.b32.xlu0 %v654_v40, %s1980_s23  ;;  %v716_v58 = vsel %vm712_vm6, %v2320_v55, %v714_v57  ;;  %v725_v55 = vpack.c.bf16 %v724_v27, %v724_v27 }
 0x83c   :  { %718 = vrot.lane.b32.xlu1 %v716_v58, %s1982_s30 }
 0x83f   :  { %662 = vrot.lane.b32.xlu0 %v660_v59, %s1983_s0 }
 0x8ad   :  { %v657_v60 = vpop.permute.xlu0 %656 }
 0x8ae   :  { %659 = vst.msk [vmem:[#allocation2] sm:$0x3] %vm261_vm12, %v657_v60  ;;  %v719_v12 = vpop.permute.xlu1 %718 }
 0x8af   :  { %721 = vst.msk [vmem:[#allocation2] sm:$0x3] %vm324_vm13, %v719_v12 }
 0x8b1   :  { %v663_v15 = vpop.permute.xlu0 %662 }
 0x8b2   :  { %665 = vst.msk [vmem:[#allocation3] sm:$0x3] %vm261_vm12, %v663_v15 }
 0x8b3   :  { %723 = vst.msk [vmem:[#allocation3] sm:$0x3] %vm324_vm13, %v722_v16  ;;  %v2374_v16 = vsel %vm842_vm7, 1, %v1978_v1 }
 0x8b6   :  { %v2340_v11 = vld [vmem:[#allocation2] sm:$0x3] }
 0x8b7   :  { %v754_v18 = vpack.c.bf16 %v2340_v11, %v2340_v11 }
 0x8b9   :  { %1824 = vmatmul.mubr.msk.bf16.vlgmr.msra.gmra.mrb[4].mxu1 %vm159_vm1, %v754_v18  ;;  %v2377_v18 = vsel %vm905_vm8, 1, %v1978_v1 }
 0x8ba   :  { %1155 = vmatpush1.bf16.msra.mxu1 %v2045_v3  ;;  %1186 = vmatprep.mubr.bf16.mxu1 %v1978_v1  ;;  %v747_v58 = vld [vmem:[#allocation3] sm:$0x3] }
 0x8bb   :  { %1156 = vmatprep.subr.bf16.mxu1 %v2053_v4 }
 0x8be   :  { %1157 = vmatpush1.bf16.msra.mxu1 %v2060_v5 }
 0x8bf   :  { %1158 = vmatprep.subr.bf16.mxu1 %v2067_v6 }
 0x8c2   :  { %1159 = vmatpush1.bf16.msra.mxu1 %v2074_v7 }
 0x8c3   :  { %1160 = vmatprep.subr.bf16.mxu1 %v2083_v9 }
 0x8c6   :  { %1161 = vmatpush1.bf16.msra.mxu1 %v2092_v10 }
 0x8c7   :  { %1549 = vmatprep.subr.bf16.mxu1 %v2038_v0 }
 0x98c   :  { %v792_v8 = vpop.f32.mrb[4].mxu1 }
 0x98d   :  { %v799_v28 = vadd.f32 %v792_v8, %v750_v21  ;;  %v794_v31 = vpop.f32.mrb[5].mxu1 }
 0x98e   :  { %v800_v32 = vadd.f32 %v794_v31, %v753_v23  ;;  %v796_v26 = vpop.f32.mrb[6].mxu1 }
 0x98f   :  { %v801_v35 = vmul.f32 %v799_v28, %v2122_v22  ;;  %v797_v36 = vpop.f32.mrb[7].mxu1 }
 0x990   :  { %v802_v0 = vmul.f32 %v800_v32, %v2124_v25 }
 0x991   :  { %v1825_v37 = vmul.f32 -1.442695, %v801_v35 }
 0x992   :  { %v1826_v39 = vmul.f32 -1.442695, %v802_v0 }
 0x993   :  { %1912 = vpow2.f32 %v1825_v37 }
 0x994   :  { %1914 = vpow2.f32 %v1826_v39 }
 0x99d   :  { %v1913_v41 = vpop.eup %1912 }
 0x99e   :  { %v1915_v42 = vpop.eup %1914  ;;  %v809_v44 = vadd.f32 1.0, %v1913_v41 }
 0x99f   :  { %v810_v45 = vadd.f32 1.0, %v1915_v42 }
 0x9a0   :  { %1916 = vrcp.f32 %v809_v44 }
 0x9a1   :  { %1918 = vrcp.f32 %v810_v45 }
 0x9aa   :  { %v1917_v47 = vpop.eup %1916 }
 0x9ab   :  { %v1919_v51 = vpop.eup %1918  ;;  %v815_v53 = vmul.f32 %v1917_v47, %v2122_v22 }
 0x9ac   :  { %v816_v56 = vmul.f32 %v1919_v51, %v2124_v25 }
 0x9ad   :  { %v817_v57 = vadd.f32 %v815_v53, %v2129_v38 }
 0x9ae   :  { %v818_v40 = vadd.f32 %v816_v56, %v2134_v43 }
 0x9af   :  { %825 = vrot.lane.b32.xlu1 %v817_v57, %s1982_s30 }
 0x9b0   :  { %888 = vrot.lane.b32.xlu0 %v818_v40, %s1982_s30  ;;  %v886_v23 = vmul.f32 %v818_v40, %v747_v58 }
 0x9b3   :  { %820 = vrot.lane.b32.xlu1 %v747_v58, %s1980_s23 }
 0xa21   :  { %v826_v59 = vpop.permute.xlu1 %825 }
 0xa22   :  { %v828_v60 = vmul.f32 %v826_v59, %v817_v57  ;;  %v889_v12 = vpop.permute.xlu0 %888 }
 0xa23   :  { %v891_v15 = vmul.f32 %v889_v12, %v818_v40 }
 0xa24   :  { %830 = vrot.lane.b32.xlu0 %v828_v60, %s1980_s23 }
 0xa25   :  { %893 = vrot.lane.b32.xlu1 %v891_v15, %s1980_s23  ;;  %v821_v19 = vpop.permute.xlu1 %820 }
 0xa26   :  { %v823_v20 = vmul.f32 %v821_v19, %v817_v57 }
 0xa28   :  { %845 = vperm.xlu0 %1863, %v2374_v16  }
 0xa29   :  { %908 = vperm.xlu1 %1862, %v2377_v18  }
 0xa96   :  { %v831_v21 = vpop.permute.xlu0 %830 }
 0xa97   :  { %v833_v8 = vadd.f32 %v831_v21, %v823_v20  ;;  %v894_v46 = vpop.permute.xlu1 %893 }
 0xa98   :  { %v896_v28 = vadd.f32 %v894_v46, %v886_v23 }
 0xa99   :  { %1920 = vtanh.f32 %v833_v8 }
 0xa9a   :  { %1922 = vtanh.f32 %v896_v28 }
 0xaa3   :  { %v1921_v31 = vpop.eup %1920 }
 0xaa4   :  { %v1923_v32 = vpop.eup %1922  ;;  %836 = vrot.lane.b32.xlu0 %v1921_v31, %s1982_s30 }
 0xaa5   :  { %899 = vrot.lane.b32.xlu1 %v1923_v32, %s1982_s30 }
 0xaa7   :  { %v2387_v26 = vpop.permute.xlu0 %845 }
 0xaa8   :  { %849 = vrot.lane.b32.xlu0 %v2340_v11, %s1983_s0  ;;  %v2389_v35 = vpop.permute.xlu1 %908  ;;  %vm847_vm9 = vcmp.eq.s32.totalorder %v2387_v26, 1 }
 0xaa9   :  { %911 = vrot.lane.b32.xlu1 %v2340_v11, %s1982_s30  ;;  %vm910_vm14 = vcmp.eq.s32.totalorder %v2389_v35, 1  ;;  %v858_v45 = vsel %vm847_vm9, %v833_v8, %v821_v19 }
 0xaaa   :  { %v920_v56 = vsel %vm910_vm14, %v896_v28, %v747_v58  ;;  %v1829_v58 = vld [vmem:[%s2853_s1 + $0x4] sm:$0x1] }
 0xaab   :  { %v948_v59 = vunpack.c.l.bf16 %v1829_v58 }
 0xb16   :  { %v837_v36 = vpop.permute.xlu0 %836 }
 0xb17   :  { %v900_v0 = vpop.permute.xlu1 %899  ;;  %v2391_v37 = vmul.f32 %v837_v36, %v817_v57 }
 0xb18   :  { %v2394_v39 = vmul.f32 %v900_v0, %v818_v40 }
 0xb1a   :  { %v850_v41 = vpop.permute.xlu0 %849 }
 0xb1b   :  { %v912_v42 = vpop.permute.xlu1 %911  ;;  %v852_v11 = vsel %vm847_vm9, %v2391_v37, %v850_v41 }
 0xb1c   :  { %854 = vrot.lane.b32.xlu0 %v852_v11, %s1980_s23  ;;  %v914_v44 = vsel %vm910_vm14, %v2394_v39, %v912_v42 }
 0xb1d   :  { %916 = vrot.lane.b32.xlu1 %v914_v44, %s1982_s30 }
 0xb20   :  { %860 = vrot.lane.b32.xlu0 %v858_v45, %s1983_s0 }
 0xb8e   :  { %v855_v47 = vpop.permute.xlu0 %854 }
 0xb8f   :  { %857 = vst.msk [vmem:[#allocation2] sm:$0x3] %vm261_vm12, %v855_v47  ;;  %v917_v51 = vpop.permute.xlu1 %916 }
 0xb90   :  { %919 = vst.msk [vmem:[#allocation2] sm:$0x3] %vm324_vm13, %v917_v51 }
 0xb92   :  { %v861_v53 = vpop.permute.xlu0 %860 }
 0xb93   :  { %863 = vst.msk [vmem:[#allocation3] sm:$0x3] %vm261_vm12, %v861_v53 }
 0xb94   :  { %921 = vst.msk [vmem:[#allocation3] sm:$0x3] %vm324_vm13, %v920_v56 }
 0xb97   :  { %v2414_v57 = vld [vmem:[#allocation2] sm:$0x3] }
 0xb98   :  { %v952_v40 = vpack.c.bf16 %v2414_v57, %v2414_v57 }
 0xb9a   :  { %1831 = vmatmul.mubr.msk.bf16.vlgmr.msra.gmra.mrb[8].mxu0 %vm159_vm1, %v952_v40 }
 0xb9b   :  { %1353 = vmatpush1.bf16.msra.mxu0 %v2045_v3  ;;  %1384 = vmatprep.mubr.bf16.mxu0 %v1978_v1  ;;  %v1830_v3 = vld [vmem:[%s2854_s2 + $0x3] sm:$0x1] }
 0xb9c   :  { %1354 = vmatprep.subr.bf16.mxu0 %v2053_v4  ;;  %v951_v4 = vunpack.c.l.bf16 %v1830_v3  ;;  %v945_v11 = vld [vmem:[#allocation3] sm:$0x3] }
 0xb9f   :  { %1355 = vmatpush1.bf16.msra.mxu0 %v2060_v5 }
 0xba0   :  { %1356 = vmatprep.subr.bf16.mxu0 %v2067_v6 }
 0xba3   :  { %1357 = vmatpush1.bf16.msra.mxu0 %v2074_v7 }
 0xba4   :  { %1358 = vmatprep.subr.bf16.mxu0 %v2083_v9 }
 0xba7   :  { %1359 = vmatpush1.bf16.msra.mxu0 %v2092_v10 }
 0xc6d   :  { %v990_v60 = vpop.f32.mrb[8].mxu0 }
 0xc6e   :  { %v997_v5 = vadd.f32 %v990_v60, %v948_v59  ;;  %v992_v12 = vpop.f32.mrb[9].mxu0 }
 0xc6f   :  { %v998_v6 = vadd.f32 %v992_v12, %v951_v4  ;;  %v994_v15 = vpop.f32.mrb[10].mxu0 }
 0xc70   :  { %v999_v7 = vmul.f32 %v997_v5, %v2122_v22  ;;  %v995_v9 = vpop.f32.mrb[11].mxu0 }
 0xc71   :  { %v1000_v19 = vmul.f32 %v998_v6, %v2124_v25 }
 0xc72   :  { %v1832_v20 = vmul.f32 -1.442695, %v999_v7 }
 0xc73   :  { %v1833_v21 = vmul.f32 -1.442695, %v1000_v19 }
 0xc74   :  { %1924 = vpow2.f32 %v1832_v20 }
 0xc75   :  { %1926 = vpow2.f32 %v1833_v21 }
 0xc7e   :  { %v1925_v23 = vpop.eup %1924 }
 0xc7f   :  { %v1927_v8 = vpop.eup %1926  ;;  %v1007_v46 = vadd.f32 1.0, %v1925_v23 }
 0xc80   :  { %v1008_v28 = vadd.f32 1.0, %v1927_v8 }
 0xc81   :  { %1928 = vrcp.f32 %v1007_v46 }
 0xc82   :  { %1930 = vrcp.f32 %v1008_v28 }
 0xc8b   :  { %v1929_v31 = vpop.eup %1928 }
 0xc8c   :  { %v1931_v32 = vpop.eup %1930  ;;  %v1013_v36 = vmul.f32 %v1929_v31, %v2122_v22 }
 0xc8d   :  { %v1014_v0 = vmul.f32 %v1931_v32, %v2124_v25 }
 0xc8e   :  { %v1015_v41 = vadd.f32 %v1013_v36, %v2129_v38  ;;  %v1972_v36 = vld [vmem:[%s2852_s3] ss:$8 sps:$4 sm:$0xff]  }
 0xc8f   :  { %v1016_v42 = vadd.f32 %v1014_v0, %v2134_v43  ;;  %v1973_v0 = vld [vmem:[%s2852_s3 + $0x14] ss:$8 sps:$4 sm:$0xff]  }
 0xc90   :  { %1023 = vrot.lane.b32.xlu1 %v1015_v41, %s1982_s30 }
 0xc91   :  { %1086 = vrot.lane.b32.xlu0 %v1016_v42, %s1982_s30  ;;  %v1084_v58 = vmul.f32 %v1016_v42, %v945_v11 }
 0xc94   :  { %1018 = vrot.lane.b32.xlu1 %v945_v11, %s1980_s23 }
 0xd02   :  { %v1024_v44 = vpop.permute.xlu1 %1023 }
 0xd03   :  { %v1026_v45 = vmul.f32 %v1024_v44, %v1015_v41  ;;  %v1087_v47 = vpop.permute.xlu0 %1086  ;;  %v1836_v44 = vld [vmem:[%s2853_s1 + $0x5] sm:$0x1] }
 0xd04   :  { %v1089_v51 = vmul.f32 %v1087_v47, %v1016_v42  ;;  %v1146_v47 = vunpack.c.l.bf16 %v1836_v44 }
 0xd05   :  { %1028 = vrot.lane.b32.xlu0 %v1026_v45, %s1980_s23  ;;  %v1837_v45 = vld [vmem:[%s2854_s2 + $0x2] sm:$0x1] }
 0xd06   :  { %1091 = vrot.lane.b32.xlu1 %v1089_v51, %s1980_s23  ;;  %v1019_v53 = vpop.permute.xlu1 %1018  ;;  %v1149_v51 = vunpack.c.l.bf16 %v1837_v45 }
 0xd07   :  { %v1021_v56 = vmul.f32 %v1019_v53, %v1015_v41 }
 0xd09   :  { %1043 = vperm.xlu0 %1863, %v2377_v18  }
 0xd0a   :  { %1106 = vperm.xlu1 %1862, %v2374_v16  }
 0xd77   :  { %v1029_v40 = vpop.permute.xlu0 %1028 }
 0xd78   :  { %v1031_v3 = vadd.f32 %v1029_v40, %v1021_v56  ;;  %v1092_v59 = vpop.permute.xlu1 %1091 }
 0xd79   :  { %v1094_v4 = vadd.f32 %v1092_v59, %v1084_v58 }
 0xd7a   :  { %1932 = vtanh.f32 %v1031_v3 }
 0xd7b   :  { %1934 = vtanh.f32 %v1094_v4 }
 0xd84   :  { %v1933_v60 = vpop.eup %1932 }
 0xd85   :  { %v1935_v5 = vpop.eup %1934  ;;  %1034 = vrot.lane.b32.xlu0 %v1933_v60, %s1982_s30 }
 0xd86   :  { %1097 = vrot.lane.b32.xlu1 %v1935_v5, %s1982_s30 }
 0xd88   :  { %v2452_v16 = vpop.permute.xlu0 %1043 }
 0xd89   :  { %1047 = vrot.lane.b32.xlu0 %v2414_v57, %s1983_s0  ;;  %v2454_v18 = vpop.permute.xlu1 %1106  ;;  %vm1045_vm15 = vcmp.eq.s32.totalorder %v2452_v16, 1 }
 0xd8a   :  { %1109 = vrot.lane.b32.xlu1 %v2414_v57, %s1982_s30  ;;  %vm1108_vm3 = vcmp.eq.s32.totalorder %v2454_v18, 1  ;;  %v1056_v21 = vsel %vm1045_vm15, %v1031_v3, %v1019_v53 }
 0xd8b   :  { %v1118_v28 = vsel %vm1108_vm3, %v1094_v4, %v945_v11  ;;  %v1976_v11 = vld [vmem:[%s2852_s3 + $0x20] ss:$8 sps:$4 sm:$0xff]  }
 0xdf7   :  { %v1035_v12 = vpop.permute.xlu0 %1034 }
 0xdf8   :  { %v1098_v6 = vpop.permute.xlu1 %1097  ;;  %v2456_v15 = vmul.f32 %v1035_v12, %v1015_v41  ;;  %v1974_v41 = vld [vmem:[%s2852_s3 + $0x10] ss:$8 sps:$4 sm:$0xff]  }
 0xdf9   :  { %v2459_v7 = vmul.f32 %v1098_v6, %v1016_v42  ;;  %v1975_v42 = vld [vmem:[%s2852_s3 + $0x24] ss:$8 sps:$4 sm:$0xff]  }
 0xdfb   :  { %v1048_v9 = vpop.permute.xlu0 %1047 }
 0xdfc   :  { %v1110_v19 = vpop.permute.xlu1 %1109  ;;  %v1050_v57 = vsel %vm1045_vm15, %v2456_v15, %v1048_v9 }
 0xdfd   :  { %1052 = vrot.lane.b32.xlu0 %v1050_v57, %s1980_s23  ;;  %v1112_v20 = vsel %vm1108_vm3, %v2459_v7, %v1110_v19 }
 0xdfe   :  { %1114 = vrot.lane.b32.xlu1 %v1112_v20, %s1982_s30 }
 0xe01   :  { %1058 = vrot.lane.b32.xlu0 %v1056_v21, %s1983_s0 }
 0xe6f   :  { %v1053_v23 = vpop.permute.xlu0 %1052 }
 0xe70   :  { %1055 = vst.msk [vmem:[#allocation2] sm:$0x3] %vm261_vm12, %v1053_v23  ;;  %v1115_v8 = vpop.permute.xlu1 %1114 }
 0xe71   :  { %1117 = vst.msk [vmem:[#allocation2] sm:$0x3] %vm324_vm13, %v1115_v8 }
 0xe73   :  { %v1059_v46 = vpop.permute.xlu0 %1058 }
 0xe74   :  { %1061 = vst.msk [vmem:[#allocation3] sm:$0x3] %vm261_vm12, %v1059_v46 }
 0xe75   :  { %1119 = vst.msk [vmem:[#allocation3] sm:$0x3] %vm324_vm13, %v1118_v28 }
 0xe78   :  { %v2479_v31 = vld [vmem:[#allocation2] sm:$0x3] }
 0xe79   :  { %v1150_v32 = vpack.c.bf16 %v2479_v31, %v2479_v31 }
 0xe7b   :  { %1838 = vmatmul.mubr.msk.bf16.vlgmr.msra.gmra.mrb[8].mxu1 %vm159_vm1, %v1150_v32 }
 0xe7c   :  { %1550 = vmatpush1.bf16.msra.mxu1 %v1972_v36  ;;  %1581 = vmatprep.mubr.bf16.mxu1 %v1978_v1  ;;  %v1977_v1 = vld [vmem:[%s2852_s3 + $0x34] ss:$8 sps:$4 sm:$0xff]   ;;  %v1143_v28 = vld [vmem:[#allocation3] sm:$0x3] }
 0xe7d   :  { %1551 = vmatprep.subr.bf16.mxu1 %v1973_v0 }
 0xe80   :  { %1552 = vmatpush1.bf16.msra.mxu1 %v1974_v41 }
 0xe81   :  { %1553 = vmatprep.subr.bf16.mxu1 %v1975_v42 }
 0xe84   :  { %1554 = vmatpush1.bf16.msra.mxu1 %v1976_v11 }
 0xe85   :  { %1555 = vmatprep.subr.bf16.mxu1 %v1977_v1 }
 0xe88   :  { %1556 = vmatpush1.bf16.msra.mxu1 %v2092_v10 }
 0xf4e   :  { %v1188_v53 = vpop.f32.mrb[8].mxu1 }
 0xf4f   :  { %v1195_v56 = vadd.f32 %v1188_v53, %v1146_v47  ;;  %v1190_v40 = vpop.f32.mrb[9].mxu1 }
 0xf50   :  { %v1196_v58 = vadd.f32 %v1190_v40, %v1149_v51  ;;  %v1192_v3 = vpop.f32.mrb[10].mxu1 }
 0xf51   :  { %v1197_v59 = vmul.f32 %v1195_v56, %v2122_v22  ;;  %v1193_v4 = vpop.f32.mrb[11].mxu1 }
 0xf52   :  { %v1198_v10 = vmul.f32 %v1196_v58, %v2124_v25 }
 0xf53   :  { %v1839_v60 = vmul.f32 -1.442695, %v1197_v59 }
 0xf54   :  { %v1840_v5 = vmul.f32 -1.442695, %v1198_v10 }
 0xf55   :  { %1936 = vpow2.f32 %v1839_v60 }
 0xf56   :  { %1938 = vpow2.f32 %v1840_v5 }
 0xf5f   :  { %v1937_v12 = vpop.eup %1936 }
 0xf60   :  { %v1939_v6 = vpop.eup %1938  ;;  %v1205_v9 = vadd.f32 1.0, %v1937_v12 }
 0xf61   :  { %v1206_v19 = vadd.f32 1.0, %v1939_v6 }
 0xf62   :  { %1940 = vrcp.f32 %v1205_v9 }
 0xf63   :  { %1942 = vrcp.f32 %v1206_v19 }
 0xf6c   :  { %v1941_v57 = vpop.eup %1940 }
 0xf6d   :  { %v1943_v20 = vpop.eup %1942  ;;  %v1211_v21 = vmul.f32 %v1941_v57, %v2122_v22 }
 0xf6e   :  { %v1212_v23 = vmul.f32 %v1943_v20, %v2124_v25 }
 0xf6f   :  { %v1213_v8 = vadd.f32 %v1211_v21, %v2129_v38  ;;  %v1843_v21 = vld [vmem:[%s2853_s1 + $0x6] sm:$0x1] }
 0xf70   :  { %v1214_v46 = vadd.f32 %v1212_v23, %v2134_v43  ;;  %v1844_v23 = vld [vmem:[%s2854_s2 + $0x1] sm:$0x1] }
 0xf71   :  { %1221 = vrot.lane.b32.xlu1 %v1213_v8, %s1982_s30 }
 0xf72   :  { %1284 = vrot.lane.b32.xlu0 %v1214_v46, %s1982_s30  ;;  %v1282_v44 = vmul.f32 %v1214_v46, %v1143_v28 }
 0xf75   :  { %1216 = vrot.lane.b32.xlu1 %v1143_v28, %s1980_s23 }
 0xfe3   :  { %v1222_v32 = vpop.permute.xlu1 %1221 }
 0xfe4   :  { %v1224_v36 = vmul.f32 %v1222_v32, %v1213_v8  ;;  %v1285_v0 = vpop.permute.xlu0 %1284 }
 0xfe5   :  { %v1287_v41 = vmul.f32 %v1285_v0, %v1214_v46 }
 0xfe6   :  { %1226 = vrot.lane.b32.xlu0 %v1224_v36, %s1980_s23 }
 0xfe7   :  { %1289 = vrot.lane.b32.xlu1 %v1287_v41, %s1980_s23  ;;  %v1217_v42 = vpop.permute.xlu1 %1216 }
 0xfe8   :  { %v1219_v11 = vmul.f32 %v1217_v42, %v1213_v8 }
 0xfea   :  { %1241 = vperm.xlu0 %1863, %v2303_v34  }
 0xfeb   :  { %1304 = vperm.xlu1 %1862, %v2300_v33  }
0x1058   :  { %v1227_v1 = vpop.permute.xlu0 %1226 }
0x1059   :  { %v1229_v45 = vadd.f32 %v1227_v1, %v1219_v11  ;;  %v1290_v47 = vpop.permute.xlu1 %1289 }
0x105a   :  { %v1292_v51 = vadd.f32 %v1290_v47, %v1282_v44 }
0x105b   :  { %1944 = vtanh.f32 %v1229_v45 }
0x105c   :  { %1946 = vtanh.f32 %v1292_v51 }
0x1065   :  { %v1945_v53 = vpop.eup %1944 }
0x1066   :  { %v1947_v56 = vpop.eup %1946  ;;  %1232 = vrot.lane.b32.xlu0 %v1945_v53, %s1982_s30 }
0x1067   :  { %1295 = vrot.lane.b32.xlu1 %v1947_v56, %s1982_s30 }
0x1069   :  { %v2529_v33 = vpop.permute.xlu0 %1241 }
0x106a   :  { %1245 = vrot.lane.b32.xlu0 %v2479_v31, %s1983_s0  ;;  %v2531_v34 = vpop.permute.xlu1 %1304  ;;  %vm1243_vm4 = vcmp.eq.s32.totalorder %v2529_v33, 1 }
0x106b   :  { %1307 = vrot.lane.b32.xlu1 %v2479_v31, %s1982_s30  ;;  %vm2862_vm7 = vcmp.eq.s32.totalorder %v2531_v34, 1  ;;  %v1254_v5 = vsel %vm1243_vm4, %v1229_v45, %v1217_v42 }
0x106c   :  { %v1316_v19 = vsel %vm2862_vm7, %v1292_v51, %v1143_v28 }
0x10d8   :  { %v1233_v40 = vpop.permute.xlu0 %1232 }
0x10d9   :  { %v1296_v58 = vpop.permute.xlu1 %1295  ;;  %v2533_v3 = vmul.f32 %v1233_v40, %v1213_v8  ;;  %v1344_v8 = vunpack.c.l.bf16 %v1843_v21 }
0x10da   :  { %v2536_v59 = vmul.f32 %v1296_v58, %v1214_v46  ;;  %v1347_v46 = vunpack.c.l.bf16 %v1844_v23 }
0x10db   :  { %v1260_v26 = vsel %vm1243_vm4, %v2533_v3, 0.0 }
0x10dc   :  { %v1246_v4 = vpop.permute.xlu0 %1245 }
0x10dd   :  { %v1308_v10 = vpop.permute.xlu1 %1307  ;;  %v1248_v31 = vsel %vm1243_vm4, %v2533_v3, %v1246_v4 }
0x10de   :  { %1250 = vrot.lane.b32.xlu0 %v1248_v31, %s1980_s23  ;;  %v1310_v60 = vsel %vm2862_vm7, %v2536_v59, %v1308_v10 }
0x10df   :  { %1312 = vrot.lane.b32.xlu1 %v1310_v60, %s1982_s30 }
0x10e2   :  { %1256 = vrot.lane.b32.xlu0 %v1254_v5, %s1983_s0 }
0x1150   :  { %v1251_v12 = vpop.permute.xlu0 %1250 }
0x1151   :  { %1253 = vst.msk [vmem:[#allocation2] sm:$0x3] %vm261_vm12, %v1251_v12  ;;  %v1313_v6 = vpop.permute.xlu1 %1312 }
0x1152   :  { %1315 = vst.msk [vmem:[#allocation2] sm:$0x3] %vm324_vm13, %v1313_v6 }
0x1154   :  { %v1257_v9 = vpop.permute.xlu0 %1256 }
0x1155   :  { %1259 = vst.msk [vmem:[#allocation3] sm:$0x3] %vm261_vm12, %v1257_v9 }
0x1156   :  { %1317 = vst.msk [vmem:[#allocation3] sm:$0x3] %vm324_vm13, %v1316_v19 }
0x1159   :  { %v1340_v57 = vld [vmem:[#allocation2] sm:$0x3] }
0x115a   :  { %v1348_v20 = vpack.c.bf16 %v1340_v57, %v1340_v57 }
0x115c   :  { %1845 = vmatmul.mubr.msk.bf16.vlgmr.msra.gmra.mrb[12].mxu0 %vm159_vm1, %v1348_v20 }
0x115d   :  { %v1341_v5 = vld [vmem:[#allocation3] sm:$0x3] }
0x122f   :  { %v1386_v32 = vpop.f32.mrb[12].mxu0 }
0x1230   :  { %v1393_v28 = vadd.f32 %v1386_v32, %v1344_v8  ;;  %v1388_v36 = vpop.f32.mrb[13].mxu0 }
0x1231   :  { %v1394_v0 = vadd.f32 %v1388_v36, %v1347_v46  ;;  %v1390_v41 = vpop.f32.mrb[14].mxu0 }
0x1232   :  { %v1395_v42 = vmul.f32 %v1393_v28, %v2122_v22  ;;  %v1391_v11 = vpop.f32.mrb[15].mxu0 }
0x1233   :  { %v1396_v1 = vmul.f32 %v1394_v0, %v2124_v25 }
0x1234   :  { %v1846_v44 = vmul.f32 -1.442695, %v1395_v42 }
0x1235   :  { %v1847_v45 = vmul.f32 -1.442695, %v1396_v1 }
0x1236   :  { %1948 = vpow2.f32 %v1846_v44 }
0x1237   :  { %1950 = vpow2.f32 %v1847_v45 }
0x1240   :  { %v1949_v47 = vpop.eup %1948 }
0x1241   :  { %v1951_v51 = vpop.eup %1950  ;;  %v1403_v53 = vadd.f32 1.0, %v1949_v47 }
0x1242   :  { %v1404_v56 = vadd.f32 1.0, %v1951_v51 }
0x1243   :  { %1952 = vrcp.f32 %v1403_v53 }
0x1244   :  { %1954 = vrcp.f32 %v1404_v56 }
0x124d   :  { %v1953_v40 = vpop.eup %1952 }
0x124e   :  { %v1955_v58 = vpop.eup %1954  ;;  %v1409_v4 = vmul.f32 %v1953_v40, %v2122_v22 }
0x124f   :  { %v1410_v10 = vmul.f32 %v1955_v58, %v2124_v25 }
0x1250   :  { %v1411_v31 = vadd.f32 %v1409_v4, %v2129_v38 }
0x1251   :  { %v1412_v60 = vadd.f32 %v1410_v10, %v2134_v43 }
0x1252   :  { %1419 = vrot.lane.b32.xlu1 %v1411_v31, %s1982_s30 }
0x1253   :  { %1482 = vrot.lane.b32.xlu0 %v1412_v60, %s1982_s30  ;;  %v1480_v8 = vmul.f32 %v1412_v60, %v1341_v5 }
0x1256   :  { %1414 = vrot.lane.b32.xlu1 %v1341_v5, %s1980_s23 }
0x12c4   :  { %v1420_v12 = vpop.permute.xlu1 %1419 }
0x12c5   :  { %v1422_v6 = vmul.f32 %v1420_v12, %v1411_v31  ;;  %v1483_v9 = vpop.permute.xlu0 %1482 }
0x12c6   :  { %v1485_v19 = vmul.f32 %v1483_v9, %v1412_v60 }
0x12c7   :  { %1424 = vrot.lane.b32.xlu0 %v1422_v6, %s1980_s23 }
0x12c8   :  { %1487 = vrot.lane.b32.xlu1 %v1485_v19, %s1980_s23  ;;  %v1415_v20 = vpop.permute.xlu1 %1414 }
0x12c9   :  { %v1417_v21 = vmul.f32 %v1415_v20, %v1411_v31 }
0x12cb   :  { %1439 = vperm.xlu0 %1863, %v2229_v2  }
0x12cc   :  { %1502 = vperm.xlu1 %1862, %v2226_v61  }
0x1339   :  { %v1425_v23 = vpop.permute.xlu0 %1424 }
0x133a   :  { %v1427_v46 = vadd.f32 %v1425_v23, %v1417_v21  ;;  %v1488_v32 = vpop.permute.xlu1 %1487 }
0x133b   :  { %v1490_v28 = vadd.f32 %v1488_v32, %v1480_v8 }
0x133c   :  { %1956 = vtanh.f32 %v1427_v46 }
0x133d   :  { %1958 = vtanh.f32 %v1490_v28 }
0x1346   :  { %v1957_v36 = vpop.eup %1956 }
0x1347   :  { %v1959_v0 = vpop.eup %1958  ;;  %1430 = vrot.lane.b32.xlu0 %v1957_v36, %s1982_s30 }
0x1348   :  { %1493 = vrot.lane.b32.xlu1 %v1959_v0, %s1982_s30 }
0x134a   :  { %v2580_v61 = vpop.permute.xlu0 %1439 }
0x134b   :  { %1443 = vrot.lane.b32.xlu0 %v1340_v57, %s1983_s0  ;;  %v2582_v2 = vpop.permute.xlu1 %1502  ;;  %vm1441_vm8 = vcmp.eq.s32.totalorder %v2580_v61, 1 }
0x134c   :  { %1505 = vrot.lane.b32.xlu1 %v1340_v57, %s1982_s30  ;;  %vm1504_vm7 = vcmp.eq.s32.totalorder %v2582_v2, 1  ;;  %v1452_v51 = vsel %vm1441_vm8, %v1427_v46, %v1415_v20 }
0x134d   :  { %v1514_v58 = vsel %vm1504_vm7, %v1490_v28, %v1341_v5 }
0x13b9   :  { %v1431_v41 = vpop.permute.xlu0 %1430 }
0x13ba   :  { %v1494_v42 = vpop.permute.xlu1 %1493  ;;  %v2584_v11 = vmul.f32 %v1431_v41, %v1411_v31  ;;  %v1850_v31 = vld [vmem:[%s2853_s1 + $0x7] sm:$0x1] }
0x13bb   :  { %v2587_v1 = vmul.f32 %v1494_v42, %v1412_v60  ;;  %v1543_v60 = vld [vmem:[%s2854_s2] sm:$0x1]  ;;  %v1542_v5 = vunpack.c.l.bf16 %v1850_v31 }
0x13bc   :  { %v1544_v12 = vunpack.c.l.bf16 %v1543_v60  ;;  %v1458_v16 = vsel %vm1441_vm8, %v2584_v11, 0.0 }
0x13bd   :  { %v1444_v44 = vpop.permute.xlu0 %1443 }
0x13be   :  { %v1506_v45 = vpop.permute.xlu1 %1505  ;;  %v1446_v57 = vsel %vm1441_vm8, %v2584_v11, %v1444_v44 }
0x13bf   :  { %1448 = vrot.lane.b32.xlu0 %v1446_v57, %s1980_s23  ;;  %v1508_v47 = vsel %vm1504_vm7, %v2587_v1, %v1506_v45 }
0x13c0   :  { %1510 = vrot.lane.b32.xlu1 %v1508_v47, %s1982_s30 }
0x13c3   :  { %1454 = vrot.lane.b32.xlu0 %v1452_v51, %s1983_s0 }
0x1431   :  { %v1449_v53 = vpop.permute.xlu0 %1448 }
0x1432   :  { %1451 = vst.msk [vmem:[#allocation2] sm:$0x3] %vm261_vm12, %v1449_v53  ;;  %v1511_v56 = vpop.permute.xlu1 %1510 }
0x1433   :  { %1513 = vst.msk [vmem:[#allocation2] sm:$0x3] %vm324_vm13, %v1511_v56 }
0x1435   :  { %v1455_v40 = vpop.permute.xlu0 %1454 }
0x1436   :  { %1457 = vst.msk [vmem:[#allocation3] sm:$0x3] %vm261_vm12, %v1455_v40 }
0x1437   :  { %1515 = vst.msk [vmem:[#allocation3] sm:$0x3] %vm324_vm13, %v1514_v58 }
0x143a   :  { %v2607_v4 = vld [vmem:[#allocation2] sm:$0x3] }
0x143b   :  { %v1545_v10 = vpack.c.bf16 %v2607_v4, %v2607_v4 }
0x143d   :  { %1851 = vmatmul.mubr.msk.bf16.vlgmr.msra.gmra.mrb[12].mxu1 %vm159_vm1, %v1545_v10 }
0x143e   :  { %v2632_v56 = vld [vmem:[#allocation3] sm:$0x3] }
0x1510   :  { %v1583_v6 = vpop.f32.mrb[12].mxu1 }
0x1511   :  { %v1590_v9 = vadd.f32 %v1583_v6, %v1542_v5  ;;  %v1585_v19 = vpop.f32.mrb[13].mxu1  ;;  %v1984_v6 = vmov 1966171168  }
0x1512   :  { %v1591_v20 = vadd.f32 %v1585_v19, %v1544_v12  ;;  %v1587_v21 = vpop.f32.mrb[14].mxu1 }
0x1513   :  { %v1592_v23 = vmul.f32 %v1590_v9, %v2122_v22  ;;  %v1588_v8 = vpop.f32.mrb[15].mxu1  ;;  %v273_v9 = vunpack.c.l.s4 %v1984_v6  ;;  %v269_v21 = vsel %vm251_vm10, %v2168_v14, 0.0  ;;  %v666_v14 = vsel %vm649_vm5, %v2317_v54, 0.0 }
0x1514   :  { %v1593_v46 = vmul.f32 %v1591_v20, %v2124_v25  ;;  %v270_v8 = vpack.c.bf16 %v269_v21, %v269_v21  ;;  %v1062_v54 = vsel %vm1045_vm15, %v2456_v15, 0.0  ;;  %v526_v6 = vsel %vm514_vm2, %v2246_v30, 0.0 }
0x1515   :  { %v1852_v32 = vmul.f32 -1.442695, %v1592_v23 }
0x1516   :  { %v1853_v28 = vmul.f32 -1.442695, %v1593_v46 }
0x1517   :  { %1960 = vpow2.f32 %v1852_v32  ;;  %v468_v32 = vsel %vm451_vm0, %v2243_v29, 0.0  ;;  %v667_v29 = vpack.c.bf16 %v666_v14, %v666_v14  ;;  %vm2863_vm0 = vcmp.eq.s32.totalorder %v2531_v34, 1 }
0x1518   :  { %1962 = vpow2.f32 %v1853_v28  ;;  %v469_v62 = vpack.c.bf16 %v468_v32, %v468_v32 }
0x1521   :  { %v1961_v36 = vpop.eup %1960 }
0x1522   :  { %v1963_v0 = vpop.eup %1962  ;;  %v1600_v41 = vadd.f32 1.0, %v1961_v36 }
0x1523   :  { %v1601_v42 = vadd.f32 1.0, %v1963_v0 }
0x1524   :  { %1964 = vrcp.f32 %v1600_v41 }
0x1525   :  { %1966 = vrcp.f32 %v1601_v42 }
0x152e   :  { %v1965_v44 = vpop.eup %1964 }
0x152f   :  { %v1967_v45 = vpop.eup %1966  ;;  %v1606_v57 = vmul.f32 %v1965_v44, %v2122_v22 }
0x1530   :  { %v1607_v47 = vmul.f32 %v1967_v45, %v2124_v25  ;;  %v1063_v45 = vpack.c.bf16 %v1062_v54, %v1062_v54 }
0x1531   :  { %v2623_v51 = vadd.f32 %v1606_v57, %v2129_v38 }
0x1532   :  { %v2626_v53 = vadd.f32 %v1607_v47, %v2134_v43  ;;  %v1261_v47 = vpack.c.bf16 %v1260_v26, %v1260_v26 }
0x1533   :  { %1616 = vrot.lane.b32.xlu1 %v2623_v51, %s1982_s30 }
0x1534   :  { %1679 = vrot.lane.b32.xlu0 %v2626_v53, %s1982_s30  ;;  %v1677_v31 = vmul.f32 %v2626_v53, %v2632_v56 }
0x1537   :  { %1611 = vrot.lane.b32.xlu1 %v2632_v56, %s1980_s23 }
0x15a5   :  { %v1617_v22 = vpop.permute.xlu1 %1616 }
0x15a6   :  { %v1619_v25 = vmul.f32 %v1617_v22, %v2623_v51  ;;  %v1680_v40 = vpop.permute.xlu0 %1679 }
0x15a7   :  { %v1682_v38 = vmul.f32 %v1680_v40, %v2626_v53 }
0x15a8   :  { %1621 = vrot.lane.b32.xlu0 %v1619_v25, %s1980_s23  ;;  %v1459_v25 = vpack.c.bf16 %v1458_v16, %v1458_v16 }
0x15a9   :  { %1684 = vrot.lane.b32.xlu1 %v1682_v38, %s1980_s23  ;;  %v1612_v43 = vpop.permute.xlu1 %1611  ;;  %v328_v38 = vsel %vm315_vm11, %v2175_v17, 0.0  ;;  %vm289_vm11 = vcmask 253952  }
0x15aa   :  { %v1614_v58 = vmul.f32 %v1612_v43, %v2623_v51 }
0x15ac   :  { %1636 = vperm.xlu0 %1863, %v2154_v52   ;;  %v274_v52 = vunpack.c.0.s8 %v273_v9 }
0x15ad   :  { %1698 = vperm.xlu1 %1862, %v2148_v50   ;;  %v276_v50 = vshrl.u32 %v71_v13, 7 }
0x15af   :  { %v2654_v23 = vsub.s32 %v274_v52, %v276_v50 }
0x15b1   :  { %v278_v13 = vrot.slane %v270_v8, %v2654_v23  ;;  %v477_v24 = vrot.slane %v469_v62, %v2654_v23  ;;  %v675_v0 = vrot.slane %v667_v29, %v2654_v23  ;;  %v1071_v57 = vrot.slane %v1063_v45, %v2654_v23 }
0x15b2   :  { %v1269_v22 = vrot.slane %v1261_v47, %v2654_v23  ;;  %v1467_v3 = vrot.slane %v1459_v25, %v2654_v23  ;;  %v922_v8 = vsel %vm910_vm14, %v2394_v39, 0.0 }
0x15b3   :  { %v285_v36 = vrot.slane %v278_v13, %v2654_v23  ;;  %v484_v48 = vrot.slane %v477_v24, %v2654_v23  ;;  %v682_v42 = vrot.slane %v675_v0, %v2654_v23  ;;  %v1078_v15 = vrot.slane %v1071_v57, %v2654_v23 }
0x15b4   :  { %v1276_v33 = vrot.slane %v1269_v22, %v2654_v23  ;;  %v1474_v40 = vrot.slane %v1467_v3, %v2654_v23  ;;  %v1120_v13 = vsel %vm1108_vm3, %v2459_v7, 0.0  ;;  %v1318_v7 = vsel %vm2863_vm0, %v2536_v59, 0.0 }
0x15b5   :  { %v1121_v18 = vpack.c.bf16 %v1120_v13, %v1120_v13 }
0x15b7   :  { %v1129_v29 = vrot.slane %v1121_v18, %v2654_v23 }
0x15b9   :  { %v1136_v34 = vrot.slane %v1129_v29, %v2654_v23 }
0x161a   :  { %v1622_v10 = vpop.permute.xlu0 %1621 }
0x161b   :  { %v1624_v60 = vadd.f32 %v1622_v10, %v1614_v58  ;;  %v1685_v5 = vpop.permute.xlu1 %1684 }
0x161c   :  { %v2645_v12 = vadd.f32 %v1685_v5, %v1677_v31  ;;  %v329_v31 = vpack.c.bf16 %v328_v38, %v328_v38 }
0x161d   :  { %1968 = vtanh.f32 %v1624_v60 }
0x161e   :  { %1970 = vtanh.f32 %v2645_v12  ;;  %v337_v17 = vrot.slane %v329_v31, %v2654_v23 }
0x1627   :  { %v1969_v19 = vpop.eup %1968 }
0x1628   :  { %v1971_v20 = vpop.eup %1970  ;;  %1627 = vrot.lane.b32.xlu0 %v1969_v19, %s1982_s30 }
0x1629   :  { %1690 = vrot.lane.b32.xlu1 %v1971_v20, %s1982_s30 }
0x162b   :  { %v1637_v46 = vpop.permute.xlu0 %1636 }
0x162c   :  { %1640 = vrot.lane.b32.xlu0 %v2607_v4, %s1983_s0  ;;  %vm1638_vm1 = vcmp.eq.s32.totalorder %v1637_v46, 1  ;;  %v2701_v61 = vpop.permute.xlu1 %1698 }
0x162d   :  { %1701 = vrot.lane.b32.xlu1 %v2607_v4, %s1982_s30  ;;  %v1649_v28 = vsel %vm1638_vm1, %v1624_v60, %v1612_v43  ;;  %v864_v4 = vsel %vm847_vm9, %v2391_v37, 0.0  ;;  %vm1700_vm10 = vcmp.eq.s32.totalorder %v2701_v61, 1 }
0x162e   :  { %v865_v41 = vpack.c.bf16 %v864_v4, %v864_v4  ;;  %v1710_v21 = vsel %vm1700_vm10, %v2645_v12, %v2632_v56  ;;  %v733_v56 = vrot.slane %v725_v55, %v2654_v23  ;;  %v923_v12 = vpack.c.bf16 %v922_v8, %v922_v8 }
0x162f   :  { %v1516_v4 = vsel %vm1504_vm7, %v2587_v1, 0.0 }
0x1630   :  { %v873_v44 = vrot.slane %v865_v41, %v2654_v23  ;;  %v740_v39 = vrot.slane %v733_v56, %v2654_v23  ;;  %v931_v14 = vrot.slane %v923_v12, %v2654_v23  ;;  %v1517_v41 = vpack.c.bf16 %v1516_v4, %v1516_v4 }
0x1631   :  { %1651 = vrot.lane.b32.xlu1 %v1649_v28, %s1983_s0 }
0x1632   :  { %v880_v37 = vrot.slane %v873_v44, %v2654_v23  ;;  %v938_v24 = vrot.slane %v931_v14, %v2654_v23  ;;  %v1525_v1 = vrot.slane %v1517_v41, %v2654_v23 }
0x1634   :  { %v1532_v45 = vrot.slane %v1525_v1, %v2654_v23 }
0x1635   :  { %286 = vrot.lane.b32.xlu1 %v285_v36, %s1980_s23  ;;  %v1319_v36 = vpack.c.bf16 %v1318_v7, %v1318_v7 }
0x1637   :  { %v1327_v59 = vrot.slane %v1319_v36, %v2654_v23 }
0x1639   :  { %485 = vrot.lane.b32.xlu1 %v484_v48, %s1980_s23  ;;  %v1334_v2 = vrot.slane %v1327_v59, %v2654_v23 }
0x163d   :  { %683 = vrot.lane.b32.xlu1 %v682_v42, %s1980_s23 }
0x1641   :  { %881 = vrot.lane.b32.xlu1 %v880_v37, %s1980_s23 }
0x1645   :  { %1079 = vrot.lane.b32.xlu1 %v1078_v15, %s1980_s23 }
0x1649   :  { %1277 = vrot.lane.b32.xlu1 %v1276_v33, %s1980_s23 }
0x164d   :  { %1475 = vrot.lane.b32.xlu1 %v1474_v40, %s1980_s23 }
0x169a   :  { %v1628_v11 = vpop.permute.xlu0 %1627 }
0x169b   :  { %v1630_v43 = vmul.f32 %v1628_v11, %v2623_v51  ;;  %v1691_v58 = vpop.permute.xlu1 %1690  ;;  %v527_v51 = vpack.c.bf16 %v526_v6, %v526_v6 }
0x169c   :  { %v1693_v63 = vmul.f32 %v1691_v58, %v2626_v53  ;;  %v344_v53 = vrot.slane %v337_v17, %v2654_v23 }
0x169d   :  { %v1655_v10 = vsel %vm1638_vm1, %v1630_v43, 0.0  ;;  %v535_v49 = vrot.slane %v527_v51, %v2654_v23 }
0x169e   :  { %v1656_v60 = vpack.c.bf16 %v1655_v10, %v1655_v10  ;;  %v1641_v5 = vpop.permute.xlu0 %1640  ;;  %v1712_v48 = vsel %vm1700_vm10, %v1693_v63, 0.0 }
0x169f   :  { %v1643_v9 = vsel %vm1638_vm1, %v1630_v43, %v1641_v5  ;;  %v1702_v19 = vpop.permute.xlu1 %1701  ;;  %v542_v32 = vrot.slane %v535_v49, %v2654_v23  ;;  %v1713_v42 = vpack.c.bf16 %v1712_v48, %v1712_v48 }
0x16a0   :  { %v1664_v52 = vrot.slane %v1656_v60, %v2654_v23  ;;  %1645 = vrot.lane.b32.xlu0 %v1643_v9, %s1980_s23  ;;  %v1704_v30 = vsel %vm1700_vm10, %v1693_v63, %v1702_v19 }
0x16a1   :  { %v1721_v26 = vrot.slane %v1713_v42, %v2654_v23 }
0x16a2   :  { %v1671_v50 = vrot.slane %v1664_v52, %v2654_v23 }
0x16a3   :  { %v1652_v20 = vpop.permute.xlu1 %1651  ;;  %v1728_v57 = vrot.slane %v1721_v26, %v2654_v23 }
0x16a4   :  { %1654 = vst.msk [vmem:[#allocation3] sm:$0x3] %vm261_vm12, %v1652_v20  ;;  %1672 = vrot.lane.b32.xlu1 %v1671_v50, %s1980_s23  ;;  %1706 = vrot.lane.b32.xlu0 %v1704_v30, %s1982_s30 }
0x16a5   :  { %1711 = vst.msk [vmem:[#allocation3] sm:$0x3] %vm324_vm13, %v1710_v21 }
0x16a7   :  { %v287_v46 = vpop.permute.xlu1 %286 }
0x16a8   :  { %290 = vst.msk [vmem:[%s2856_s4] sm:$0x1] %vm289_vm11, %v287_v46  ;;  %345 = vrot.lane.b32.xlu0 %v344_v53, %s1980_s23 }
0x16ab   :  { %v486_v62 = vpop.permute.xlu1 %485 }
0x16ac   :  { %1813 = vst.msk [vmem:[%s2856_s4 + $0x1] sm:$0x1] %vm289_vm11, %v486_v62  ;;  %543 = vrot.lane.b32.xlu0 %v542_v32, %s1980_s23  ;;  %v1738_v35 = vld [vmem:[#allocation3] sm:$0x3] }
0x16ad   :  { %1739 = vst.msk [vmem:[%s2857_s8] sm:$0x3] %vm261_vm12, %v1738_v35  ;;  %v1746_v47 = vld [vmem:[#allocation3] sm:$0x3] }
0x16af   :  { %v684_v28 = vpop.permute.xlu1 %683 }
0x16b0   :  { %1820 = vst.msk [vmem:[%s2856_s4 + $0x2] sm:$0x1] %vm289_vm11, %v684_v28  ;;  %741 = vrot.lane.b32.xlu0 %v740_v39, %s1980_s23 }
0x16b3   :  { %v882_v0 = vpop.permute.xlu1 %881 }
0x16b4   :  { %1827 = vst.msk [vmem:[%s2856_s4 + $0x3] sm:$0x1] %vm289_vm11, %v882_v0  ;;  %939 = vrot.lane.b32.xlu0 %v938_v24, %s1980_s23 }
0x16b7   :  { %v1080_v54 = vpop.permute.xlu1 %1079 }
0x16b8   :  { %1834 = vst.msk [vmem:[%s2856_s4 + $0x4] sm:$0x1] %vm289_vm11, %v1080_v54  ;;  %1137 = vrot.lane.b32.xlu0 %v1136_v34, %s1980_s23 }
0x16bb   :  { %v1278_v44 = vpop.permute.xlu1 %1277 }
0x16bc   :  { %1841 = vst.msk [vmem:[%s2856_s4 + $0x5] sm:$0x1] %vm289_vm11, %v1278_v44  ;;  %1335 = vrot.lane.b32.xlu0 %v1334_v2, %s1980_s23 }
0x16bf   :  { %v1476_v37 = vpop.permute.xlu1 %1475 }
0x16c0   :  { %1848 = vst.msk [vmem:[%s2856_s4 + $0x6] sm:$0x1] %vm289_vm11, %v1476_v37  ;;  %1533 = vrot.lane.b32.xlu0 %v1532_v45, %s1980_s23 }
0x16c4   :  { %1729 = vrot.lane.b32.xlu0 %v1728_v57, %s1980_s23 }
0x16c8   :  { %1748 = vrot.lane.b32.xlu0 %v1746_v47, %s1983_s0 }
0x1712   :  { %v1646_v16 = vpop.permute.xlu0 %1645 }
0x1713   :  { %1648 = vst.msk [vmem:[#allocation2] sm:$0x3] %vm261_vm12, %v1646_v16 }
0x1716   :  { %v1707_v15 = vpop.permute.xlu0 %1706  ;;  %v1673_v22 = vpop.permute.xlu1 %1672 }
0x1717   :  { %1709 = vst.msk [vmem:[#allocation2] sm:$0x3] %vm324_vm13, %v1707_v15 }
0x1718   :  { %1854 = vst.msk [vmem:[%s2856_s4 + $0x7] sm:$0x1] %vm289_vm11, %v1673_v22 }
0x171a   :  { %v346_v25 = vpop.permute.xlu0 %345 }
0x171b   :  { %1807 = vst.msk [vmem:[%s2858_s5 + $0x7] sm:$0x1] %vm289_vm11, %v346_v25 }
0x171e   :  { %v1736_v23 = vld [vmem:[#allocation2] sm:$0x3]  ;;  %v544_v33 = vpop.permute.xlu0 %543 }
0x171f   :  { %v1740_v3 = vld [vmem:[#allocation2] sm:$0x3]  ;;  %1737 = vst.msk [vmem:[%s2859_s6] sm:$0x3] %vm261_vm12, %v1736_v23 }
0x1720   :  { %1814 = vst.msk [vmem:[%s2858_s5 + $0x6] sm:$0x1] %vm289_vm11, %v544_v33  ;;  %1742 = vrot.lane.b32.xlu1 %v1740_v3, %s1983_s0 }
0x1722   :  { %v742_v40 = vpop.permute.xlu0 %741 }
0x1723   :  { %1821 = vst.msk [vmem:[%s2858_s5 + $0x5] sm:$0x1] %vm289_vm11, %v742_v40 }
0x1726   :  { %v940_v61 = vpop.permute.xlu0 %939 }
0x1727   :  { %1828 = vst.msk [vmem:[%s2858_s5 + $0x4] sm:$0x1] %vm289_vm11, %v940_v61 }
0x172a   :  { %v1138_v11 = vpop.permute.xlu0 %1137 }
0x172b   :  { %1835 = vst.msk [vmem:[%s2858_s5 + $0x3] sm:$0x1] %vm289_vm11, %v1138_v11 }
0x172e   :  { %v1336_v38 = vpop.permute.xlu0 %1335 }
0x172f   :  { %1842 = vst.msk [vmem:[%s2858_s5 + $0x2] sm:$0x1] %vm289_vm11, %v1336_v38 }
0x1732   :  { %v1534_v43 = vpop.permute.xlu0 %1533 }
0x1733   :  { %1849 = vst.msk [vmem:[%s2858_s5 + $0x1] sm:$0x1] %vm289_vm11, %v1534_v43 }
0x1736   :  { %v1730_v58 = vpop.permute.xlu0 %1729 }
0x1737   :  { %1732 = vst.msk [vmem:[%s2858_s5] sm:$0x1] %vm289_vm11, %v1730_v58 }
0x173a   :  { %v1749_v10 = vpop.permute.xlu0 %1748 }
0x173b   :  { %1751 = vst.msk [vmem:[%s2860_s9] sm:$0x3] %vm261_vm12, %v1749_v10 }
0x1792   :  { %v1743_v31 = vpop.permute.xlu1 %1742 }
0x1793   :  { %1745 = vst.msk [vmem:[%s2861_s7] sm:$0x3] %vm261_vm12, %v1743_v31 }

</bundles_post_ra>
